<compile_context>
chip_gen: v7x
topology: tpu7x:2x2x1
jax: 0.10.0
libtpu: 0.0.40
codegen_flags: <defaults>
</compile_context>

<pallas_src>
import functools

import jax
import jax.numpy as jnp
from jax import lax
from jax.experimental import pallas as pl
from jax.experimental.pallas import tpu as pltpu

_MIB = 1024 * 1024


def _round_up(x, m):
    return (x + m - 1) // m * m


def _vmem_limit(nbytes):
    # Scoped default is 32 MiB (v6e/v7x) / 16 MiB (v5e).  Request what we
    # estimate (plus margin) but stay well inside v7x's 64 MiB physical VMEM.
    return int(min(max(int(nbytes * 1.25) + 2 * _MIB, 32 * _MIB), 46 * _MIB))


def _row_block(rows, target=256):
    """Row tile: multiple of 8, <= target.  Caller pads rows up to a multiple."""
    rows8 = _round_up(rows, 8)
    if rows8 <= target:
        return rows8
    for c in range(target - (target % 8), 7, -8):
        if rows % c == 0:
            return c
    return target          # no clean divisor: caller zero-pads the row dim


def _head_group(heads, dim_head):
    """Heads per grid step: keep lane width a multiple of 128 when possible,
    while keeping several parallel grid steps for megacore sharding."""
    if heads * dim_head <= 128:
        return heads
    for hg in range(1, heads):
        if heads % hg == 0 and (hg * dim_head) % 128 == 0:
            return hg
    return heads


# ----------------------------------------------------------------------------
# Pallas kernels
# ----------------------------------------------------------------------------
def ln_linear_kernel(x_ref, g_ref, bln_ref, w_ref, b_ref, o_ref, *, activation):
    """Fused LayerNorm (f32 bookkeeping) + Linear (native-dtype MXU feed)."""
    x = x_ref[...].astype(jnp.float32)
    mean = jnp.mean(x, axis=-1, keepdims=True)
    var = jnp.mean(jnp.square(x - mean), axis=-1, keepdims=True)
    xn = (x - mean) * lax.rsqrt(var + 1e-5)
    xn = xn * g_ref[...].astype(jnp.float32) + bln_ref[...].astype(jnp.float32)
    y = jnp.dot(xn.astype(w_ref.dtype), w_ref[...],
                preferred_element_type=jnp.float32)
    y = y + b_ref[...].astype(jnp.float32)
    if activation == "gelu":
        # TODO(synk): torch nn.GELU default is exact erf GELU; tanh approx used
        # (erf lowering in Mosaic is not relied upon).
        y = jax.nn.gelu(y, approximate=True)
    o_ref[...] = y.astype(o_ref.dtype)


def linear_kernel(x_ref, w_ref, b_ref, o_ref, *, activation):
    y = jnp.dot(x_ref[...], w_ref[...], preferred_element_type=jnp.float32)
    y = y + b_ref[...].astype(jnp.float32)
    if activation == "gelu":
        y = jax.nn.gelu(y, approximate=True)
    o_ref[...] = y.astype(o_ref.dtype)


def nystrom_attention_kernel(pool_ref, eye_ref, q_ref, k_ref, v_ref, tapw_ref,
                             o_ref, vpad_ref, *, scale, iters, hg, dim_head,
                             conv_k):
    """One (batch, head-group) slice per grid step, lane-dense layout.

    pool_ref: (m, N) f32 landmark pooling matrix (constant index map).
    eye_ref : (m, m) f32 identity (constant index map).
    q/k/v   : (1, N, hg*dim_head) blocks of the QKV projection.
    tapw_ref: (conv_k, hg*dim_head) per-lane depthwise conv tap weights.
    o_ref   : (1, N, hg*dim_head) lane-dense output block.
    vpad_ref: (N + 2*pad, hg*dim_head) f32 scratch for the residual conv.
    """
    N = q_ref.shape[1]
    W = hg * dim_head
    dt = q_ref.dtype

    q = q_ref[0] * scale                      # (N, W), native dtype
    k = k_ref[0]
    v = v_ref[0]

    pool = pool_ref[...]                      # (m, N) f32
    eye = eye_ref[...]                        # (m, m) f32
    pool_dt = pool.astype(dt)

    # Landmark pooling for the whole head-group slab in one MXU pass.
    q_l_all = jnp.dot(pool_dt, q, preferred_element_type=jnp.float32)   # (m, W)
    k_l_all = jnp.dot(pool_dt, k, preferred_element_type=jnp.float32)   # (m, W)

    dn_t = (((1,), (1,)), ((), ()))           # contract last dims: A @ B.T

    def _softmax(s):
        s = s - jnp.max(s, axis=-1, keepdims=True)
        e = jnp.exp(s)
        # approx reciprocal (EUP slot) — ~1e-3 rel. error vs exact divide.
        return e * pl.reciprocal(jnp.sum(e, axis=-1, keepdims=True), approx=True)

    out_heads = []
    for h in range(hg):
        c0, c1 = h * dim_head, (h + 1) * dim_head
        qh, kh, vh = q[:, c0:c1], k[:, c0:c1], v[:, c0:c1]
        q_lh = q_l_all[:, c0:c1].astype(dt)
        k_lh = k_l_all[:, c0:c1].astype(dt)

        sim1 = lax.dot_general(qh, k_lh, dn_t, preferred_element_type=jnp.float32)   # (N, m)
        sim2 = lax.dot_general(q_lh, k_lh, dn_t, preferred_element_type=jnp.float32) # (m, m)
        sim3 = lax.dot_general(q_lh, kh, dn_t, preferred_element_type=jnp.float32)   # (m, N)

        attn1, attn2, attn3 = _softmax(sim1), _softmax(sim2), _softmax(sim3)

        # Moore-Penrose iterative pseudo-inverse of attn2 (f32 throughout).
        # TODO(synk): init uses a per-(batch, head-group, head) max; the
        # reference takes a global max over all batch*heads.  Both are valid
        # Newton-Schulz inits and converge to the same pseudo-inverse.
        abs2 = jnp.abs(attn2)
        colm = jnp.max(jnp.sum(abs2, axis=-1, keepdims=True), axis=-2, keepdims=True)
        rowm = jnp.max(jnp.sum(abs2, axis=-2, keepdims=True), axis=-1, keepdims=True)
        z = attn2.T / (colm * rowm)           # (m, m) f32
        for _ in range(iters):
            xz = jnp.dot(attn2, z, preferred_element_type=jnp.float32)
            t = 7.0 * eye - xz
            t = 15.0 * eye - jnp.dot(xz, t, preferred_element_type=jnp.float32)
            t = 13.0 * eye - jnp.dot(xz, t, preferred_element_type=jnp.float32)
            z = 0.25 * jnp.dot(z, t, preferred_element_type=jnp.float32)

        # out = attn1 @ pinv(attn2) @ (attn3 @ v), MXU fed in native dtype.
        av = jnp.dot(attn3.astype(dt), vh, preferred_element_type=jnp.float32)        # (m, D)
        zav = jnp.dot(z.astype(dt), av.astype(dt), preferred_element_type=jnp.float32)  # (m, D)
        outh = jnp.dot(attn1.astype(dt), zav.astype(dt),
                       preferred_element_type=jnp.float32)                            # (N, D)
        out_heads.append(outh)

    out_all = out_heads[0] if hg == 1 else jnp.concatenate(out_heads, axis=-1)  # (N, W)

    # Depthwise residual conv over the sequence axis: zero-pad v into VMEM
    # scratch, then conv_k static shifted slices * per-lane tap weights (FMA
    # only, no rolls / masks), all on the lane-dense slab.
    pad = conv_k // 2
    vpad_ref[...] = jnp.zeros_like(vpad_ref)
    vpad_ref[pl.ds(pad, N), :] = v.astype(jnp.float32)
    tapw = tapw_ref[...]                      # (conv_k, W) f32
    res = jnp.zeros((N, W), jnp.float32)
    for t_ in range(conv_k):
        res = res + tapw[t_:t_ + 1] * vpad_ref[pl.ds(t_, N), :]

    o_ref[0] = (out_all + res).astype(o_ref.dtype)


# ----------------------------------------------------------------------------
# Pallas call wrappers
# ----------------------------------------------------------------------------
def _pad_rows(x2d, br):
    R = x2d.shape[0]
    Rp = _round_up(R, br)
    if Rp != R:
        x2d = jnp.pad(x2d, ((0, Rp - R), (0, 0)))
    return x2d, R


def ln_linear(x2d, g, bln, w, b, activation=None, target_rows=256):
    R, Din = x2d.shape
    Dout = w.shape[1]
    br = _row_block(R, target_rows)
    xp, R0 = _pad_rows(x2d, br)
    Rp = xp.shape[0]

    isz = jnp.dtype(x2d.dtype).itemsize
    wsz = jnp.dtype(w.dtype).itemsize
    need = (2 * br * (Din + Dout) * isz            # double-buffered act in/out
            + 2 * Din * Dout * wsz                 # double-buffered weight
            + 2 * (2 * Din + Dout) * wsz           # gains / biases
            + 8 * br * (Din + Dout))               # f32 working set
    kern = functools.partial(ln_linear_kernel, activation=activation)
    out = pl.pallas_call(
        kern,
        out_shape=jax.ShapeDtypeStruct((Rp, Dout), x2d.dtype),
        grid=(Rp // br,),
        in_specs=[
            pl.BlockSpec((br, Din), lambda i: (i, 0)),
            pl.BlockSpec((1, Din), lambda i: (0, 0)),
            pl.BlockSpec((1, Din), lambda i: (0, 0)),
            pl.BlockSpec((Din, Dout), lambda i: (0, 0)),
            pl.BlockSpec((1, Dout), lambda i: (0, 0)),
        ],
        out_specs=pl.BlockSpec((br, Dout), lambda i: (i, 0)),
        compiler_params=pltpu.CompilerParams(
            dimension_semantics=("parallel",), vmem_limit_bytes=_vmem_limit(need)),
    )(xp, g.reshape(1, Din), bln.reshape(1, Din), w, b.reshape(1, Dout))
    return out if Rp == R0 else out[:R0]


def linear(x2d, w, b, activation=None, target_rows=256):
    R, Din = x2d.shape
    Dout = w.shape[1]
    br = _row_block(R, target_rows)
    xp, R0 = _pad_rows(x2d, br)
    Rp = xp.shape[0]

    isz = jnp.dtype(x2d.dtype).itemsize
    wsz = jnp.dtype(w.dtype).itemsize
    need = (2 * br * (Din + Dout) * isz + 2 * Din * Dout * wsz
            + 2 * Dout * wsz + 8 * br * Dout)
    kern = functools.partial(linear_kernel, activation=activation)
    out = pl.pallas_call(
        kern,
        out_shape=jax.ShapeDtypeStruct((Rp, Dout), x2d.dtype),
        grid=(Rp // br,),
        in_specs=[
            pl.BlockSpec((br, Din), lambda i: (i, 0)),
            pl.BlockSpec((Din, Dout), lambda i: (0, 0)),
            pl.BlockSpec((1, Dout), lambda i: (0, 0)),
        ],
        out_specs=pl.BlockSpec((br, Dout), lambda i: (i, 0)),
        compiler_params=pltpu.CompilerParams(
            dimension_semantics=("parallel",), vmem_limit_bytes=_vmem_limit(need)),
    )(xp, w, b.reshape(1, Dout))
    return out if Rp == R0 else out[:R0]


def nystrom_core(qkv, conv_w, pool, eye, *, scale, iters, heads, dim_head):
    """qkv: (b, n, 3*heads*dim_head) lane-dense QKV projection.
    Returns the per-head Nystrom attention + residual conv in (b, n, inner)."""
    b, n, _ = qkv.shape
    inner = heads * dim_head
    m = pool.shape[0]
    conv_k = conv_w.shape[1]
    pad = conv_k // 2
    hg = _head_group(heads, dim_head)
    ng = heads // hg
    W = hg * dim_head

    # Per-lane conv tap weights: tapw[t, h*dim_head + d] = conv_w[h, t].
    tapw = jnp.repeat(conv_w.T.astype(jnp.float32), dim_head, axis=1)   # (K, inner)

    fused = (W % 128 == 0)
    if fused:
        # Fused QKV: bind the same array to three BlockSpecs with offset maps
        # (no q/k/v split copies in HBM).
        q_in = k_in = v_in = qkv
        qmap = lambda bi, gi: (bi, 0, gi)
        kmap = lambda bi, gi: (bi, 0, ng + gi)
        vmap = lambda bi, gi: (bi, 0, 2 * ng + gi)
    else:
        # TODO(synk): lane width not a multiple of 128 -> fall back to explicit
        # q/k/v column slices so every block equals the full last dim.
        q_in, k_in, v_in = jnp.split(qkv, 3, axis=-1)
        qmap = kmap = vmap = lambda bi, gi: (bi, 0, gi)

    isz = jnp.dtype(qkv.dtype).itemsize
    need = (2 * 4 * n * W * isz                       # q,k,v,out double-buffered
            + 4 * (m * n + m * m + conv_k * W) * 2    # pool / eye / taps
            + 4 * (n + 2 * pad) * W                   # conv scratch
            + 4 * (8 * n * W + 8 * n * m + 10 * m * m))  # f32 working set
    kern = functools.partial(nystrom_attention_kernel, scale=scale, iters=iters,
                             hg=hg, dim_head=dim_head, conv_k=conv_k)

    return pl.pallas_call(
        kern,
        out_shape=jax.ShapeDtypeStruct((b, n, inner), qkv.dtype),
        grid=(b, ng),
        in_specs=[
            pl.BlockSpec((m, n), lambda bi, gi: (0, 0)),         # pooling matrix
            pl.BlockSpec((m, m), lambda bi, gi: (0, 0)),         # identity
            pl.BlockSpec((1, n, W), qmap),
            pl.BlockSpec((1, n, W), kmap),
            pl.BlockSpec((1, n, W), vmap),
            pl.BlockSpec((conv_k, W), lambda bi, gi: (0, gi)),   # conv taps
        ],
        out_specs=pl.BlockSpec((1, n, W), lambda bi, gi: (bi, 0, gi)),
        scratch_shapes=[pltpu.VMEM((n + 2 * pad, W), jnp.float32)],
        compiler_params=pltpu.CompilerParams(
            dimension_semantics=("parallel", "parallel"),
            vmem_limit_bytes=_vmem_limit(need)),
    )(pool, eye, q_in, k_in, v_in, tapw)


# ----------------------------------------------------------------------------
# Model glue (parameter setup, residual wiring)
# ----------------------------------------------------------------------------
def init_params(key, dim, depth, heads, dim_head, ff_mult, conv_k,
                dtype=jnp.float32):
    inner = heads * dim_head
    params = []
    for d_ in range(depth):
        ks = jax.random.split(jax.random.fold_in(key, d_), 8)
        params.append(dict(
            attn_ln_g=jnp.ones((dim,), dtype),
            attn_ln_b=jnp.zeros((dim,), dtype),
            w_qkv=(0.05 * jax.random.normal(ks[0], (dim, inner * 3))).astype(dtype),
            w_out=(0.05 * jax.random.normal(ks[1], (inner, dim))).astype(dtype),
            b_out=(0.01 * jax.random.normal(ks[2], (dim,))).astype(dtype),
            conv_w=(0.10 * jax.random.normal(ks[3], (heads, conv_k))).astype(dtype),
            ff_ln_g=jnp.ones((dim,), dtype),
            ff_ln_b=jnp.zeros((dim,), dtype),
            w1=(0.05 * jax.random.normal(ks[4], (dim, dim * ff_mult))).astype(dtype),
            b1=(0.01 * jax.random.normal(ks[5], (dim * ff_mult,))).astype(dtype),
            w2=(0.05 * jax.random.normal(ks[6], (dim * ff_mult, dim))).astype(dtype),
            b2=(0.01 * jax.random.normal(ks[7], (dim,))).astype(dtype),
        ))
    return params


def attention_block(x, p, *, heads, dim_head, num_landmarks, pinv_iters):
    b, n, dim = x.shape
    inner = heads * dim_head
    m = num_landmarks
    # TODO(synk): n % m != 0 padding path and the mask path are not implemented
    # (mask=None and n a multiple of num_landmarks assumed).
    assert n % m == 0
    l = n // m
    scale = dim_head ** -0.5

    # Fused LayerNorm + QKV projection (to_qkv has no bias), lane-dense output.
    qkv = ln_linear(x.reshape(b * n, dim), p["attn_ln_g"], p["attn_ln_b"],
                    p["w_qkv"], jnp.zeros((inner * 3,), x.dtype))
    qkv = qkv.reshape(b, n, inner * 3)

    # Constants hoisted out of the kernel (constant index maps, VMEM resident).
    pool = ((jnp.arange(n)[None, :] // l) ==
            jnp.arange(m)[:, None]).astype(jnp.float32) / float(l)    # (m, n)
    eye = jnp.eye(m, dtype=jnp.float32)

    out = nystrom_core(qkv, p["conv_w"], pool, eye, scale=scale,
                       iters=pinv_iters, heads=heads, dim_head=dim_head)
    out = linear(out.reshape(b * n, inner), p["w_out"], p["b_out"])
    return out.reshape(b, n, dim)


def ff_block(x, p):
    b, n, dim = x.shape
    x2 = x.reshape(b * n, dim)
    h = ln_linear(x2, p["ff_ln_g"], p["ff_ln_b"], p["w1"], p["b1"],
                  activation="gelu")
    out = linear(h, p["w2"], p["b2"])
    return out.reshape(b, n, dim)


def nystromformer_forward(x, params, *, heads, dim_head, num_landmarks,
                          pinv_iters):
    for p in params:
        x = attention_block(x, p, heads=heads, dim_head=dim_head,
                            num_landmarks=num_landmarks,
                            pinv_iters=pinv_iters) + x
        x = ff_block(x, p) + x
    return x


if __name__ == "__main__":
    key = jax.random.PRNGKey(0)
    b, n, dim = 2, 16, 32
    depth = 2
    heads, dim_head = 2, 64          # inner = 128 -> lane-dense 128-wide blocks
    num_landmarks = 8
    pinv_iters = 6
    conv_k = 33                      # module default residual conv kernel
    ff_mult = 4

    params = init_params(key, dim, depth, heads, dim_head, ff_mult, conv_k,
                         dtype=jnp.float32)
    x = jax.random.normal(jax.random.fold_in(key, 123), (b, n, dim),
                          jnp.float32)

    fwd = jax.jit(functools.partial(
        nystromformer_forward, heads=heads, dim_head=dim_head,
        num_landmarks=num_landmarks, pinv_iters=pinv_iters))
    y = fwd(x, params)
    jax.block_until_ready(y)
    assert y.shape == (b, n, dim)
    assert bool(jnp.all(jnp.isfinite(y)))
    print("KERNEL_OK")
</pallas_src>

<mosaic_0001>
module attributes {stable_mosaic.version = 11 : i64} {
  func.func @ln_linear_kernel(%arg0: i32, %arg1: memref<32x32xf32, #tpu.memory_space<vmem>>, %arg2: memref<1x32xf32, #tpu.memory_space<vmem>>, %arg3: memref<1x32xf32, #tpu.memory_space<vmem>>, %arg4: memref<32x384xf32, #tpu.memory_space<vmem>>, %arg5: memref<1x384xf32, #tpu.memory_space<vmem>>, %arg6: memref<32x384xf32, #tpu.memory_space<vmem>>) attributes {dimension_semantics = [#tpu.dimension_semantics<parallel>], iteration_bounds = array<i64: 1>, scalar_prefetch = 0 : i64, scratch_operands = 0 : i64, tpu.core_type = #tpu.core_type<tc>, window_params = [{transform_indices = @transform_0, window_bounds = array<i64: 32, 32>}, {pipeline_mode = #tpu.pipeline_mode<synchronous>, transform_indices = @transform_1, window_bounds = array<i64: 1, 32>}, {pipeline_mode = #tpu.pipeline_mode<synchronous>, transform_indices = @transform_2, window_bounds = array<i64: 1, 32>}, {pipeline_mode = #tpu.pipeline_mode<synchronous>, transform_indices = @transform_3, window_bounds = array<i64: 32, 384>}, {pipeline_mode = #tpu.pipeline_mode<synchronous>, transform_indices = @transform_4, window_bounds = array<i64: 1, 384>}, {transform_indices = @transform_5, window_bounds = array<i64: 32, 384>}]} {
    %c0 = arith.constant 0 : index
    %c0_0 = arith.constant 0 : index
    %0 = vector.load %arg1[%c0, %c0_0] : memref<32x32xf32, #tpu.memory_space<vmem>>, vector<32x32xf32>
    %cst = arith.constant dense<0.000000e+00> : vector<32xf32>
    %1 = vector.multi_reduction <add>, %0, %cst [1] : vector<32x32xf32> to vector<32xf32>
    %2 = vector.shape_cast %1 : vector<32xf32> to vector<32x1xf32>
    %cst_1 = arith.constant 3.200000e+01 : f32
    %3 = vector.broadcast %cst_1 : f32 to vector<32x1xf32>
    %4 = arith.divf %2, %3 : vector<32x1xf32>
    %5 = vector.broadcast %4 : vector<32x1xf32> to vector<32x32xf32>
    %6 = arith.subf %0, %5 : vector<32x32xf32>
    %7 = arith.mulf %6, %6 : vector<32x32xf32>
    %cst_2 = arith.constant dense<0.000000e+00> : vector<32xf32>
    %8 = vector.multi_reduction <add>, %7, %cst_2 [1] : vector<32x32xf32> to vector<32xf32>
    %9 = vector.shape_cast %8 : vector<32xf32> to vector<32x1xf32>
    %cst_3 = arith.constant 3.200000e+01 : f32
    %10 = vector.broadcast %cst_3 : f32 to vector<32x1xf32>
    %11 = arith.divf %9, %10 : vector<32x1xf32>
    %12 = vector.broadcast %4 : vector<32x1xf32> to vector<32x32xf32>
    %13 = arith.subf %0, %12 : vector<32x32xf32>
    %cst_4 = arith.constant 9.99999974E-6 : f32
    %14 = vector.broadcast %cst_4 : f32 to vector<32x1xf32>
    %15 = arith.addf %11, %14 : vector<32x1xf32>
    %16 = math.rsqrt %15 : vector<32x1xf32>
    %17 = vector.broadcast %16 : vector<32x1xf32> to vector<32x32xf32>
    %18 = arith.mulf %13, %17 : vector<32x32xf32>
    %c0_5 = arith.constant 0 : index
    %c0_6 = arith.constant 0 : index
    %19 = vector.load %arg2[%c0_5, %c0_6] : memref<1x32xf32, #tpu.memory_space<vmem>>, vector<1x32xf32>
    %20 = vector.broadcast %19 : vector<1x32xf32> to vector<32x32xf32>
    %21 = arith.mulf %18, %20 : vector<32x32xf32>
    %c0_7 = arith.constant 0 : index
    %c0_8 = arith.constant 0 : index
    %22 = vector.load %arg3[%c0_7, %c0_8] : memref<1x32xf32, #tpu.memory_space<vmem>>, vector<1x32xf32>
    %23 = vector.broadcast %22 : vector<1x32xf32> to vector<32x32xf32>
    %24 = arith.addf %21, %23 : vector<32x32xf32>
    %c0_9 = arith.constant 0 : index
    %c0_10 = arith.constant 0 : index
    %25 = vector.load %arg4[%c0_9, %c0_10] : memref<32x384xf32, #tpu.memory_space<vmem>>, vector<32x384xf32>
    %cst_11 = arith.constant dense<0.000000e+00> : vector<32x384xf32>
    %26 = tpu.matmul %24, %25, %cst_11 {dimension_numbers = #tpu.dot_dimension_numbers<[1], [0], [0], [1], [0, 0, 1, 1], [], []>} : vector<32x32xf32>, vector<32x384xf32>, vector<32x384xf32> -> vector<32x384xf32>
    %c0_12 = arith.constant 0 : index
    %c0_13 = arith.constant 0 : index
    %27 = vector.load %arg5[%c0_12, %c0_13] : memref<1x384xf32, #tpu.memory_space<vmem>>, vector<1x384xf32>
    %28 = vector.broadcast %27 : vector<1x384xf32> to vector<32x384xf32>
    %29 = arith.addf %26, %28 : vector<32x384xf32>
    %c0_14 = arith.constant 0 : index
    %c0_15 = arith.constant 0 : index
    %30 = vector.load %arg6[%c0_14, %c0_15] : memref<32x384xf32, #tpu.memory_space<vmem>>, vector<32x384xf32>
    tpu.vector_store %arg6[%c0_14, %c0_15], %29 {strides = array<i32>} : memref<32x384xf32, #tpu.memory_space<vmem>>, vector<32x384xf32>,
    return
  }
  func.func @transform_0(%arg0: i32) -> (i32, i32) {
    %c0_i32 = arith.constant 0 : i32
    %c0_i32_0 = arith.constant 0 : i32
    return %arg0, %c0_i32 : i32, i32
  }
  func.func @transform_1(%arg0: i32) -> (i32, i32) {
    %c0_i32 = arith.constant 0 : i32
    %c0_i32_0 = arith.constant 0 : i32
    %c0_i32_1 = arith.constant 0 : i32
    return %c0_i32, %c0_i32_0 : i32, i32
  }
  func.func @transform_2(%arg0: i32) -> (i32, i32) {
    %c0_i32 = arith.constant 0 : i32
    %c0_i32_0 = arith.constant 0 : i32
    %c0_i32_1 = arith.constant 0 : i32
    return %c0_i32, %c0_i32_0 : i32, i32
  }
  func.func @transform_3(%arg0: i32) -> (i32, i32) {
    %c0_i32 = arith.constant 0 : i32
    %c0_i32_0 = arith.constant 0 : i32
    %c0_i32_1 = arith.constant 0 : i32
    return %c0_i32, %c0_i32_0 : i32, i32
  }
  func.func @transform_4(%arg0: i32) -> (i32, i32) {
    %c0_i32 = arith.constant 0 : i32
    %c0_i32_0 = arith.constant 0 : i32
    %c0_i32_1 = arith.constant 0 : i32
    return %c0_i32, %c0_i32_0 : i32, i32
  }
  func.func @transform_5(%arg0: i32) -> (i32, i32) {
    %c0_i32 = arith.constant 0 : i32
    %c0_i32_0 = arith.constant 0 : i32
    return %arg0, %c0_i32 : i32, i32
  }
}

module attributes {stable_mosaic.version = 11 : i64} {
  func.func @nystrom_attention_kernel(%arg0: i32, %arg1: i32, %arg2: memref<8x16xf32, #tpu.memory_space<vmem>>, %arg3: memref<8x8xf32, #tpu.memory_space<vmem>>, %arg4: memref<1x16x128xf32, #tpu.memory_space<vmem>>, %arg5: memref<1x16x128xf32, #tpu.memory_space<vmem>>, %arg6: memref<1x16x128xf32, #tpu.memory_space<vmem>>, %arg7: memref<33x128xf32, #tpu.memory_space<vmem>>, %arg8: memref<1x16x128xf32, #tpu.memory_space<vmem>>, %arg9: memref<48x128xf32, #tpu.memory_space<vmem>>) attributes {dimension_semantics = [#tpu.dimension_semantics<parallel>, #tpu.dimension_semantics<parallel>], iteration_bounds = array<i64: 2, 1>, scalar_prefetch = 0 : i64, scratch_operands = 1 : i64, tpu.core_type = #tpu.core_type<tc>, window_params = [{pipeline_mode = #tpu.pipeline_mode<synchronous>, transform_indices = @transform_0, window_bounds = array<i64: 8, 16>}, {pipeline_mode = #tpu.pipeline_mode<synchronous>, transform_indices = @transform_1, window_bounds = array<i64: 8, 8>}, {transform_indices = @transform_2, window_bounds = array<i64: 1, 16, 128>}, {transform_indices = @transform_3, window_bounds = array<i64: 1, 16, 128>}, {transform_indices = @transform_4, window_bounds = array<i64: 1, 16, 128>}, {transform_indices = @transform_5, window_bounds = array<i64: 33, 128>}, {transform_indices = @transform_6, window_bounds = array<i64: 1, 16, 128>}]} {
    %c0 = arith.constant 0 : index
    %c0_0 = arith.constant 0 : index
    %c0_1 = arith.constant 0 : index
    %0 = vector.load %arg4[%c0, %c0_0, %c0_1] : memref<1x16x128xf32, #tpu.memory_space<vmem>>, vector<1x16x128xf32>
    %1 = vector.shape_cast %0 : vector<1x16x128xf32> to vector<16x128xf32>
    %cst = arith.constant 1.250000e-01 : f32
    %2 = vector.broadcast %cst : f32 to vector<16x128xf32>
    %3 = arith.mulf %1, %2 : vector<16x128xf32>
    %c0_2 = arith.constant 0 : index
    %c0_3 = arith.constant 0 : index
    %c0_4 = arith.constant 0 : index
    %4 = vector.load %arg5[%c0_2, %c0_3, %c0_4] : memref<1x16x128xf32, #tpu.memory_space<vmem>>, vector<1x16x128xf32>
    %5 = vector.shape_cast %4 : vector<1x16x128xf32> to vector<16x128xf32>
    %c0_5 = arith.constant 0 : index
    %c0_6 = arith.constant 0 : index
    %c0_7 = arith.constant 0 : index
    %6 = vector.load %arg6[%c0_5, %c0_6, %c0_7] : memref<1x16x128xf32, #tpu.memory_space<vmem>>, vector<1x16x128xf32>
    %7 = vector.shape_cast %6 : vector<1x16x128xf32> to vector<16x128xf32>
    %c0_8 = arith.constant 0 : index
    %c0_9 = arith.constant 0 : index
    %8 = vector.load %arg2[%c0_8, %c0_9] : memref<8x16xf32, #tpu.memory_space<vmem>>, vector<8x16xf32>
    %c0_10 = arith.constant 0 : index
    %c0_11 = arith.constant 0 : index
    %9 = vector.load %arg3[%c0_10, %c0_11] : memref<8x8xf32, #tpu.memory_space<vmem>>, vector<8x8xf32>
    %cst_12 = arith.constant dense<0.000000e+00> : vector<8x128xf32>
    %10 = tpu.matmul %8, %3, %cst_12 {dimension_numbers = #tpu.dot_dimension_numbers<[1], [0], [0], [1], [0, 0, 1, 1], [], []>} : vector<8x16xf32>, vector<16x128xf32>, vector<8x128xf32> -> vector<8x128xf32>
    %cst_13 = arith.constant dense<0.000000e+00> : vector<8x128xf32>
    %11 = tpu.matmul %8, %5, %cst_13 {dimension_numbers = #tpu.dot_dimension_numbers<[1], [0], [0], [1], [0, 0, 1, 1], [], []>} : vector<8x16xf32>, vector<16x128xf32>, vector<8x128xf32> -> vector<8x128xf32>
    %12 = vector.extract_strided_slice %3 {offsets = [0, 0], sizes = [16, 64], strides = [1, 1]} : vector<16x128xf32> to vector<16x64xf32>
    %13 = vector.extract_strided_slice %5 {offsets = [0, 0], sizes = [16, 64], strides = [1, 1]} : vector<16x128xf32> to vector<16x64xf32>
    %14 = vector.extract_strided_slice %7 {offsets = [0, 0], sizes = [16, 64], strides = [1, 1]} : vector<16x128xf32> to vector<16x64xf32>
    %15 = vector.extract_strided_slice %10 {offsets = [0, 0], sizes = [8, 64], strides = [1, 1]} : vector<8x128xf32> to vector<8x64xf32>
    %16 = vector.extract_strided_slice %11 {offsets = [0, 0], sizes = [8, 64], strides = [1, 1]} : vector<8x128xf32> to vector<8x64xf32>
    %cst_14 = arith.constant dense<0.000000e+00> : vector<16x8xf32>
    %17 = tpu.matmul %12, %16, %cst_14 {dimension_numbers = #tpu.dot_dimension_numbers<[1], [1], [0], [0], [0, 0, 1, 0], [], []>} : vector<16x64xf32>, vector<8x64xf32>, vector<16x8xf32> -> vector<16x8xf32>
    %cst_15 = arith.constant dense<0.000000e+00> : vector<8x8xf32>
    %18 = tpu.matmul %15, %16, %cst_15 {dimension_numbers = #tpu.dot_dimension_numbers<[1], [1], [0], [0], [0, 0, 1, 0], [], []>} : vector<8x64xf32>, vector<8x64xf32>, vector<8x8xf32> -> vector<8x8xf32>
    %cst_16 = arith.constant dense<0.000000e+00> : vector<8x16xf32>
    %19 = tpu.matmul %15, %13, %cst_16 {dimension_numbers = #tpu.dot_dimension_numbers<[1], [1], [0], [0], [0, 0, 1, 0], [], []>} : vector<8x64xf32>, vector<16x64xf32>, vector<8x16xf32> -> vector<8x16xf32>
    %cst_17 = arith.constant dense<0xFF800000> : vector<16xf32>
    %20 = vector.multi_reduction <maximumf>, %17, %cst_17 [1] : vector<16x8xf32> to vector<16xf32>
    %21 = vector.shape_cast %20 : vector<16xf32> to vector<16x1xf32>
    %22 = vector.broadcast %21 : vector<16x1xf32> to vector<16x8xf32>
    %23 = arith.subf %17, %22 : vector<16x8xf32>
    %24 = math.exp %23 : vector<16x8xf32>
    %cst_18 = arith.constant dense<0.000000e+00> : vector<16xf32>
    %25 = vector.multi_reduction <add>, %24, %cst_18 [1] : vector<16x8xf32> to vector<16xf32>
    %26 = vector.shape_cast %25 : vector<16xf32> to vector<16x1xf32>
    %27 = tpu.reciprocal %26 {approx = true} : vector<16x1xf32> -> vector<16x1xf32>
    %28 = vector.broadcast %27 : vector<16x1xf32> to vector<16x8xf32>
    %29 = arith.mulf %24, %28 : vector<16x8xf32>
    %cst_19 = arith.constant dense<0xFF800000> : vector<8xf32>
    %30 = vector.multi_reduction <maximumf>, %18, %cst_19 [1] : vector<8x8xf32> to vector<8xf32>
    %31 = vector.shape_cast %30 : vector<8xf32> to vector<8x1xf32>
    %32 = vector.broadcast %31 : vector<8x1xf32> to vector<8x8xf32>
    %33 = arith.subf %18, %32 : vector<8x8xf32>
    %34 = math.exp %33 : vector<8x8xf32>
    %cst_20 = arith.constant dense<0.000000e+00> : vector<8xf32>
    %35 = vector.multi_reduction <add>, %34, %cst_20 [1] : vector<8x8xf32> to vector<8xf32>
    %36 = vector.shape_cast %35 : vector<8xf32> to vector<8x1xf32>
    %37 = tpu.reciprocal %36 {approx = true} : vector<8x1xf32> -> vector<8x1xf32>
    %38 = vector.broadcast %37 : vector<8x1xf32> to vector<8x8xf32>
    %39 = arith.mulf %34, %38 : vector<8x8xf32>
    %cst_21 = arith.constant dense<0xFF800000> : vector<8xf32>
    %40 = vector.multi_reduction <maximumf>, %19, %cst_21 [1] : vector<8x16xf32> to vector<8xf32>
    %41 = vector.shape_cast %40 : vector<8xf32> to vector<8x1xf32>
    %42 = vector.broadcast %41 : vector<8x1xf32> to vector<8x16xf32>
    %43 = arith.subf %19, %42 : vector<8x16xf32>
    %44 = math.exp %43 : vector<8x16xf32>
    %cst_22 = arith.constant dense<0.000000e+00> : vector<8xf32>
    %45 = vector.multi_reduction <add>, %44, %cst_22 [1] : vector<8x16xf32> to vector<8xf32>
    %46 = vector.shape_cast %45 : vector<8xf32> to vector<8x1xf32>
    %47 = tpu.reciprocal %46 {approx = true} : vector<8x1xf32> -> vector<8x1xf32>
    %48 = vector.broadcast %47 : vector<8x1xf32> to vector<8x16xf32>
    %49 = arith.mulf %44, %48 : vector<8x16xf32>
    %50 = math.absf %39 : vector<8x8xf32>
    %cst_23 = arith.constant dense<0.000000e+00> : vector<8xf32>
    %51 = vector.multi_reduction <add>, %50, %cst_23 [1] : vector<8x8xf32> to vector<8xf32>
    %52 = vector.shape_cast %51 : vector<8xf32> to vector<8x1xf32>
    %cst_24 = arith.constant dense<0xFF800000> : vector<1xf32>
    %53 = vector.multi_reduction <maximumf>, %52, %cst_24 [0] : vector<8x1xf32> to vector<1xf32>
    %54 = vector.shape_cast %53 : vector<1xf32> to vector<1x1xf32>
    %cst_25 = arith.constant dense<0.000000e+00> : vector<8xf32>
    %55 = vector.multi_reduction <add>, %50, %cst_25 [0] : vector<8x8xf32> to vector<8xf32>
    %56 = vector.shape_cast %55 : vector<8xf32> to vector<1x8xf32>
    %cst_26 = arith.constant dense<0xFF800000> : vector<1xf32>
    %57 = vector.multi_reduction <maximumf>, %56, %cst_26 [1] : vector<1x8xf32> to vector<1xf32>
    %58 = vector.shape_cast %57 : vector<1xf32> to vector<1x1xf32>
    %59 = tpu.transpose %39, [1, 0] : vector<8x8xf32> -> vector<8x8xf32>
    %60 = arith.mulf %54, %58 : vector<1x1xf32>
    %61 = vector.broadcast %60 : vector<1x1xf32> to vector<8x8xf32>
    %62 = arith.divf %59, %61 : vector<8x8xf32>
    %cst_27 = arith.constant dense<0.000000e+00> : vector<8x8xf32>
    %63 = tpu.matmul %39, %62, %cst_27 {dimension_numbers = #tpu.dot_dimension_numbers<[1], [0], [0], [1], [0, 0, 1, 1], [], []>} : vector<8x8xf32>, vector<8x8xf32>, vector<8x8xf32> -> vector<8x8xf32>
    %cst_28 = arith.constant 7.000000e+00 : f32
    %64 = vector.broadcast %cst_28 : f32 to vector<8x8xf32>
    %65 = arith.mulf %64, %9 : vector<8x8xf32>
    %66 = arith.subf %65, %63 : vector<8x8xf32>
    %cst_29 = arith.constant 1.500000e+01 : f32
    %67 = vector.broadcast %cst_29 : f32 to vector<8x8xf32>
    %68 = arith.mulf %67, %9 : vector<8x8xf32>
    %cst_30 = arith.constant dense<0.000000e+00> : vector<8x8xf32>
    %69 = tpu.matmul %63, %66, %cst_30 {dimension_numbers = #tpu.dot_dimension_numbers<[1], [0], [0], [1], [0, 0, 1, 1], [], []>} : vector<8x8xf32>, vector<8x8xf32>, vector<8x8xf32> -> vector<8x8xf32>
    %70 = arith.subf %68, %69 : vector<8x8xf32>
    %cst_31 = arith.constant 1.300000e+01 : f32
    %71 = vector.broadcast %cst_31 : f32 to vector<8x8xf32>
    %72 = arith.mulf %71, %9 : vector<8x8xf32>
    %cst_32 = arith.constant dense<0.000000e+00> : vector<8x8xf32>
    %73 = tpu.matmul %63, %70, %cst_32 {dimension_numbers = #tpu.dot_dimension_numbers<[1], [0], [0], [1], [0, 0, 1, 1], [], []>} : vector<8x8xf32>, vector<8x8xf32>, vector<8x8xf32> -> vector<8x8xf32>
    %74 = arith.subf %72, %73 : vector<8x8xf32>
    %cst_33 = arith.constant dense<0.000000e+00> : vector<8x8xf32>
    %75 = tpu.matmul %62, %74, %cst_33 {dimension_numbers = #tpu.dot_dimension_numbers<[1], [0], [0], [1], [0, 0, 1, 1], [], []>} : vector<8x8xf32>, vector<8x8xf32>, vector<8x8xf32> -> vector<8x8xf32>
    %cst_34 = arith.constant 2.500000e-01 : f32
    %76 = vector.broadcast %cst_34 : f32 to vector<8x8xf32>
    %77 = arith.mulf %76, %75 : vector<8x8xf32>
    %cst_35 = arith.constant dense<0.000000e+00> : vector<8x8xf32>
    %78 = tpu.matmul %39, %77, %cst_35 {dimension_numbers = #tpu.dot_dimension_numbers<[1], [0], [0], [1], [0, 0, 1, 1], [], []>} : vector<8x8xf32>, vector<8x8xf32>, vector<8x8xf32> -> vector<8x8xf32>
    %cst_36 = arith.constant 7.000000e+00 : f32
    %79 = vector.broadcast %cst_36 : f32 to vector<8x8xf32>
    %80 = arith.mulf %79, %9 : vector<8x8xf32>
    %81 = arith.subf %80, %78 : vector<8x8xf32>
    %cst_37 = arith.constant 1.500000e+01 : f32
    %82 = vector.broadcast %cst_37 : f32 to vector<8x8xf32>
    %83 = arith.mulf %82, %9 : vector<8x8xf32>
    %cst_38 = arith.constant dense<0.000000e+00> : vector<8x8xf32>
    %84 = tpu.matmul %78, %81, %cst_38 {dimension_numbers = #tpu.dot_dimension_numbers<[1], [0], [0], [1], [0, 0, 1, 1], [], []>} : vector<8x8xf32>, vector<8x8xf32>, vector<8x8xf32> -> vector<8x8xf32>
    %85 = arith.subf %83, %84 : vector<8x8xf32>
    %cst_39 = arith.constant 1.300000e+01 : f32
    %86 = vector.broadcast %cst_39 : f32 to vector<8x8xf32>
    %87 = arith.mulf %86, %9 : vector<8x8xf32>
    %cst_40 = arith.constant dense<0.000000e+00> : vector<8x8xf32>
    %88 = tpu.matmul %78, %85, %cst_40 {dimension_numbers = #tpu.dot_dimension_numbers<[1], [0], [0], [1], [0, 0, 1, 1], [], []>} : vector<8x8xf32>, vector<8x8xf32>, vector<8x8xf32> -> vector<8x8xf32>
    %89 = arith.subf %87, %88 : vector<8x8xf32>
    %cst_41 = arith.constant dense<0.000000e+00> : vector<8x8xf32>
    %90 = tpu.matmul %77, %89, %cst_41 {dimension_numbers = #tpu.dot_dimension_numbers<[1], [0], [0], [1], [0, 0, 1, 1], [], []>} : vector<8x8xf32>, vector<8x8xf32>, vector<8x8xf32> -> vector<8x8xf32>
    %cst_42 = arith.constant 2.500000e-01 : f32
    %91 = vector.broadcast %cst_42 : f32 to vector<8x8xf32>
    %92 = arith.mulf %91, %90 : vector<8x8xf32>
    %cst_43 = arith.constant dense<0.000000e+00> : vector<8x8xf32>
    %93 = tpu.matmul %39, %92, %cst_43 {dimension_numbers = #tpu.dot_dimension_numbers<[1], [0], [0], [1], [0, 0, 1, 1], [], []>} : vector<8x8xf32>, vector<8x8xf32>, vector<8x8xf32> -> vector<8x8xf32>
    %cst_44 = arith.constant 7.000000e+00 : f32
    %94 = vector.broadcast %cst_44 : f32 to vector<8x8xf32>
    %95 = arith.mulf %94, %9 : vector<8x8xf32>
    %96 = arith.subf %95, %93 : vector<8x8xf32>
    %cst_45 = arith.constant 1.500000e+01 : f32
    %97 = vector.broadcast %cst_45 : f32 to vector<8x8xf32>
    %98 = arith.mulf %97, %9 : vector<8x8xf32>
    %cst_46 = arith.constant dense<0.000000e+00> : vector<8x8xf32>
    %99 = tpu.matmul %93, %96, %cst_46 {dimension_numbers = #tpu.dot_dimension_numbers<[1], [0], [0], [1], [0, 0, 1, 1], [], []>} : vector<8x8xf32>, vector<8x8xf32>, vector<8x8xf32> -> vector<8x8xf32>
    %100 = arith.subf %98, %99 : vector<8x8xf32>
    %cst_47 = arith.constant 1.300000e+01 : f32
    %101 = vector.broadcast %cst_47 : f32 to vector<8x8xf32>
    %102 = arith.mulf %101, %9 : vector<8x8xf32>
    %cst_48 = arith.constant dense<0.000000e+00> : vector<8x8xf32>
    %103 = tpu.matmul %93, %100, %cst_48 {dimension_numbers = #tpu.dot_dimension_numbers<[1], [0], [0], [1], [0, 0, 1, 1], [], []>} : vector<8x8xf32>, vector<8x8xf32>, vector<8x8xf32> -> vector<8x8xf32>
    %104 = arith.subf %102, %103 : vector<8x8xf32>
    %cst_49 = arith.constant dense<0.000000e+00> : vector<8x8xf32>
    %105 = tpu.matmul %92, %104, %cst_49 {dimension_numbers = #tpu.dot_dimension_numbers<[1], [0], [0], [1], [0, 0, 1, 1], [], []>} : vector<8x8xf32>, vector<8x8xf32>, vector<8x8xf32> -> vector<8x8xf32>
    %cst_50 = arith.constant 2.500000e-01 : f32
    %106 = vector.broadcast %cst_50 : f32 to vector<8x8xf32>
    %107 = arith.mulf %106, %105 : vector<8x8xf32>
    %cst_51 = arith.constant dense<0.000000e+00> : vector<8x8xf32>
    %108 = tpu.matmul %39, %107, %cst_51 {dimension_numbers = #tpu.dot_dimension_numbers<[1], [0], [0], [1], [0, 0, 1, 1], [], []>} : vector<8x8xf32>, vector<8x8xf32>, vector<8x8xf32> -> vector<8x8xf32>
    %cst_52 = arith.constant 7.000000e+00 : f32
    %109 = vector.broadcast %cst_52 : f32 to vector<8x8xf32>
    %110 = arith.mulf %109, %9 : vector<8x8xf32>
    %111 = arith.subf %110, %108 : vector<8x8xf32>
    %cst_53 = arith.constant 1.500000e+01 : f32
    %112 = vector.broadcast %cst_53 : f32 to vector<8x8xf32>
    %113 = arith.mulf %112, %9 : vector<8x8xf32>
    %cst_54 = arith.constant dense<0.000000e+00> : vector<8x8xf32>
    %114 = tpu.matmul %108, %111, %cst_54 {dimension_numbers = #tpu.dot_dimension_numbers<[1], [0], [0], [1], [0, 0, 1, 1], [], []>} : vector<8x8xf32>, vector<8x8xf32>, vector<8x8xf32> -> vector<8x8xf32>
    %115 = arith.subf %113, %114 : vector<8x8xf32>
    %cst_55 = arith.constant 1.300000e+01 : f32
    %116 = vector.broadcast %cst_55 : f32 to vector<8x8xf32>
    %117 = arith.mulf %116, %9 : vector<8x8xf32>
    %cst_56 = arith.constant dense<0.000000e+00> : vector<8x8xf32>
    %118 = tpu.matmul %108, %115, %cst_56 {dimension_numbers = #tpu.dot_dimension_numbers<[1], [0], [0], [1], [0, 0, 1, 1], [], []>} : vector<8x8xf32>, vector<8x8xf32>, vector<8x8xf32> -> vector<8x8xf32>
    %119 = arith.subf %117, %118 : vector<8x8xf32>
    %cst_57 = arith.constant dense<0.000000e+00> : vector<8x8xf32>
    %120 = tpu.matmul %107, %119, %cst_57 {dimension_numbers = #tpu.dot_dimension_numbers<[1], [0], [0], [1], [0, 0, 1, 1], [], []>} : vector<8x8xf32>, vector<8x8xf32>, vector<8x8xf32> -> vector<8x8xf32>
    %cst_58 = arith.constant 2.500000e-01 : f32
    %121 = vector.broadcast %cst_58 : f32 to vector<8x8xf32>
    %122 = arith.mulf %121, %120 : vector<8x8xf32>
    %cst_59 = arith.constant dense<0.000000e+00> : vector<8x8xf32>
    %123 = tpu.matmul %39, %122, %cst_59 {dimension_numbers = #tpu.dot_dimension_numbers<[1], [0], [0], [1], [0, 0, 1, 1], [], []>} : vector<8x8xf32>, vector<8x8xf32>, vector<8x8xf32> -> vector<8x8xf32>
    %cst_60 = arith.constant 7.000000e+00 : f32
    %124 = vector.broadcast %cst_60 : f32 to vector<8x8xf32>
    %125 = arith.mulf %124, %9 : vector<8x8xf32>
    %126 = arith.subf %125, %123 : vector<8x8xf32>
    %cst_61 = arith.constant 1.500000e+01 : f32
    %127 = vector.broadcast %cst_61 : f32 to vector<8x8xf32>
    %128 = arith.mulf %127, %9 : vector<8x8xf32>
    %cst_62 = arith.constant dense<0.000000e+00> : vector<8x8xf32>
    %129 = tpu.matmul %123, %126, %cst_62 {dimension_numbers = #tpu.dot_dimension_numbers<[1], [0], [0], [1], [0, 0, 1, 1], [], []>} : vector<8x8xf32>, vector<8x8xf32>, vector<8x8xf32> -> vector<8x8xf32>
    %130 = arith.subf %128, %129 : vector<8x8xf32>
    %cst_63 = arith.constant 1.300000e+01 : f32
    %131 = vector.broadcast %cst_63 : f32 to vector<8x8xf32>
    %132 = arith.mulf %131, %9 : vector<8x8xf32>
    %cst_64 = arith.constant dense<0.000000e+00> : vector<8x8xf32>
    %133 = tpu.matmul %123, %130, %cst_64 {dimension_numbers = #tpu.dot_dimension_numbers<[1], [0], [0], [1], [0, 0, 1, 1], [], []>} : vector<8x8xf32>, vector<8x8xf32>, vector<8x8xf32> -> vector<8x8xf32>
    %134 = arith.subf %132, %133 : vector<8x8xf32>
    %cst_65 = arith.constant dense<0.000000e+00> : vector<8x8xf32>
    %135 = tpu.matmul %122, %134, %cst_65 {dimension_numbers = #tpu.dot_dimension_numbers<[1], [0], [0], [1], [0, 0, 1, 1], [], []>} : vector<8x8xf32>, vector<8x8xf32>, vector<8x8xf32> -> vector<8x8xf32>
    %cst_66 = arith.constant 2.500000e-01 : f32
    %136 = vector.broadcast %cst_66 : f32 to vector<8x8xf32>
    %137 = arith.mulf %136, %135 : vector<8x8xf32>
    %cst_67 = arith.constant dense<0.000000e+00> : vector<8x8xf32>
    %138 = tpu.matmul %39, %137, %cst_67 {dimension_numbers = #tpu.dot_dimension_numbers<[1], [0], [0], [1], [0, 0, 1, 1], [], []>} : vector<8x8xf32>, vector<8x8xf32>, vector<8x8xf32> -> vector<8x8xf32>
    %cst_68 = arith.constant 7.000000e+00 : f32
    %139 = vector.broadcast %cst_68 : f32 to vector<8x8xf32>
    %140 = arith.mulf %139, %9 : vector<8x8xf32>
    %141 = arith.subf %140, %138 : vector<8x8xf32>
    %cst_69 = arith.constant 1.500000e+01 : f32
    %142 = vector.broadcast %cst_69 : f32 to vector<8x8xf32>
    %143 = arith.mulf %142, %9 : vector<8x8xf32>
    %cst_70 = arith.constant dense<0.000000e+00> : vector<8x8xf32>
    %144 = tpu.matmul %138, %141, %cst_70 {dimension_numbers = #tpu.dot_dimension_numbers<[1], [0], [0], [1], [0, 0, 1, 1], [], []>} : vector<8x8xf32>, vector<8x8xf32>, vector<8x8xf32> -> vector<8x8xf32>
    %145 = arith.subf %143, %144 : vector<8x8xf32>
    %cst_71 = arith.constant 1.300000e+01 : f32
    %146 = vector.broadcast %cst_71 : f32 to vector<8x8xf32>
    %147 = arith.mulf %146, %9 : vector<8x8xf32>
    %cst_72 = arith.constant dense<0.000000e+00> : vector<8x8xf32>
    %148 = tpu.matmul %138, %145, %cst_72 {dimension_numbers = #tpu.dot_dimension_numbers<[1], [0], [0], [1], [0, 0, 1, 1], [], []>} : vector<8x8xf32>, vector<8x8xf32>, vector<8x8xf32> -> vector<8x8xf32>
    %149 = arith.subf %147, %148 : vector<8x8xf32>
    %cst_73 = arith.constant dense<0.000000e+00> : vector<8x8xf32>
    %150 = tpu.matmul %137, %149, %cst_73 {dimension_numbers = #tpu.dot_dimension_numbers<[1], [0], [0], [1], [0, 0, 1, 1], [], []>} : vector<8x8xf32>, vector<8x8xf32>, vector<8x8xf32> -> vector<8x8xf32>
    %cst_74 = arith.constant 2.500000e-01 : f32
    %151 = vector.broadcast %cst_74 : f32 to vector<8x8xf32>
    %152 = arith.mulf %151, %150 : vector<8x8xf32>
    %cst_75 = arith.constant dense<0.000000e+00> : vector<8x64xf32>
    %153 = tpu.matmul %49, %14, %cst_75 {dimension_numbers = #tpu.dot_dimension_numbers<[1], [0], [0], [1], [0, 0, 1, 1], [], []>} : vector<8x16xf32>, vector<16x64xf32>, vector<8x64xf32> -> vector<8x64xf32>
    %cst_76 = arith.constant dense<0.000000e+00> : vector<8x64xf32>
    %154 = tpu.matmul %152, %153, %cst_76 {dimension_numbers = #tpu.dot_dimension_numbers<[1], [0], [0], [1], [0, 0, 1, 1], [], []>} : vector<8x8xf32>, vector<8x64xf32>, vector<8x64xf32> -> vector<8x64xf32>
    %cst_77 = arith.constant dense<0.000000e+00> : vector<16x64xf32>
    %155 = tpu.matmul %29, %154, %cst_77 {dimension_numbers = #tpu.dot_dimension_numbers<[1], [0], [0], [1], [0, 0, 1, 1], [], []>} : vector<16x8xf32>, vector<8x64xf32>, vector<16x64xf32> -> vector<16x64xf32>
    %156 = vector.extract_strided_slice %3 {offsets = [0, 64], sizes = [16, 64], strides = [1, 1]} : vector<16x128xf32> to vector<16x64xf32>
    %157 = vector.extract_strided_slice %5 {offsets = [0, 64], sizes = [16, 64], strides = [1, 1]} : vector<16x128xf32> to vector<16x64xf32>
    %158 = vector.extract_strided_slice %7 {offsets = [0, 64], sizes = [16, 64], strides = [1, 1]} : vector<16x128xf32> to vector<16x64xf32>
    %159 = vector.extract_strided_slice %10 {offsets = [0, 64], sizes = [8, 64], strides = [1, 1]} : vector<8x128xf32> to vector<8x64xf32>
    %160 = vector.extract_strided_slice %11 {offsets = [0, 64], sizes = [8, 64], strides = [1, 1]} : vector<8x128xf32> to vector<8x64xf32>
    %cst_78 = arith.constant dense<0.000000e+00> : vector<16x8xf32>
    %161 = tpu.matmul %156, %160, %cst_78 {dimension_numbers = #tpu.dot_dimension_numbers<[1], [1], [0], [0], [0, 0, 1, 0], [], []>} : vector<16x64xf32>, vector<8x64xf32>, vector<16x8xf32> -> vector<16x8xf32>
    %cst_79 = arith.constant dense<0.000000e+00> : vector<8x8xf32>
    %162 = tpu.matmul %159, %160, %cst_79 {dimension_numbers = #tpu.dot_dimension_numbers<[1], [1], [0], [0], [0, 0, 1, 0], [], []>} : vector<8x64xf32>, vector<8x64xf32>, vector<8x8xf32> -> vector<8x8xf32>
    %cst_80 = arith.constant dense<0.000000e+00> : vector<8x16xf32>
    %163 = tpu.matmul %159, %157, %cst_80 {dimension_numbers = #tpu.dot_dimension_numbers<[1], [1], [0], [0], [0, 0, 1, 0], [], []>} : vector<8x64xf32>, vector<16x64xf32>, vector<8x16xf32> -> vector<8x16xf32>
    %cst_81 = arith.constant dense<0xFF800000> : vector<16xf32>
    %164 = vector.multi_reduction <maximumf>, %161, %cst_81 [1] : vector<16x8xf32> to vector<16xf32>
    %165 = vector.shape_cast %164 : vector<16xf32> to vector<16x1xf32>
    %166 = vector.broadcast %165 : vector<16x1xf32> to vector<16x8xf32>
    %167 = arith.subf %161, %166 : vector<16x8xf32>
    %168 = math.exp %167 : vector<16x8xf32>
    %cst_82 = arith.constant dense<0.000000e+00> : vector<16xf32>
    %169 = vector.multi_reduction <add>, %168, %cst_82 [1] : vector<16x8xf32> to vector<16xf32>
    %170 = vector.shape_cast %169 : vector<16xf32> to vector<16x1xf32>
    %171 = tpu.reciprocal %170 {approx = true} : vector<16x1xf32> -> vector<16x1xf32>
    %172 = vector.broadcast %171 : vector<16x1xf32> to vector<16x8xf32>
    %173 = arith.mulf %168, %172 : vector<16x8xf32>
    %cst_83 = arith.constant dense<0xFF800000> : vector<8xf32>
    %174 = vector.multi_reduction <maximumf>, %162, %cst_83 [1] : vector<8x8xf32> to vector<8xf32>
    %175 = vector.shape_cast %174 : vector<8xf32> to vector<8x1xf32>
    %176 = vector.broadcast %175 : vector<8x1xf32> to vector<8x8xf32>
    %177 = arith.subf %162, %176 : vector<8x8xf32>
    %178 = math.exp %177 : vector<8x8xf32>
    %cst_84 = arith.constant dense<0.000000e+00> : vector<8xf32>
    %179 = vector.multi_reduction <add>, %178, %cst_84 [1] : vector<8x8xf32> to vector<8xf32>
    %180 = vector.shape_cast %179 : vector<8xf32> to vector<8x1xf32>
    %181 = tpu.reciprocal %180 {approx = true} : vector<8x1xf32> -> vector<8x1xf32>
    %182 = vector.broadcast %181 : vector<8x1xf32> to vector<8x8xf32>
    %183 = arith.mulf %178, %182 : vector<8x8xf32>
    %cst_85 = arith.constant dense<0xFF800000> : vector<8xf32>
    %184 = vector.multi_reduction <maximumf>, %163, %cst_85 [1] : vector<8x16xf32> to vector<8xf32>
    %185 = vector.shape_cast %184 : vector<8xf32> to vector<8x1xf32>
    %186 = vector.broadcast %185 : vector<8x1xf32> to vector<8x16xf32>
    %187 = arith.subf %163, %186 : vector<8x16xf32>
    %188 = math.exp %187 : vector<8x16xf32>
    %cst_86 = arith.constant dense<0.000000e+00> : vector<8xf32>
    %189 = vector.multi_reduction <add>, %188, %cst_86 [1] : vector<8x16xf32> to vector<8xf32>
    %190 = vector.shape_cast %189 : vector<8xf32> to vector<8x1xf32>
    %191 = tpu.reciprocal %190 {approx = true} : vector<8x1xf32> -> vector<8x1xf32>
    %192 = vector.broadcast %191 : vector<8x1xf32> to vector<8x16xf32>
    %193 = arith.mulf %188, %192 : vector<8x16xf32>
    %194 = math.absf %183 : vector<8x8xf32>
    %cst_87 = arith.constant dense<0.000000e+00> : vector<8xf32>
    %195 = vector.multi_reduction <add>, %194, %cst_87 [1] : vector<8x8xf32> to vector<8xf32>
    %196 = vector.shape_cast %195 : vector<8xf32> to vector<8x1xf32>
    %cst_88 = arith.constant dense<0xFF800000> : vector<1xf32>
    %197 = vector.multi_reduction <maximumf>, %196, %cst_88 [0] : vector<8x1xf32> to vector<1xf32>
    %198 = vector.shape_cast %197 : vector<1xf32> to vector<1x1xf32>
    %cst_89 = arith.constant dense<0.000000e+00> : vector<8xf32>
    %199 = vector.multi_reduction <add>, %194, %cst_89 [0] : vector<8x8xf32> to vector<8xf32>
    %200 = vector.shape_cast %199 : vector<8xf32> to vector<1x8xf32>
    %cst_90 = arith.constant dense<0xFF800000> : vector<1xf32>
    %201 = vector.multi_reduction <maximumf>, %200, %cst_90 [1] : vector<1x8xf32> to vector<1xf32>
    %202 = vector.shape_cast %201 : vector<1xf32> to vector<1x1xf32>
    %203 = tpu.transpose %183, [1, 0] : vector<8x8xf32> -> vector<8x8xf32>
    %204 = arith.mulf %198, %202 : vector<1x1xf32>
    %205 = vector.broadcast %204 : vector<1x1xf32> to vector<8x8xf32>
    %206 = arith.divf %203, %205 : vector<8x8xf32>
    %cst_91 = arith.constant dense<0.000000e+00> : vector<8x8xf32>
    %207 = tpu.matmul %183, %206, %cst_91 {dimension_numbers = #tpu.dot_dimension_numbers<[1], [0], [0], [1], [0, 0, 1, 1], [], []>} : vector<8x8xf32>, vector<8x8xf32>, vector<8x8xf32> -> vector<8x8xf32>
    %cst_92 = arith.constant 7.000000e+00 : f32
    %208 = vector.broadcast %cst_92 : f32 to vector<8x8xf32>
    %209 = arith.mulf %208, %9 : vector<8x8xf32>
    %210 = arith.subf %209, %207 : vector<8x8xf32>
    %cst_93 = arith.constant 1.500000e+01 : f32
    %211 = vector.broadcast %cst_93 : f32 to vector<8x8xf32>
    %212 = arith.mulf %211, %9 : vector<8x8xf32>
    %cst_94 = arith.constant dense<0.000000e+00> : vector<8x8xf32>
    %213 = tpu.matmul %207, %210, %cst_94 {dimension_numbers = #tpu.dot_dimension_numbers<[1], [0], [0], [1], [0, 0, 1, 1], [], []>} : vector<8x8xf32>, vector<8x8xf32>, vector<8x8xf32> -> vector<8x8xf32>
    %214 = arith.subf %212, %213 : vector<8x8xf32>
    %cst_95 = arith.constant 1.300000e+01 : f32
    %215 = vector.broadcast %cst_95 : f32 to vector<8x8xf32>
    %216 = arith.mulf %215, %9 : vector<8x8xf32>
    %cst_96 = arith.constant dense<0.000000e+00> : vector<8x8xf32>
    %217 = tpu.matmul %207, %214, %cst_96 {dimension_numbers = #tpu.dot_dimension_numbers<[1], [0], [0], [1], [0, 0, 1, 1], [], []>} : vector<8x8xf32>, vector<8x8xf32>, vector<8x8xf32> -> vector<8x8xf32>
    %218 = arith.subf %216, %217 : vector<8x8xf32>
    %cst_97 = arith.constant dense<0.000000e+00> : vector<8x8xf32>
    %219 = tpu.matmul %206, %218, %cst_97 {dimension_numbers = #tpu.dot_dimension_numbers<[1], [0], [0], [1], [0, 0, 1, 1], [], []>} : vector<8x8xf32>, vector<8x8xf32>, vector<8x8xf32> -> vector<8x8xf32>
    %cst_98 = arith.constant 2.500000e-01 : f32
    %220 = vector.broadcast %cst_98 : f32 to vector<8x8xf32>
    %221 = arith.mulf %220, %219 : vector<8x8xf32>
    %cst_99 = arith.constant dense<0.000000e+00> : vector<8x8xf32>
    %222 = tpu.matmul %183, %221, %cst_99 {dimension_numbers = #tpu.dot_dimension_numbers<[1], [0], [0], [1], [0, 0, 1, 1], [], []>} : vector<8x8xf32>, vector<8x8xf32>, vector<8x8xf32> -> vector<8x8xf32>
    %cst_100 = arith.constant 7.000000e+00 : f32
    %223 = vector.broadcast %cst_100 : f32 to vector<8x8xf32>
    %224 = arith.mulf %223, %9 : vector<8x8xf32>
    %225 = arith.subf %224, %222 : vector<8x8xf32>
    %cst_101 = arith.constant 1.500000e+01 : f32
    %226 = vector.broadcast %cst_101 : f32 to vector<8x8xf32>
    %227 = arith.mulf %226, %9 : vector<8x8xf32>
    %cst_102 = arith.constant dense<0.000000e+00> : vector<8x8xf32>
    %228 = tpu.matmul %222, %225, %cst_102 {dimension_numbers = #tpu.dot_dimension_numbers<[1], [0], [0], [1], [0, 0, 1, 1], [], []>} : vector<8x8xf32>, vector<8x8xf32>, vector<8x8xf32> -> vector<8x8xf32>
    %229 = arith.subf %227, %228 : vector<8x8xf32>
    %cst_103 = arith.constant 1.300000e+01 : f32
    %230 = vector.broadcast %cst_103 : f32 to vector<8x8xf32>
    %231 = arith.mulf %230, %9 : vector<8x8xf32>
    %cst_104 = arith.constant dense<0.000000e+00> : vector<8x8xf32>
    %232 = tpu.matmul %222, %229, %cst_104 {dimension_numbers = #tpu.dot_dimension_numbers<[1], [0], [0], [1], [0, 0, 1, 1], [], []>} : vector<8x8xf32>, vector<8x8xf32>, vector<8x8xf32> -> vector<8x8xf32>
    %233 = arith.subf %231, %232 : vector<8x8xf32>
    %cst_105 = arith.constant dense<0.000000e+00> : vector<8x8xf32>
    %234 = tpu.matmul %221, %233, %cst_105 {dimension_numbers = #tpu.dot_dimension_numbers<[1], [0], [0], [1], [0, 0, 1, 1], [], []>} : vector<8x8xf32>, vector<8x8xf32>, vector<8x8xf32> -> vector<8x8xf32>
    %cst_106 = arith.constant 2.500000e-01 : f32
    %235 = vector.broadcast %cst_106 : f32 to vector<8x8xf32>
    %236 = arith.mulf %235, %234 : vector<8x8xf32>
    %cst_107 = arith.constant dense<0.000000e+00> : vector<8x8xf32>
    %237 = tpu.matmul %183, %236, %cst_107 {dimension_numbers = #tpu.dot_dimension_numbers<[1], [0], [0], [1], [0, 0, 1, 1], [], []>} : vector<8x8xf32>, vector<8x8xf32>, vector<8x8xf32> -> vector<8x8xf32>
    %cst_108 = arith.constant 7.000000e+00 : f32
    %238 = vector.broadcast %cst_108 : f32 to vector<8x8xf32>
    %239 = arith.mulf %238, %9 : vector<8x8xf32>
    %240 = arith.subf %239, %237 : vector<8x8xf32>
    %cst_109 = arith.constant 1.500000e+01 : f32
    %241 = vector.broadcast %cst_109 : f32 to vector<8x8xf32>
    %242 = arith.mulf %241, %9 : vector<8x8xf32>
    %cst_110 = arith.constant dense<0.000000e+00> : vector<8x8xf32>
    %243 = tpu.matmul %237, %240, %cst_110 {dimension_numbers = #tpu.dot_dimension_numbers<[1], [0], [0], [1], [0, 0, 1, 1], [], []>} : vector<8x8xf32>, vector<8x8xf32>, vector<8x8xf32> -> vector<8x8xf32>
    %244 = arith.subf %242, %243 : vector<8x8xf32>
    %cst_111 = arith.constant 1.300000e+01 : f32
    %245 = vector.broadcast %cst_111 : f32 to vector<8x8xf32>
    %246 = arith.mulf %245, %9 : vector<8x8xf32>
    %cst_112 = arith.constant dense<0.000000e+00> : vector<8x8xf32>
    %247 = tpu.matmul %237, %244, %cst_112 {dimension_numbers = #tpu.dot_dimension_numbers<[1], [0], [0], [1], [0, 0, 1, 1], [], []>} : vector<8x8xf32>, vector<8x8xf32>, vector<8x8xf32> -> vector<8x8xf32>
    %248 = arith.subf %246, %247 : vector<8x8xf32>
    %cst_113 = arith.constant dense<0.000000e+00> : vector<8x8xf32>
    %249 = tpu.matmul %236, %248, %cst_113 {dimension_numbers = #tpu.dot_dimension_numbers<[1], [0], [0], [1], [0, 0, 1, 1], [], []>} : vector<8x8xf32>, vector<8x8xf32>, vector<8x8xf32> -> vector<8x8xf32>
    %cst_114 = arith.constant 2.500000e-01 : f32
    %250 = vector.broadcast %cst_114 : f32 to vector<8x8xf32>
    %251 = arith.mulf %250, %249 : vector<8x8xf32>
    %cst_115 = arith.constant dense<0.000000e+00> : vector<8x8xf32>
    %252 = tpu.matmul %183, %251, %cst_115 {dimension_numbers = #tpu.dot_dimension_numbers<[1], [0], [0], [1], [0, 0, 1, 1], [], []>} : vector<8x8xf32>, vector<8x8xf32>, vector<8x8xf32> -> vector<8x8xf32>
    %cst_116 = arith.constant 7.000000e+00 : f32
    %253 = vector.broadcast %cst_116 : f32 to vector<8x8xf32>
    %254 = arith.mulf %253, %9 : vector<8x8xf32>
    %255 = arith.subf %254, %252 : vector<8x8xf32>
    %cst_117 = arith.constant 1.500000e+01 : f32
    %256 = vector.broadcast %cst_117 : f32 to vector<8x8xf32>
    %257 = arith.mulf %256, %9 : vector<8x8xf32>
    %cst_118 = arith.constant dense<0.000000e+00> : vector<8x8xf32>
    %258 = tpu.matmul %252, %255, %cst_118 {dimension_numbers = #tpu.dot_dimension_numbers<[1], [0], [0], [1], [0, 0, 1, 1], [], []>} : vector<8x8xf32>, vector<8x8xf32>, vector<8x8xf32> -> vector<8x8xf32>
    %259 = arith.subf %257, %258 : vector<8x8xf32>
    %cst_119 = arith.constant 1.300000e+01 : f32
    %260 = vector.broadcast %cst_119 : f32 to vector<8x8xf32>
    %261 = arith.mulf %260, %9 : vector<8x8xf32>
    %cst_120 = arith.constant dense<0.000000e+00> : vector<8x8xf32>
    %262 = tpu.matmul %252, %259, %cst_120 {dimension_numbers = #tpu.dot_dimension_numbers<[1], [0], [0], [1], [0, 0, 1, 1], [], []>} : vector<8x8xf32>, vector<8x8xf32>, vector<8x8xf32> -> vector<8x8xf32>
    %263 = arith.subf %261, %262 : vector<8x8xf32>
    %cst_121 = arith.constant dense<0.000000e+00> : vector<8x8xf32>
    %264 = tpu.matmul %251, %263, %cst_121 {dimension_numbers = #tpu.dot_dimension_numbers<[1], [0], [0], [1], [0, 0, 1, 1], [], []>} : vector<8x8xf32>, vector<8x8xf32>, vector<8x8xf32> -> vector<8x8xf32>
    %cst_122 = arith.constant 2.500000e-01 : f32
    %265 = vector.broadcast %cst_122 : f32 to vector<8x8xf32>
    %266 = arith.mulf %265, %264 : vector<8x8xf32>
    %cst_123 = arith.constant dense<0.000000e+00> : vector<8x8xf32>
    %267 = tpu.matmul %183, %266, %cst_123 {dimension_numbers = #tpu.dot_dimension_numbers<[1], [0], [0], [1], [0, 0, 1, 1], [], []>} : vector<8x8xf32>, vector<8x8xf32>, vector<8x8xf32> -> vector<8x8xf32>
    %cst_124 = arith.constant 7.000000e+00 : f32
    %268 = vector.broadcast %cst_124 : f32 to vector<8x8xf32>
    %269 = arith.mulf %268, %9 : vector<8x8xf32>
    %270 = arith.subf %269, %267 : vector<8x8xf32>
    %cst_125 = arith.constant 1.500000e+01 : f32
    %271 = vector.broadcast %cst_125 : f32 to vector<8x8xf32>
    %272 = arith.mulf %271, %9 : vector<8x8xf32>
    %cst_126 = arith.constant dense<0.000000e+00> : vector<8x8xf32>
    %273 = tpu.matmul %267, %270, %cst_126 {dimension_numbers = #tpu.dot_dimension_numbers<[1], [0], [0], [1], [0, 0, 1, 1], [], []>} : vector<8x8xf32>, vector<8x8xf32>, vector<8x8xf32> -> vector<8x8xf32>
    %274 = arith.subf %272, %273 : vector<8x8xf32>
    %cst_127 = arith.constant 1.300000e+01 : f32
    %275 = vector.broadcast %cst_127 : f32 to vector<8x8xf32>
    %276 = arith.mulf %275, %9 : vector<8x8xf32>
    %cst_128 = arith.constant dense<0.000000e+00> : vector<8x8xf32>
    %277 = tpu.matmul %267, %274, %cst_128 {dimension_numbers = #tpu.dot_dimension_numbers<[1], [0], [0], [1], [0, 0, 1, 1], [], []>} : vector<8x8xf32>, vector<8x8xf32>, vector<8x8xf32> -> vector<8x8xf32>
    %278 = arith.subf %276, %277 : vector<8x8xf32>
    %cst_129 = arith.constant dense<0.000000e+00> : vector<8x8xf32>
    %279 = tpu.matmul %266, %278, %cst_129 {dimension_numbers = #tpu.dot_dimension_numbers<[1], [0], [0], [1], [0, 0, 1, 1], [], []>} : vector<8x8xf32>, vector<8x8xf32>, vector<8x8xf32> -> vector<8x8xf32>
    %cst_130 = arith.constant 2.500000e-01 : f32
    %280 = vector.broadcast %cst_130 : f32 to vector<8x8xf32>
    %281 = arith.mulf %280, %279 : vector<8x8xf32>
    %cst_131 = arith.constant dense<0.000000e+00> : vector<8x8xf32>
    %282 = tpu.matmul %183, %281, %cst_131 {dimension_numbers = #tpu.dot_dimension_numbers<[1], [0], [0], [1], [0, 0, 1, 1], [], []>} : vector<8x8xf32>, vector<8x8xf32>, vector<8x8xf32> -> vector<8x8xf32>
    %cst_132 = arith.constant 7.000000e+00 : f32
    %283 = vector.broadcast %cst_132 : f32 to vector<8x8xf32>
    %284 = arith.mulf %283, %9 : vector<8x8xf32>
    %285 = arith.subf %284, %282 : vector<8x8xf32>
    %cst_133 = arith.constant 1.500000e+01 : f32
    %286 = vector.broadcast %cst_133 : f32 to vector<8x8xf32>
    %287 = arith.mulf %286, %9 : vector<8x8xf32>
    %cst_134 = arith.constant dense<0.000000e+00> : vector<8x8xf32>
    %288 = tpu.matmul %282, %285, %cst_134 {dimension_numbers = #tpu.dot_dimension_numbers<[1], [0], [0], [1], [0, 0, 1, 1], [], []>} : vector<8x8xf32>, vector<8x8xf32>, vector<8x8xf32> -> vector<8x8xf32>
    %289 = arith.subf %287, %288 : vector<8x8xf32>
    %cst_135 = arith.constant 1.300000e+01 : f32
    %290 = vector.broadcast %cst_135 : f32 to vector<8x8xf32>
    %291 = arith.mulf %290, %9 : vector<8x8xf32>
    %cst_136 = arith.constant dense<0.000000e+00> : vector<8x8xf32>
    %292 = tpu.matmul %282, %289, %cst_136 {dimension_numbers = #tpu.dot_dimension_numbers<[1], [0], [0], [1], [0, 0, 1, 1], [], []>} : vector<8x8xf32>, vector<8x8xf32>, vector<8x8xf32> -> vector<8x8xf32>
    %293 = arith.subf %291, %292 : vector<8x8xf32>
    %cst_137 = arith.constant dense<0.000000e+00> : vector<8x8xf32>
    %294 = tpu.matmul %281, %293, %cst_137 {dimension_numbers = #tpu.dot_dimension_numbers<[1], [0], [0], [1], [0, 0, 1, 1], [], []>} : vector<8x8xf32>, vector<8x8xf32>, vector<8x8xf32> -> vector<8x8xf32>
    %cst_138 = arith.constant 2.500000e-01 : f32
    %295 = vector.broadcast %cst_138 : f32 to vector<8x8xf32>
    %296 = arith.mulf %295, %294 : vector<8x8xf32>
    %cst_139 = arith.constant dense<0.000000e+00> : vector<8x64xf32>
    %297 = tpu.matmul %193, %158, %cst_139 {dimension_numbers = #tpu.dot_dimension_numbers<[1], [0], [0], [1], [0, 0, 1, 1], [], []>} : vector<8x16xf32>, vector<16x64xf32>, vector<8x64xf32> -> vector<8x64xf32>
    %cst_140 = arith.constant dense<0.000000e+00> : vector<8x64xf32>
    %298 = tpu.matmul %296, %297, %cst_140 {dimension_numbers = #tpu.dot_dimension_numbers<[1], [0], [0], [1], [0, 0, 1, 1], [], []>} : vector<8x8xf32>, vector<8x64xf32>, vector<8x64xf32> -> vector<8x64xf32>
    %cst_141 = arith.constant dense<0.000000e+00> : vector<16x64xf32>
    %299 = tpu.matmul %173, %298, %cst_141 {dimension_numbers = #tpu.dot_dimension_numbers<[1], [0], [0], [1], [0, 0, 1, 1], [], []>} : vector<16x8xf32>, vector<8x64xf32>, vector<16x64xf32> -> vector<16x64xf32>
    %300 = tpu.concatenate %155, %299 in 1 : vector<16x64xf32>, vector<16x64xf32> -> vector<16x128xf32>
    %cst_142 = arith.constant 0.000000e+00 : f32
    %301 = vector.broadcast %cst_142 : f32 to vector<48x128xf32>
    %c0_143 = arith.constant 0 : index
    %c0_144 = arith.constant 0 : index
    %302 = vector.load %arg9[%c0_143, %c0_144] : memref<48x128xf32, #tpu.memory_space<vmem>>, vector<48x128xf32>
    tpu.vector_store %arg9[%c0_143, %c0_144], %301 {strides = array<i32>} : memref<48x128xf32, #tpu.memory_space<vmem>>, vector<48x128xf32>,
    %c16 = arith.constant 16 : index
    %c0_145 = arith.constant 0 : index
    %303 = vector.load %arg9[%c16, %c0_145] : memref<48x128xf32, #tpu.memory_space<vmem>>, vector<16x128xf32>
    tpu.vector_store %arg9[%c16, %c0_145], %7 {strides = array<i32>} : memref<48x128xf32, #tpu.memory_space<vmem>>, vector<16x128xf32>,
    %c0_146 = arith.constant 0 : index
    %c0_147 = arith.constant 0 : index
    %304 = vector.load %arg7[%c0_146, %c0_147] : memref<33x128xf32, #tpu.memory_space<vmem>>, vector<33x128xf32>
    %cst_148 = arith.constant 0.000000e+00 : f32
    %305 = vector.broadcast %cst_148 : f32 to vector<16x128xf32>
    %306 = vector.extract_strided_slice %304 {offsets = [0, 0], sizes = [1, 128], strides = [1, 1]} : vector<33x128xf32> to vector<1x128xf32>
    %c0_149 = arith.constant 0 : index
    %c0_150 = arith.constant 0 : index
    %307 = vector.load %arg9[%c0_149, %c0_150] : memref<48x128xf32, #tpu.memory_space<vmem>>, vector<16x128xf32>
    %308 = vector.broadcast %306 : vector<1x128xf32> to vector<16x128xf32>
    %309 = arith.mulf %308, %307 : vector<16x128xf32>
    %310 = arith.addf %305, %309 : vector<16x128xf32>
    %311 = vector.extract_strided_slice %304 {offsets = [1, 0], sizes = [1, 128], strides = [1, 1]} : vector<33x128xf32> to vector<1x128xf32>
    %c1 = arith.constant 1 : index
    %c0_151 = arith.constant 0 : index
    %312 = vector.load %arg9[%c1, %c0_151] : memref<48x128xf32, #tpu.memory_space<vmem>>, vector<16x128xf32>
    %313 = vector.broadcast %311 : vector<1x128xf32> to vector<16x128xf32>
    %314 = arith.mulf %313, %312 : vector<16x128xf32>
    %315 = arith.addf %310, %314 : vector<16x128xf32>
    %316 = vector.extract_strided_slice %304 {offsets = [2, 0], sizes = [1, 128], strides = [1, 1]} : vector<33x128xf32> to vector<1x128xf32>
    %c2 = arith.constant 2 : index
    %c0_152 = arith.constant 0 : index
    %317 = vector.load %arg9[%c2, %c0_152] : memref<48x128xf32, #tpu.memory_space<vmem>>, vector<16x128xf32>
    %318 = vector.broadcast %316 : vector<1x128xf32> to vector<16x128xf32>
    %319 = arith.mulf %318, %317 : vector<16x128xf32>
    %320 = arith.addf %315, %319 : vector<16x128xf32>
    %321 = vector.extract_strided_slice %304 {offsets = [3, 0], sizes = [1, 128], strides = [1, 1]} : vector<33x128xf32> to vector<1x128xf32>
    %c3 = arith.constant 3 : index
    %c0_153 = arith.constant 0 : index
    %322 = vector.load %arg9[%c3, %c0_153] : memref<48x128xf32, #tpu.memory_space<vmem>>, vector<16x128xf32>
    %323 = vector.broadcast %321 : vector<1x128xf32> to vector<16x128xf32>
    %324 = arith.mulf %323, %322 : vector<16x128xf32>
    %325 = arith.addf %320, %324 : vector<16x128xf32>
    %326 = vector.extract_strided_slice %304 {offsets = [4, 0], sizes = [1, 128], strides = [1, 1]} : vector<33x128xf32> to vector<1x128xf32>
    %c4 = arith.constant 4 : index
    %c0_154 = arith.constant 0 : index
    %327 = vector.load %arg9[%c4, %c0_154] : memref<48x128xf32, #tpu.memory_space<vmem>>, vector<16x128xf32>
    %328 = vector.broadcast %326 : vector<1x128xf32> to vector<16x128xf32>
    %329 = arith.mulf %328, %327 : vector<16x128xf32>
    %330 = arith.addf %325, %329 : vector<16x128xf32>
    %331 = vector.extract_strided_slice %304 {offsets = [5, 0], sizes = [1, 128], strides = [1, 1]} : vector<33x128xf32> to vector<1x128xf32>
    %c5 = arith.constant 5 : index
    %c0_155 = arith.constant 0 : index
    %332 = vector.load %arg9[%c5, %c0_155] : memref<48x128xf32, #tpu.memory_space<vmem>>, vector<16x128xf32>
    %333 = vector.broadcast %331 : vector<1x128xf32> to vector<16x128xf32>
    %334 = arith.mulf %333, %332 : vector<16x128xf32>
    %335 = arith.addf %330, %334 : vector<16x128xf32>
    %336 = vector.extract_strided_slice %304 {offsets = [6, 0], sizes = [1, 128], strides = [1, 1]} : vector<33x128xf32> to vector<1x128xf32>
    %c6 = arith.constant 6 : index
    %c0_156 = arith.constant 0 : index
    %337 = vector.load %arg9[%c6, %c0_156] : memref<48x128xf32, #tpu.memory_space<vmem>>, vector<16x128xf32>
    %338 = vector.broadcast %336 : vector<1x128xf32> to vector<16x128xf32>
    %339 = arith.mulf %338, %337 : vector<16x128xf32>
    %340 = arith.addf %335, %339 : vector<16x128xf32>
    %341 = vector.extract_strided_slice %304 {offsets = [7, 0], sizes = [1, 128], strides = [1, 1]} : vector<33x128xf32> to vector<1x128xf32>
    %c7 = arith.constant 7 : index
    %c0_157 = arith.constant 0 : index
    %342 = vector.load %arg9[%c7, %c0_157] : memref<48x128xf32, #tpu.memory_space<vmem>>, vector<16x128xf32>
    %343 = vector.broadcast %341 : vector<1x128xf32> to vector<16x128xf32>
    %344 = arith.mulf %343, %342 : vector<16x128xf32>
    %345 = arith.addf %340, %344 : vector<16x128xf32>
    %346 = vector.extract_strided_slice %304 {offsets = [8, 0], sizes = [1, 128], strides = [1, 1]} : vector<33x128xf32> to vector<1x128xf32>
    %c8 = arith.constant 8 : index
    %c0_158 = arith.constant 0 : index
    %347 = vector.load %arg9[%c8, %c0_158] : memref<48x128xf32, #tpu.memory_space<vmem>>, vector<16x128xf32>
    %348 = vector.broadcast %346 : vector<1x128xf32> to vector<16x128xf32>
    %349 = arith.mulf %348, %347 : vector<16x128xf32>
    %350 = arith.addf %345, %349 : vector<16x128xf32>
    %351 = vector.extract_strided_slice %304 {offsets = [9, 0], sizes = [1, 128], strides = [1, 1]} : vector<33x128xf32> to vector<1x128xf32>
    %c9 = arith.constant 9 : index
    %c0_159 = arith.constant 0 : index
    %352 = vector.load %arg9[%c9, %c0_159] : memref<48x128xf32, #tpu.memory_space<vmem>>, vector<16x128xf32>
    %353 = vector.broadcast %351 : vector<1x128xf32> to vector<16x128xf32>
    %354 = arith.mulf %353, %352 : vector<16x128xf32>
    %355 = arith.addf %350, %354 : vector<16x128xf32>
    %356 = vector.extract_strided_slice %304 {offsets = [10, 0], sizes = [1, 128], strides = [1, 1]} : vector<33x128xf32> to vector<1x128xf32>
    %c10 = arith.constant 10 : index
    %c0_160 = arith.constant 0 : index
    %357 = vector.load %arg9[%c10, %c0_160] : memref<48x128xf32, #tpu.memory_space<vmem>>, vector<16x128xf32>
    %358 = vector.broadcast %356 : vector<1x128xf32> to vector<16x128xf32>
    %359 = arith.mulf %358, %357 : vector<16x128xf32>
    %360 = arith.addf %355, %359 : vector<16x128xf32>
    %361 = vector.extract_strided_slice %304 {offsets = [11, 0], sizes = [1, 128], strides = [1, 1]} : vector<33x128xf32> to vector<1x128xf32>
    %c11 = arith.constant 11 : index
    %c0_161 = arith.constant 0 : index
    %362 = vector.load %arg9[%c11, %c0_161] : memref<48x128xf32, #tpu.memory_space<vmem>>, vector<16x128xf32>
    %363 = vector.broadcast %361 : vector<1x128xf32> to vector<16x128xf32>
    %364 = arith.mulf %363, %362 : vector<16x128xf32>
    %365 = arith.addf %360, %364 : vector<16x128xf32>
    %366 = vector.extract_strided_slice %304 {offsets = [12, 0], sizes = [1, 128], strides = [1, 1]} : vector<33x128xf32> to vector<1x128xf32>
    %c12 = arith.constant 12 : index
    %c0_162 = arith.constant 0 : index
    %367 = vector.load %arg9[%c12, %c0_162] : memref<48x128xf32, #tpu.memory_space<vmem>>, vector<16x128xf32>
    %368 = vector.broadcast %366 : vector<1x128xf32> to vector<16x128xf32>
    %369 = arith.mulf %368, %367 : vector<16x128xf32>
    %370 = arith.addf %365, %369 : vector<16x128xf32>
    %371 = vector.extract_strided_slice %304 {offsets = [13, 0], sizes = [1, 128], strides = [1, 1]} : vector<33x128xf32> to vector<1x128xf32>
    %c13 = arith.constant 13 : index
    %c0_163 = arith.constant 0 : index
    %372 = vector.load %arg9[%c13, %c0_163] : memref<48x128xf32, #tpu.memory_space<vmem>>, vector<16x128xf32>
    %373 = vector.broadcast %371 : vector<1x128xf32> to vector<16x128xf32>
    %374 = arith.mulf %373, %372 : vector<16x128xf32>
    %375 = arith.addf %370, %374 : vector<16x128xf32>
    %376 = vector.extract_strided_slice %304 {offsets = [14, 0], sizes = [1, 128], strides = [1, 1]} : vector<33x128xf32> to vector<1x128xf32>
    %c14 = arith.constant 14 : index
    %c0_164 = arith.constant 0 : index
    %377 = vector.load %arg9[%c14, %c0_164] : memref<48x128xf32, #tpu.memory_space<vmem>>, vector<16x128xf32>
    %378 = vector.broadcast %376 : vector<1x128xf32> to vector<16x128xf32>
    %379 = arith.mulf %378, %377 : vector<16x128xf32>
    %380 = arith.addf %375, %379 : vector<16x128xf32>
    %381 = vector.extract_strided_slice %304 {offsets = [15, 0], sizes = [1, 128], strides = [1, 1]} : vector<33x128xf32> to vector<1x128xf32>
    %c15 = arith.constant 15 : index
    %c0_165 = arith.constant 0 : index
    %382 = vector.load %arg9[%c15, %c0_165] : memref<48x128xf32, #tpu.memory_space<vmem>>, vector<16x128xf32>
    %383 = vector.broadcast %381 : vector<1x128xf32> to vector<16x128xf32>
    %384 = arith.mulf %383, %382 : vector<16x128xf32>
    %385 = arith.addf %380, %384 : vector<16x128xf32>
    %386 = vector.extract_strided_slice %304 {offsets = [16, 0], sizes = [1, 128], strides = [1, 1]} : vector<33x128xf32> to vector<1x128xf32>
    %c16_166 = arith.constant 16 : index
    %c0_167 = arith.constant 0 : index
    %387 = vector.load %arg9[%c16_166, %c0_167] : memref<48x128xf32, #tpu.memory_space<vmem>>, vector<16x128xf32>
    %388 = vector.broadcast %386 : vector<1x128xf32> to vector<16x128xf32>
    %389 = arith.mulf %388, %387 : vector<16x128xf32>
    %390 = arith.addf %385, %389 : vector<16x128xf32>
    %391 = vector.extract_strided_slice %304 {offsets = [17, 0], sizes = [1, 128], strides = [1, 1]} : vector<33x128xf32> to vector<1x128xf32>
    %c17 = arith.constant 17 : index
    %c0_168 = arith.constant 0 : index
    %392 = vector.load %arg9[%c17, %c0_168] : memref<48x128xf32, #tpu.memory_space<vmem>>, vector<16x128xf32>
    %393 = vector.broadcast %391 : vector<1x128xf32> to vector<16x128xf32>
    %394 = arith.mulf %393, %392 : vector<16x128xf32>
    %395 = arith.addf %390, %394 : vector<16x128xf32>
    %396 = vector.extract_strided_slice %304 {offsets = [18, 0], sizes = [1, 128], strides = [1, 1]} : vector<33x128xf32> to vector<1x128xf32>
    %c18 = arith.constant 18 : index
    %c0_169 = arith.constant 0 : index
    %397 = vector.load %arg9[%c18, %c0_169] : memref<48x128xf32, #tpu.memory_space<vmem>>, vector<16x128xf32>
    %398 = vector.broadcast %396 : vector<1x128xf32> to vector<16x128xf32>
    %399 = arith.mulf %398, %397 : vector<16x128xf32>
    %400 = arith.addf %395, %399 : vector<16x128xf32>
    %401 = vector.extract_strided_slice %304 {offsets = [19, 0], sizes = [1, 128], strides = [1, 1]} : vector<33x128xf32> to vector<1x128xf32>
    %c19 = arith.constant 19 : index
    %c0_170 = arith.constant 0 : index
    %402 = vector.load %arg9[%c19, %c0_170] : memref<48x128xf32, #tpu.memory_space<vmem>>, vector<16x128xf32>
    %403 = vector.broadcast %401 : vector<1x128xf32> to vector<16x128xf32>
    %404 = arith.mulf %403, %402 : vector<16x128xf32>
    %405 = arith.addf %400, %404 : vector<16x128xf32>
    %406 = vector.extract_strided_slice %304 {offsets = [20, 0], sizes = [1, 128], strides = [1, 1]} : vector<33x128xf32> to vector<1x128xf32>
    %c20 = arith.constant 20 : index
    %c0_171 = arith.constant 0 : index
    %407 = vector.load %arg9[%c20, %c0_171] : memref<48x128xf32, #tpu.memory_space<vmem>>, vector<16x128xf32>
    %408 = vector.broadcast %406 : vector<1x128xf32> to vector<16x128xf32>
    %409 = arith.mulf %408, %407 : vector<16x128xf32>
    %410 = arith.addf %405, %409 : vector<16x128xf32>
    %411 = vector.extract_strided_slice %304 {offsets = [21, 0], sizes = [1, 128], strides = [1, 1]} : vector<33x128xf32> to vector<1x128xf32>
    %c21 = arith.constant 21 : index
    %c0_172 = arith.constant 0 : index
    %412 = vector.load %arg9[%c21, %c0_172] : memref<48x128xf32, #tpu.memory_space<vmem>>, vector<16x128xf32>
    %413 = vector.broadcast %411 : vector<1x128xf32> to vector<16x128xf32>
    %414 = arith.mulf %413, %412 : vector<16x128xf32>
    %415 = arith.addf %410, %414 : vector<16x128xf32>
    %416 = vector.extract_strided_slice %304 {offsets = [22, 0], sizes = [1, 128], strides = [1, 1]} : vector<33x128xf32> to vector<1x128xf32>
    %c22 = arith.constant 22 : index
    %c0_173 = arith.constant 0 : index
    %417 = vector.load %arg9[%c22, %c0_173] : memref<48x128xf32, #tpu.memory_space<vmem>>, vector<16x128xf32>
    %418 = vector.broadcast %416 : vector<1x128xf32> to vector<16x128xf32>
    %419 = arith.mulf %418, %417 : vector<16x128xf32>
    %420 = arith.addf %415, %419 : vector<16x128xf32>
    %421 = vector.extract_strided_slice %304 {offsets = [23, 0], sizes = [1, 128], strides = [1, 1]} : vector<33x128xf32> to vector<1x128xf32>
    %c23 = arith.constant 23 : index
    %c0_174 = arith.constant 0 : index
    %422 = vector.load %arg9[%c23, %c0_174] : memref<48x128xf32, #tpu.memory_space<vmem>>, vector<16x128xf32>
    %423 = vector.broadcast %421 : vector<1x128xf32> to vector<16x128xf32>
    %424 = arith.mulf %423, %422 : vector<16x128xf32>
    %425 = arith.addf %420, %424 : vector<16x128xf32>
    %426 = vector.extract_strided_slice %304 {offsets = [24, 0], sizes = [1, 128], strides = [1, 1]} : vector<33x128xf32> to vector<1x128xf32>
    %c24 = arith.constant 24 : index
    %c0_175 = arith.constant 0 : index
    %427 = vector.load %arg9[%c24, %c0_175] : memref<48x128xf32, #tpu.memory_space<vmem>>, vector<16x128xf32>
    %428 = vector.broadcast %426 : vector<1x128xf32> to vector<16x128xf32>
    %429 = arith.mulf %428, %427 : vector<16x128xf32>
    %430 = arith.addf %425, %429 : vector<16x128xf32>
    %431 = vector.extract_strided_slice %304 {offsets = [25, 0], sizes = [1, 128], strides = [1, 1]} : vector<33x128xf32> to vector<1x128xf32>
    %c25 = arith.constant 25 : index
    %c0_176 = arith.constant 0 : index
    %432 = vector.load %arg9[%c25, %c0_176] : memref<48x128xf32, #tpu.memory_space<vmem>>, vector<16x128xf32>
    %433 = vector.broadcast %431 : vector<1x128xf32> to vector<16x128xf32>
    %434 = arith.mulf %433, %432 : vector<16x128xf32>
    %435 = arith.addf %430, %434 : vector<16x128xf32>
    %436 = vector.extract_strided_slice %304 {offsets = [26, 0], sizes = [1, 128], strides = [1, 1]} : vector<33x128xf32> to vector<1x128xf32>
    %c26 = arith.constant 26 : index
    %c0_177 = arith.constant 0 : index
    %437 = vector.load %arg9[%c26, %c0_177] : memref<48x128xf32, #tpu.memory_space<vmem>>, vector<16x128xf32>
    %438 = vector.broadcast %436 : vector<1x128xf32> to vector<16x128xf32>
    %439 = arith.mulf %438, %437 : vector<16x128xf32>
    %440 = arith.addf %435, %439 : vector<16x128xf32>
    %441 = vector.extract_strided_slice %304 {offsets = [27, 0], sizes = [1, 128], strides = [1, 1]} : vector<33x128xf32> to vector<1x128xf32>
    %c27 = arith.constant 27 : index
    %c0_178 = arith.constant 0 : index
    %442 = vector.load %arg9[%c27, %c0_178] : memref<48x128xf32, #tpu.memory_space<vmem>>, vector<16x128xf32>
    %443 = vector.broadcast %441 : vector<1x128xf32> to vector<16x128xf32>
    %444 = arith.mulf %443, %442 : vector<16x128xf32>
    %445 = arith.addf %440, %444 : vector<16x128xf32>
    %446 = vector.extract_strided_slice %304 {offsets = [28, 0], sizes = [1, 128], strides = [1, 1]} : vector<33x128xf32> to vector<1x128xf32>
    %c28 = arith.constant 28 : index
    %c0_179 = arith.constant 0 : index
    %447 = vector.load %arg9[%c28, %c0_179] : memref<48x128xf32, #tpu.memory_space<vmem>>, vector<16x128xf32>
    %448 = vector.broadcast %446 : vector<1x128xf32> to vector<16x128xf32>
    %449 = arith.mulf %448, %447 : vector<16x128xf32>
    %450 = arith.addf %445, %449 : vector<16x128xf32>
    %451 = vector.extract_strided_slice %304 {offsets = [29, 0], sizes = [1, 128], strides = [1, 1]} : vector<33x128xf32> to vector<1x128xf32>
    %c29 = arith.constant 29 : index
    %c0_180 = arith.constant 0 : index
    %452 = vector.load %arg9[%c29, %c0_180] : memref<48x128xf32, #tpu.memory_space<vmem>>, vector<16x128xf32>
    %453 = vector.broadcast %451 : vector<1x128xf32> to vector<16x128xf32>
    %454 = arith.mulf %453, %452 : vector<16x128xf32>
    %455 = arith.addf %450, %454 : vector<16x128xf32>
    %456 = vector.extract_strided_slice %304 {offsets = [30, 0], sizes = [1, 128], strides = [1, 1]} : vector<33x128xf32> to vector<1x128xf32>
    %c30 = arith.constant 30 : index
    %c0_181 = arith.constant 0 : index
    %457 = vector.load %arg9[%c30, %c0_181] : memref<48x128xf32, #tpu.memory_space<vmem>>, vector<16x128xf32>
    %458 = vector.broadcast %456 : vector<1x128xf32> to vector<16x128xf32>
    %459 = arith.mulf %458, %457 : vector<16x128xf32>
    %460 = arith.addf %455, %459 : vector<16x128xf32>
    %461 = vector.extract_strided_slice %304 {offsets = [31, 0], sizes = [1, 128], strides = [1, 1]} : vector<33x128xf32> to vector<1x128xf32>
    %c31 = arith.constant 31 : index
    %c0_182 = arith.constant 0 : index
    %462 = vector.load %arg9[%c31, %c0_182] : memref<48x128xf32, #tpu.memory_space<vmem>>, vector<16x128xf32>
    %463 = vector.broadcast %461 : vector<1x128xf32> to vector<16x128xf32>
    %464 = arith.mulf %463, %462 : vector<16x128xf32>
    %465 = arith.addf %460, %464 : vector<16x128xf32>
    %466 = vector.extract_strided_slice %304 {offsets = [32, 0], sizes = [1, 128], strides = [1, 1]} : vector<33x128xf32> to vector<1x128xf32>
    %c32 = arith.constant 32 : index
    %c0_183 = arith.constant 0 : index
    %467 = vector.load %arg9[%c32, %c0_183] : memref<48x128xf32, #tpu.memory_space<vmem>>, vector<16x128xf32>
    %468 = vector.broadcast %466 : vector<1x128xf32> to vector<16x128xf32>
    %469 = arith.mulf %468, %467 : vector<16x128xf32>
    %470 = arith.addf %465, %469 : vector<16x128xf32>
    %471 = arith.addf %300, %470 : vector<16x128xf32>
    %c0_184 = arith.constant 0 : index
    %c0_185 = arith.constant 0 : index
    %c0_186 = arith.constant 0 : index
    %472 = vector.load %arg8[%c0_184, %c0_185, %c0_186] : memref<1x16x128xf32, #tpu.memory_space<vmem>>, vector<1x16x128xf32>
    %473 = vector.shape_cast %472 : vector<1x16x128xf32> to vector<16x128xf32>
    %474 = vector.shape_cast %471 : vector<16x128xf32> to vector<1x16x128xf32>
    tpu.vector_store %arg8[%c0_184, %c0_185, %c0_186], %474 {strides = array<i32>} : memref<1x16x128xf32, #tpu.memory_space<vmem>>, vector<1x16x128xf32>,
    return
  }
  func.func @transform_0(%arg0: i32, %arg1: i32) -> (i32, i32) {
    %c0_i32 = arith.constant 0 : i32
    %c0_i32_0 = arith.constant 0 : i32
    %c0_i32_1 = arith.constant 0 : i32
    return %c0_i32, %c0_i32_0 : i32, i32
  }
  func.func @transform_1(%arg0: i32, %arg1: i32) -> (i32, i32) {
    %c0_i32 = arith.constant 0 : i32
    %c0_i32_0 = arith.constant 0 : i32
    %c0_i32_1 = arith.constant 0 : i32
    return %c0_i32, %c0_i32_0 : i32, i32
  }
  func.func @transform_2(%arg0: i32, %arg1: i32) -> (i32, i32, i32) {
    %c0_i32 = arith.constant 0 : i32
    %c0_i32_0 = arith.constant 0 : i32
    return %arg0, %c0_i32, %arg1 : i32, i32, i32
  }
  func.func @transform_3(%arg0: i32, %arg1: i32) -> (i32, i32, i32) {
    %c1_i32 = arith.constant 1 : i32
    %0 = arith.addi %c1_i32, %arg1 : i32
    %c0_i32 = arith.constant 0 : i32
    %c0_i32_0 = arith.constant 0 : i32
    return %arg0, %c0_i32, %0 : i32, i32, i32
  }
  func.func @transform_4(%arg0: i32, %arg1: i32) -> (i32, i32, i32) {
    %c2_i32 = arith.constant 2 : i32
    %0 = arith.addi %c2_i32, %arg1 : i32
    %c0_i32 = arith.constant 0 : i32
    %c0_i32_0 = arith.constant 0 : i32
    return %arg0, %c0_i32, %0 : i32, i32, i32
  }
  func.func @transform_5(%arg0: i32, %arg1: i32) -> (i32, i32) {
    %c0_i32 = arith.constant 0 : i32
    %c0_i32_0 = arith.constant 0 : i32
    return %c0_i32, %arg1 : i32, i32
  }
  func.func @transform_6(%arg0: i32, %arg1: i32) -> (i32, i32, i32) {
    %c0_i32 = arith.constant 0 : i32
    %c0_i32_0 = arith.constant 0 : i32
    return %arg0, %c0_i32, %arg1 : i32, i32, i32
  }
}

module attributes {stable_mosaic.version = 11 : i64} {
  func.func @linear_kernel(%arg0: i32, %arg1: memref<32x128xf32, #tpu.memory_space<vmem>>, %arg2: memref<128x32xf32, #tpu.memory_space<vmem>>, %arg3: memref<1x32xf32, #tpu.memory_space<vmem>>, %arg4: memref<32x32xf32, #tpu.memory_space<vmem>>) attributes {dimension_semantics = [#tpu.dimension_semantics<parallel>], iteration_bounds = array<i64: 1>, scalar_prefetch = 0 : i64, scratch_operands = 0 : i64, tpu.core_type = #tpu.core_type<tc>, window_params = [{transform_indices = @transform_0, window_bounds = array<i64: 32, 128>}, {pipeline_mode = #tpu.pipeline_mode<synchronous>, transform_indices = @transform_1, window_bounds = array<i64: 128, 32>}, {pipeline_mode = #tpu.pipeline_mode<synchronous>, transform_indices = @transform_2, window_bounds = array<i64: 1, 32>}, {transform_indices = @transform_3, window_bounds = array<i64: 32, 32>}]} {
    %c0 = arith.constant 0 : index
    %c0_0 = arith.constant 0 : index
    %0 = vector.load %arg1[%c0, %c0_0] : memref<32x128xf32, #tpu.memory_space<vmem>>, vector<32x128xf32>
    %c0_1 = arith.constant 0 : index
    %c0_2 = arith.constant 0 : index
    %1 = vector.load %arg2[%c0_1, %c0_2] : memref<128x32xf32, #tpu.memory_space<vmem>>, vector<128x32xf32>
    %cst = arith.constant dense<0.000000e+00> : vector<32x32xf32>
    %2 = tpu.matmul %0, %1, %cst {dimension_numbers = #tpu.dot_dimension_numbers<[1], [0], [0], [1], [0, 0, 1, 1], [], []>} : vector<32x128xf32>, vector<128x32xf32>, vector<32x32xf32> -> vector<32x32xf32>
    %c0_3 = arith.constant 0 : index
    %c0_4 = arith.constant 0 : index
    %3 = vector.load %arg3[%c0_3, %c0_4] : memref<1x32xf32, #tpu.memory_space<vmem>>, vector<1x32xf32>
    %4 = vector.broadcast %3 : vector<1x32xf32> to vector<32x32xf32>
    %5 = arith.addf %2, %4 : vector<32x32xf32>
    %c0_5 = arith.constant 0 : index
    %c0_6 = arith.constant 0 : index
    %6 = vector.load %arg4[%c0_5, %c0_6] : memref<32x32xf32, #tpu.memory_space<vmem>>, vector<32x32xf32>
    tpu.vector_store %arg4[%c0_5, %c0_6], %5 {strides = array<i32>} : memref<32x32xf32, #tpu.memory_space<vmem>>, vector<32x32xf32>,
    return
  }
  func.func @transform_0(%arg0: i32) -> (i32, i32) {
    %c0_i32 = arith.constant 0 : i32
    %c0_i32_0 = arith.constant 0 : i32
    return %arg0, %c0_i32 : i32, i32
  }
  func.func @transform_1(%arg0: i32) -> (i32, i32) {
    %c0_i32 = arith.constant 0 : i32
    %c0_i32_0 = arith.constant 0 : i32
    %c0_i32_1 = arith.constant 0 : i32
    return %c0_i32, %c0_i32_0 : i32, i32
  }
  func.func @transform_2(%arg0: i32) -> (i32, i32) {
    %c0_i32 = arith.constant 0 : i32
    %c0_i32_0 = arith.constant 0 : i32
    %c0_i32_1 = arith.constant 0 : i32
    return %c0_i32, %c0_i32_0 : i32, i32
  }
  func.func @transform_3(%arg0: i32) -> (i32, i32) {
    %c0_i32 = arith.constant 0 : i32
    %c0_i32_0 = arith.constant 0 : i32
    return %arg0, %c0_i32 : i32, i32
  }
}

module attributes {stable_mosaic.version = 11 : i64} {
  func.func @ln_linear_kernel(%arg0: i32, %arg1: memref<32x32xf32, #tpu.memory_space<vmem>>, %arg2: memref<1x32xf32, #tpu.memory_space<vmem>>, %arg3: memref<1x32xf32, #tpu.memory_space<vmem>>, %arg4: memref<32x128xf32, #tpu.memory_space<vmem>>, %arg5: memref<1x128xf32, #tpu.memory_space<vmem>>, %arg6: memref<32x128xf32, #tpu.memory_space<vmem>>) attributes {dimension_semantics = [#tpu.dimension_semantics<parallel>], iteration_bounds = array<i64: 1>, scalar_prefetch = 0 : i64, scratch_operands = 0 : i64, tpu.core_type = #tpu.core_type<tc>, window_params = [{transform_indices = @transform_0, window_bounds = array<i64: 32, 32>}, {pipeline_mode = #tpu.pipeline_mode<synchronous>, transform_indices = @transform_1, window_bounds = array<i64: 1, 32>}, {pipeline_mode = #tpu.pipeline_mode<synchronous>, transform_indices = @transform_2, window_bounds = array<i64: 1, 32>}, {pipeline_mode = #tpu.pipeline_mode<synchronous>, transform_indices = @transform_3, window_bounds = array<i64: 32, 128>}, {pipeline_mode = #tpu.pipeline_mode<synchronous>, transform_indices = @transform_4, window_bounds = array<i64: 1, 128>}, {transform_indices = @transform_5, window_bounds = array<i64: 32, 128>}]} {
    %c0 = arith.constant 0 : index
    %c0_0 = arith.constant 0 : index
    %0 = vector.load %arg1[%c0, %c0_0] : memref<32x32xf32, #tpu.memory_space<vmem>>, vector<32x32xf32>
    %cst = arith.constant dense<0.000000e+00> : vector<32xf32>
    %1 = vector.multi_reduction <add>, %0, %cst [1] : vector<32x32xf32> to vector<32xf32>
    %2 = vector.shape_cast %1 : vector<32xf32> to vector<32x1xf32>
    %cst_1 = arith.constant 3.200000e+01 : f32
    %3 = vector.broadcast %cst_1 : f32 to vector<32x1xf32>
    %4 = arith.divf %2, %3 : vector<32x1xf32>
    %5 = vector.broadcast %4 : vector<32x1xf32> to vector<32x32xf32>
    %6 = arith.subf %0, %5 : vector<32x32xf32>
    %7 = arith.mulf %6, %6 : vector<32x32xf32>
    %cst_2 = arith.constant dense<0.000000e+00> : vector<32xf32>
    %8 = vector.multi_reduction <add>, %7, %cst_2 [1] : vector<32x32xf32> to vector<32xf32>
    %9 = vector.shape_cast %8 : vector<32xf32> to vector<32x1xf32>
    %cst_3 = arith.constant 3.200000e+01 : f32
    %10 = vector.broadcast %cst_3 : f32 to vector<32x1xf32>
    %11 = arith.divf %9, %10 : vector<32x1xf32>
    %12 = vector.broadcast %4 : vector<32x1xf32> to vector<32x32xf32>
    %13 = arith.subf %0, %12 : vector<32x32xf32>
    %cst_4 = arith.constant 9.99999974E-6 : f32
    %14 = vector.broadcast %cst_4 : f32 to vector<32x1xf32>
    %15 = arith.addf %11, %14 : vector<32x1xf32>
    %16 = math.rsqrt %15 : vector<32x1xf32>
    %17 = vector.broadcast %16 : vector<32x1xf32> to vector<32x32xf32>
    %18 = arith.mulf %13, %17 : vector<32x32xf32>
    %c0_5 = arith.constant 0 : index
    %c0_6 = arith.constant 0 : index
    %19 = vector.load %arg2[%c0_5, %c0_6] : memref<1x32xf32, #tpu.memory_space<vmem>>, vector<1x32xf32>
    %20 = vector.broadcast %19 : vector<1x32xf32> to vector<32x32xf32>
    %21 = arith.mulf %18, %20 : vector<32x32xf32>
    %c0_7 = arith.constant 0 : index
    %c0_8 = arith.constant 0 : index
    %22 = vector.load %arg3[%c0_7, %c0_8] : memref<1x32xf32, #tpu.memory_space<vmem>>, vector<1x32xf32>
    %23 = vector.broadcast %22 : vector<1x32xf32> to vector<32x32xf32>
    %24 = arith.addf %21, %23 : vector<32x32xf32>
    %c0_9 = arith.constant 0 : index
    %c0_10 = arith.constant 0 : index
    %25 = vector.load %arg4[%c0_9, %c0_10] : memref<32x128xf32, #tpu.memory_space<vmem>>, vector<32x128xf32>
    %cst_11 = arith.constant dense<0.000000e+00> : vector<32x128xf32>
    %26 = tpu.matmul %24, %25, %cst_11 {dimension_numbers = #tpu.dot_dimension_numbers<[1], [0], [0], [1], [0, 0, 1, 1], [], []>} : vector<32x32xf32>, vector<32x128xf32>, vector<32x128xf32> -> vector<32x128xf32>
    %c0_12 = arith.constant 0 : index
    %c0_13 = arith.constant 0 : index
    %27 = vector.load %arg5[%c0_12, %c0_13] : memref<1x128xf32, #tpu.memory_space<vmem>>, vector<1x128xf32>
    %28 = vector.broadcast %27 : vector<1x128xf32> to vector<32x128xf32>
    %29 = arith.addf %26, %28 : vector<32x128xf32>
    %30 = arith.mulf %29, %29 : vector<32x128xf32>
    %31 = arith.mulf %29, %30 : vector<32x128xf32>
    %cst_14 = arith.constant 4.471500e-02 : f32
    %32 = vector.broadcast %cst_14 : f32 to vector<32x128xf32>
    %33 = arith.mulf %32, %31 : vector<32x128xf32>
    %34 = arith.addf %29, %33 : vector<32x128xf32>
    %cst_15 = arith.constant 0.797884583 : f32
    %35 = vector.broadcast %cst_15 : f32 to vector<32x128xf32>
    %36 = arith.mulf %35, %34 : vector<32x128xf32>
    %37 = math.tanh %36 : vector<32x128xf32>
    %cst_16 = arith.constant 1.000000e+00 : f32
    %38 = vector.broadcast %cst_16 : f32 to vector<32x128xf32>
    %39 = arith.addf %38, %37 : vector<32x128xf32>
    %cst_17 = arith.constant 5.000000e-01 : f32
    %40 = vector.broadcast %cst_17 : f32 to vector<32x128xf32>
    %41 = arith.mulf %40, %39 : vector<32x128xf32>
    %42 = arith.mulf %29, %41 : vector<32x128xf32>
    %c0_18 = arith.constant 0 : index
    %c0_19 = arith.constant 0 : index
    %43 = vector.load %arg6[%c0_18, %c0_19] : memref<32x128xf32, #tpu.memory_space<vmem>>, vector<32x128xf32>
    tpu.vector_store %arg6[%c0_18, %c0_19], %42 {strides = array<i32>} : memref<32x128xf32, #tpu.memory_space<vmem>>, vector<32x128xf32>,
    return
  }
  func.func @transform_0(%arg0: i32) -> (i32, i32) {
    %c0_i32 = arith.constant 0 : i32
    %c0_i32_0 = arith.constant 0 : i32
    return %arg0, %c0_i32 : i32, i32
  }
  func.func @transform_1(%arg0: i32) -> (i32, i32) {
    %c0_i32 = arith.constant 0 : i32
    %c0_i32_0 = arith.constant 0 : i32
    %c0_i32_1 = arith.constant 0 : i32
    return %c0_i32, %c0_i32_0 : i32, i32
  }
  func.func @transform_2(%arg0: i32) -> (i32, i32) {
    %c0_i32 = arith.constant 0 : i32
    %c0_i32_0 = arith.constant 0 : i32
    %c0_i32_1 = arith.constant 0 : i32
    return %c0_i32, %c0_i32_0 : i32, i32
  }
  func.func @transform_3(%arg0: i32) -> (i32, i32) {
    %c0_i32 = arith.constant 0 : i32
    %c0_i32_0 = arith.constant 0 : i32
    %c0_i32_1 = arith.constant 0 : i32
    return %c0_i32, %c0_i32_0 : i32, i32
  }
  func.func @transform_4(%arg0: i32) -> (i32, i32) {
    %c0_i32 = arith.constant 0 : i32
    %c0_i32_0 = arith.constant 0 : i32
    %c0_i32_1 = arith.constant 0 : i32
    return %c0_i32, %c0_i32_0 : i32, i32
  }
  func.func @transform_5(%arg0: i32) -> (i32, i32) {
    %c0_i32 = arith.constant 0 : i32
    %c0_i32_0 = arith.constant 0 : i32
    return %arg0, %c0_i32 : i32, i32
  }
}

module attributes {stable_mosaic.version = 11 : i64} {
  func.func @ln_linear_kernel(%arg0: i32, %arg1: memref<32x32xf32, #tpu.memory_space<vmem>>, %arg2: memref<1x32xf32, #tpu.memory_space<vmem>>, %arg3: memref<1x32xf32, #tpu.memory_space<vmem>>, %arg4: memref<32x384xf32, #tpu.memory_space<vmem>>, %arg5: memref<1x384xf32, #tpu.memory_space<vmem>>, %arg6: memref<32x384xf32, #tpu.memory_space<vmem>>) attributes {dimension_semantics = [#tpu.dimension_semantics<parallel>], iteration_bounds = array<i64: 1>, scalar_prefetch = 0 : i64, scratch_operands = 0 : i64, tpu.core_type = #tpu.core_type<tc>, window_params = [{transform_indices = @transform_0, window_bounds = array<i64: 32, 32>}, {pipeline_mode = #tpu.pipeline_mode<synchronous>, transform_indices = @transform_1, window_bounds = array<i64: 1, 32>}, {pipeline_mode = #tpu.pipeline_mode<synchronous>, transform_indices = @transform_2, window_bounds = array<i64: 1, 32>}, {pipeline_mode = #tpu.pipeline_mode<synchronous>, transform_indices = @transform_3, window_bounds = array<i64: 32, 384>}, {pipeline_mode = #tpu.pipeline_mode<synchronous>, transform_indices = @transform_4, window_bounds = array<i64: 1, 384>}, {transform_indices = @transform_5, window_bounds = array<i64: 32, 384>}]} {
    %c0 = arith.constant 0 : index
    %c0_0 = arith.constant 0 : index
    %0 = vector.load %arg1[%c0, %c0_0] : memref<32x32xf32, #tpu.memory_space<vmem>>, vector<32x32xf32>
    %cst = arith.constant dense<0.000000e+00> : vector<32xf32>
    %1 = vector.multi_reduction <add>, %0, %cst [1] : vector<32x32xf32> to vector<32xf32>
    %2 = vector.shape_cast %1 : vector<32xf32> to vector<32x1xf32>
    %cst_1 = arith.constant 3.200000e+01 : f32
    %3 = vector.broadcast %cst_1 : f32 to vector<32x1xf32>
    %4 = arith.divf %2, %3 : vector<32x1xf32>
    %5 = vector.broadcast %4 : vector<32x1xf32> to vector<32x32xf32>
    %6 = arith.subf %0, %5 : vector<32x32xf32>
    %7 = arith.mulf %6, %6 : vector<32x32xf32>
    %cst_2 = arith.constant dense<0.000000e+00> : vector<32xf32>
    %8 = vector.multi_reduction <add>, %7, %cst_2 [1] : vector<32x32xf32> to vector<32xf32>
    %9 = vector.shape_cast %8 : vector<32xf32> to vector<32x1xf32>
    %cst_3 = arith.constant 3.200000e+01 : f32
    %10 = vector.broadcast %cst_3 : f32 to vector<32x1xf32>
    %11 = arith.divf %9, %10 : vector<32x1xf32>
    %12 = vector.broadcast %4 : vector<32x1xf32> to vector<32x32xf32>
    %13 = arith.subf %0, %12 : vector<32x32xf32>
    %cst_4 = arith.constant 9.99999974E-6 : f32
    %14 = vector.broadcast %cst_4 : f32 to vector<32x1xf32>
    %15 = arith.addf %11, %14 : vector<32x1xf32>
    %16 = math.rsqrt %15 : vector<32x1xf32>
    %17 = vector.broadcast %16 : vector<32x1xf32> to vector<32x32xf32>
    %18 = arith.mulf %13, %17 : vector<32x32xf32>
    %c0_5 = arith.constant 0 : index
    %c0_6 = arith.constant 0 : index
    %19 = vector.load %arg2[%c0_5, %c0_6] : memref<1x32xf32, #tpu.memory_space<vmem>>, vector<1x32xf32>
    %20 = vector.broadcast %19 : vector<1x32xf32> to vector<32x32xf32>
    %21 = arith.mulf %18, %20 : vector<32x32xf32>
    %c0_7 = arith.constant 0 : index
    %c0_8 = arith.constant 0 : index
    %22 = vector.load %arg3[%c0_7, %c0_8] : memref<1x32xf32, #tpu.memory_space<vmem>>, vector<1x32xf32>
    %23 = vector.broadcast %22 : vector<1x32xf32> to vector<32x32xf32>
    %24 = arith.addf %21, %23 : vector<32x32xf32>
    %c0_9 = arith.constant 0 : index
    %c0_10 = arith.constant 0 : index
    %25 = vector.load %arg4[%c0_9, %c0_10] : memref<32x384xf32, #tpu.memory_space<vmem>>, vector<32x384xf32>
    %cst_11 = arith.constant dense<0.000000e+00> : vector<32x384xf32>
    %26 = tpu.matmul %24, %25, %cst_11 {dimension_numbers = #tpu.dot_dimension_numbers<[1], [0], [0], [1], [0, 0, 1, 1], [], []>} : vector<32x32xf32>, vector<32x384xf32>, vector<32x384xf32> -> vector<32x384xf32>
    %c0_12 = arith.constant 0 : index
    %c0_13 = arith.constant 0 : index
    %27 = vector.load %arg5[%c0_12, %c0_13] : memref<1x384xf32, #tpu.memory_space<vmem>>, vector<1x384xf32>
    %28 = vector.broadcast %27 : vector<1x384xf32> to vector<32x384xf32>
    %29 = arith.addf %26, %28 : vector<32x384xf32>
    %c0_14 = arith.constant 0 : index
    %c0_15 = arith.constant 0 : index
    %30 = vector.load %arg6[%c0_14, %c0_15] : memref<32x384xf32, #tpu.memory_space<vmem>>, vector<32x384xf32>
    tpu.vector_store %arg6[%c0_14, %c0_15], %29 {strides = array<i32>} : memref<32x384xf32, #tpu.memory_space<vmem>>, vector<32x384xf32>,
    return
  }
  func.func @transform_0(%arg0: i32) -> (i32, i32) {
    %c0_i32 = arith.constant 0 : i32
    %c0_i32_0 = arith.constant 0 : i32
    return %arg0, %c0_i32 : i32, i32
  }
  func.func @transform_1(%arg0: i32) -> (i32, i32) {
    %c0_i32 = arith.constant 0 : i32
    %c0_i32_0 = arith.constant 0 : i32
    %c0_i32_1 = arith.constant 0 : i32
    return %c0_i32, %c0_i32_0 : i32, i32
  }
  func.func @transform_2(%arg0: i32) -> (i32, i32) {
    %c0_i32 = arith.constant 0 : i32
    %c0_i32_0 = arith.constant 0 : i32
    %c0_i32_1 = arith.constant 0 : i32
    return %c0_i32, %c0_i32_0 : i32, i32
  }
  func.func @transform_3(%arg0: i32) -> (i32, i32) {
    %c0_i32 = arith.constant 0 : i32
    %c0_i32_0 = arith.constant 0 : i32
    %c0_i32_1 = arith.constant 0 : i32
    return %c0_i32, %c0_i32_0 : i32, i32
  }
  func.func @transform_4(%arg0: i32) -> (i32, i32) {
    %c0_i32 = arith.constant 0 : i32
    %c0_i32_0 = arith.constant 0 : i32
    %c0_i32_1 = arith.constant 0 : i32
    return %c0_i32, %c0_i32_0 : i32, i32
  }
  func.func @transform_5(%arg0: i32) -> (i32, i32) {
    %c0_i32 = arith.constant 0 : i32
    %c0_i32_0 = arith.constant 0 : i32
    return %arg0, %c0_i32 : i32, i32
  }
}

</mosaic_0001>

<bundles_post_ra>
// kernel: nystromformer_forward.13
= control target key start
LH: loop header
LB: loop body
LE: loop exit
PB: predicated region body
PF: predicated region fallthrough
CT: control target
= control target key end

     0   :  { %vm24_vm0 = vcmask 261120   ;;  %s396_s0 = inlined_call_operand.vmem [shape: f32[32,32], index: 0, kind: input, shape index: {}]   ;;  %s397_s3 = inlined_call_operand.vmem [shape: f32[32,128], index: 3, kind: input, shape index: {}]   ;;  %s398_s1 = inlined_call_operand.vmem [shape: f32[1,32], index: 1, kind: input, shape index: {}]   ;;  %s399_s2 = inlined_call_operand.vmem [shape: f32[1,32], index: 2, kind: input, shape index: {}]   ;;  %s400_s4 = inlined_call_operand.vmem [shape: f32[1,128], index: 4, kind: input, shape index: {}]   ;;  %s401_s5 = inlined_call_operand.vmem [shape: f32[32,128], index: 5, kind: output, shape index: {}]  }
   0x1   :  { %v20_v0 = vld [vmem:[%s396_s0] sm:$0xff]  ;;  %v21_v1 = vld [vmem:[%s396_s0 + $0x8] sm:$0xff]  ;;  %v22_v2 = vld [vmem:[%s396_s0 + $0x10] sm:$0xff] }
   0x2   :  { %v25_v3 = vsel %vm24_vm0, %v20_v0, 0.0  ;;  %v28_v4 = vsel %vm24_vm0, %v21_v1, 0.0  ;;  %v23_v5 = vld [vmem:[%s396_s0 + $0x18] sm:$0xff]  ;;  %v31_v6 = vsel %vm24_vm0, %v22_v2, 0.0  ;;  %v100_v28 = vld [vmem:[%s397_s3] sm:$0xff]  ;;  %v101_v29 = vld [vmem:[%s397_s3 + $0x8] sm:$0xff] }
   0x3   :  { %26 = vadd.xlane.f32.xlu0 %v25_v3  ;;  %29 = vadd.xlane.f32.xlu1 %v28_v4  ;;  %v34_v7 = vsel %vm24_vm0, %v23_v5, 0.0  ;;  %v102_v30 = vld [vmem:[%s397_s3 + $0x10] sm:$0xff]  ;;  %v281_v31 = vpack.c.bf16 %v101_v29, %v100_v28  ;;  %v103_v32 = vld [vmem:[%s397_s3 + $0x18] sm:$0xff]  ;;  %v252_v47 = vld [vmem:[%s398_s1] ss:$0 sm:$0xff] }
   0x4   :  { %v285_v33 = vpack.c.bf16 %v103_v32, %v102_v30  ;;  %v253_v49 = vld [vmem:[%s399_s2] ss:$0 sm:$0xff] }
   0x5   :  { %282 = vmatprep.subr.bf16.mxu0 %v281_v31  ;;  %289 = vmatprep.subr.bf16.mxu1 %v281_v31 }
   0x6   :  { %284 = vmatpush3.bf16.msra.mxu0 %v281_v31  ;;  %291 = vmatpush3.bf16.msra.mxu1 %v281_v31 }
   0x7   :  { %32 = vadd.xlane.f32.xlu0 %v31_v6  ;;  %35 = vadd.xlane.f32.xlu1 %v34_v7 }
   0x8   :  { %286 = vmatprep.subr.bf16.mxu0 %v285_v33  ;;  %290 = vmatprep.subr.bf16.mxu1 %v285_v33 }
   0xa   :  { %288 = vmatpush3.bf16.msra.mxu0 %v285_v33  ;;  %292 = vmatpush3.bf16.msra.mxu1 %v285_v33 }
  0x90   :  { %v27_v8 = vpop.xlane.xlu0 %26  ;;  %v30_v9 = vpop.xlane.xlu1 %29 }
  0x91   :  { %v38_v10 = vmul.f32 0.03125, %v27_v8  ;;  %v39_v11 = vmul.f32 0.03125, %v30_v9 }
  0x93   :  { %v42_v12 = vsub.f32 %v20_v0, %v38_v10  ;;  %v43_v13 = vsub.f32 %v21_v1, %v39_v11  ;;  %v254_v0 = vld [vmem:[%s400_s4] ss:$0 sm:$0xff] }
  0x94   :  { %v33_v14 = vpop.xlane.xlu0 %32  ;;  %v36_v15 = vpop.xlane.xlu1 %35 }
  0x95   :  { %v40_v16 = vmul.f32 0.03125, %v33_v14  ;;  %v41_v17 = vmul.f32 0.03125, %v36_v15  ;;  %v46_v18 = vmul.f32 %v42_v12, %v42_v12  ;;  %v47_v19 = vmul.f32 %v43_v13, %v43_v13 }
  0x97   :  { %v44_v20 = vsub.f32 %v22_v2, %v40_v16  ;;  %v45_v21 = vsub.f32 %v23_v5, %v41_v17  ;;  %v50_v22 = vsel %vm24_vm0, %v46_v18, 0.0  ;;  %v53_v23 = vsel %vm24_vm0, %v47_v19, 0.0 }
  0x98   :  { %51 = vadd.xlane.f32.xlu0 %v50_v22 }
  0x99   :  { %v48_v24 = vmul.f32 %v44_v20, %v44_v20  ;;  %v49_v25 = vmul.f32 %v45_v21, %v45_v21 }
  0x9b   :  { %v56_v26 = vsel %vm24_vm0, %v48_v24, 0.0  ;;  %v59_v27 = vsel %vm24_vm0, %v49_v25, 0.0 }
  0x9c   :  { %54 = vadd.xlane.f32.xlu0 %v53_v23  ;;  %57 = vadd.xlane.f32.xlu1 %v56_v26 }
  0xa0   :  { %60 = vadd.xlane.f32.xlu1 %v59_v27 }
 0x125   :  { %v52_v34 = vpop.xlane.xlu0 %51 }
 0x126   :  { %v62_v35 = vmul.f32 0.03125, %v52_v34 }
 0x128   :  { %v66_v36 = vadd.f32 1e-05, %v62_v35 }
 0x129   :  { %v58_v37 = vpop.xlane.xlu1 %57  ;;  %v55_v38 = vpop.xlane.xlu0 %54 }
 0x12a   :  { %293 = vrsqrt.f32 %v66_v36  ;;  %v64_v39 = vmul.f32 0.03125, %v58_v37  ;;  %v63_v40 = vmul.f32 0.03125, %v55_v38 }
 0x12c   :  { %v68_v41 = vadd.f32 1e-05, %v64_v39  ;;  %v67_v42 = vadd.f32 1e-05, %v63_v40 }
 0x12d   :  { %v61_v43 = vpop.xlane.xlu1 %60 }
 0x12e   :  { %295 = vrsqrt.f32 %v68_v41  ;;  %v65_v44 = vmul.f32 0.03125, %v61_v43 }
 0x12f   :  { %297 = vrsqrt.f32 %v67_v42 }
 0x130   :  { %v69_v45 = vadd.f32 1e-05, %v65_v44 }
 0x132   :  { %299 = vrsqrt.f32 %v69_v45 }
 0x134   :  { %v294_v46 = vpop.eup %293 }
 0x135   :  { %v74_v48 = vmul.f32 %v294_v46, %v42_v12 }
 0x137   :  { %v85_v50 = vmul.f32 %v252_v47, %v74_v48 }
 0x138   :  { %v296_v51 = vpop.eup %295 }
 0x139   :  { %v298_v52 = vpop.eup %297  ;;  %v96_v53 = vadd.f32 %v253_v49, %v85_v50  ;;  %v76_v54 = vmul.f32 %v296_v51, %v44_v20 }
 0x13a   :  { %v75_v55 = vmul.f32 %v298_v52, %v43_v13 }
 0x13b   :  { %275 = vmatprep.mubr.msk.f32.mxu0 %vm24_vm0, %v96_v53  ;;  %v87_v56 = vmul.f32 %v252_v47, %v76_v54 }
 0x13c   :  { %v300_v57 = vpop.eup %299  ;;  %v86_v58 = vmul.f32 %v252_v47, %v75_v55 }
 0x13d   :  { %v98_v59 = vadd.f32 %v253_v49, %v87_v56  ;;  %v77_v60 = vmul.f32 %v300_v57, %v45_v21 }
 0x13e   :  { %v97_v61 = vadd.f32 %v253_v49, %v86_v58 }
 0x13f   :  { %278 = vmatprep.mubr.msk.f32.mxu1 %vm24_vm0, %v98_v59  ;;  %v88_v62 = vmul.f32 %v252_v47, %v77_v60 }
 0x140   :  { %276 = vmatmul.mubr.msk.f32.vlgmr.msra.gmra.mrb[0].mxu0 %vm24_vm0, %v97_v61 }
 0x141   :  { %v99_v63 = vadd.f32 %v253_v49, %v88_v62 }
 0x143   :  { %279 = vmatmul.mubr.msk.f32.vlgmr.msra.gmra.mrb[0].mxu1 %vm24_vm0, %v99_v63 }
 0x213   :  { %v277_v1 = vpop.f32.mrb[0].mxu0 }
 0x214   :  { %v195_v2 = vadd.f32 %v277_v1, %v254_v0  ;;  %v189_v3 = vpop.f32.mrb[1].mxu0 }
 0x215   :  { %v190_v4 = vadd.f32 %v254_v0, %v189_v3 }
 0x216   :  { %v209_v5 = vmul.f32 %v195_v2, %v195_v2  ;;  %v280_v6 = vpop.f32.mrb[0].mxu1 }
 0x217   :  { %v208_v7 = vmul.f32 %v190_v4, %v190_v4  ;;  %v205_v8 = vadd.f32 %v280_v6, %v254_v0  ;;  %v199_v9 = vpop.f32.mrb[1].mxu1 }
 0x218   :  { %v213_v10 = vmul.f32 %v209_v5, %v195_v2  ;;  %v200_v11 = vadd.f32 %v254_v0, %v199_v9 }
 0x219   :  { %v212_v12 = vmul.f32 %v208_v7, %v190_v4  ;;  %v211_v13 = vmul.f32 %v205_v8, %v205_v8 }
 0x21a   :  { %v217_v14 = vmul.f32 0.044715, %v213_v10  ;;  %v210_v15 = vmul.f32 %v200_v11, %v200_v11 }
 0x21b   :  { %v216_v16 = vmul.f32 0.044715, %v212_v12  ;;  %v215_v17 = vmul.f32 %v211_v13, %v205_v8 }
 0x21c   :  { %v221_v18 = vadd.f32 %v217_v14, %v195_v2  ;;  %v214_v19 = vmul.f32 %v210_v15, %v200_v11 }
 0x21d   :  { %v220_v20 = vadd.f32 %v216_v16, %v190_v4  ;;  %v219_v21 = vmul.f32 0.044715, %v215_v17 }
 0x21e   :  { %v225_v22 = vmul.f32 0.7978846, %v221_v18  ;;  %v218_v23 = vmul.f32 0.044715, %v214_v19 }
 0x21f   :  { %v224_v24 = vmul.f32 0.7978846, %v220_v20  ;;  %v223_v25 = vadd.f32 %v219_v21, %v205_v8 }
 0x220   :  { %301 = vtanh.f32 %v225_v22  ;;  %v222_v26 = vadd.f32 %v218_v23, %v200_v11 }
 0x221   :  { %303 = vtanh.f32 %v224_v24  ;;  %v227_v27 = vmul.f32 0.7978846, %v223_v25 }
 0x222   :  { %v226_v28 = vmul.f32 0.7978846, %v222_v26 }
 0x223   :  { %305 = vtanh.f32 %v227_v27 }
 0x224   :  { %307 = vtanh.f32 %v226_v28 }
 0x22a   :  { %v302_v29 = vpop.eup %301 }
 0x22b   :  { %v304_v30 = vpop.eup %303  ;;  %v233_v31 = vadd.f32 1.0, %v302_v29 }
 0x22c   :  { %v232_v32 = vadd.f32 1.0, %v304_v30 }
 0x22d   :  { %v306_v33 = vpop.eup %305  ;;  %v237_v34 = vmul.f32 0.5, %v233_v31 }
 0x22e   :  { %v308_v35 = vpop.eup %307  ;;  %v236_v36 = vmul.f32 0.5, %v232_v32  ;;  %v235_v37 = vadd.f32 1.0, %v306_v33 }
 0x22f   :  { %v241_v38 = vmul.f32 %v237_v34, %v195_v2  ;;  %v234_v39 = vadd.f32 1.0, %v308_v35 }
 0x230   :  { %v240_v40 = vmul.f32 %v236_v36, %v190_v4  ;;  %v239_v41 = vmul.f32 0.5, %v235_v37 }
 0x231   :  { %245 = vst [vmem:[%s401_s5 + $0x8] sm:$0xff] %v241_v38  ;;  %v238_v42 = vmul.f32 0.5, %v234_v39 }
 0x232   :  { %244 = vst [vmem:[%s401_s5] sm:$0xff] %v240_v40  ;;  %v243_v43 = vmul.f32 %v239_v41, %v205_v8 }
 0x233   :  { %v242_v44 = vmul.f32 %v238_v42, %v200_v11 }
 0x234   :  { %247 = vst [vmem:[%s401_s5 + $0x18] sm:$0xff] %v243_v43 }
 0x235   :  { %246 = vst [vmem:[%s401_s5 + $0x10] sm:$0xff] %v242_v44 }

// kernel: nystromformer_forward.12
= control target key start
LH: loop header
LB: loop body
LE: loop exit
PB: predicated region body
PF: predicated region fallthrough
CT: control target
= control target key end

     0   :  { %vm126_vm0 = vcmask 261120   ;;  %s337_s1 = inlined_call_operand.vmem [shape: f32[128,32], index: 1, kind: input, shape index: {}]   ;;  %s338_s0 = inlined_call_operand.vmem [shape: f32[32,128], index: 0, kind: input, shape index: {}]   ;;  %s339_s2 = inlined_call_operand.vmem [shape: f32[1,32], index: 2, kind: input, shape index: {}]   ;;  %s340_s3 = inlined_call_operand.vmem [shape: f32[32,32], index: 3, kind: output, shape index: {}]  }
   0x1   :  { %v18_v0 = vld [vmem:[%s337_s1] sm:$0xff]  ;;  %v19_v1 = vld [vmem:[%s337_s1 + $0x8] sm:$0xff]  ;;  %v20_v2 = vld [vmem:[%s337_s1 + $0x10] sm:$0xff] }
   0x2   :  { %v194_v3 = vpack.c.bf16 %v19_v1, %v18_v0  ;;  %v21_v4 = vld [vmem:[%s337_s1 + $0x18] sm:$0xff]  ;;  %v22_v6 = vld [vmem:[%s337_s1 + $0x20] sm:$0xff]  ;;  %v23_v7 = vld [vmem:[%s337_s1 + $0x28] sm:$0xff] }
   0x3   :  { %v198_v5 = vpack.c.bf16 %v21_v4, %v20_v2  ;;  %v202_v8 = vpack.c.bf16 %v23_v7, %v22_v6  ;;  %v14_v9 = vld [vmem:[%s338_s0] sm:$0xff]  ;;  %v16_v10 = vld [vmem:[%s338_s0 + $0x10] sm:$0xff]  ;;  %v25_v12 = vld [vmem:[%s337_s1 + $0x38] sm:$0xff] }
   0x4   :  { %195 = vmatprep.subr.bf16.mxu0 %v194_v3  ;;  %226 = vmatprep.subr.bf16.mxu1 %v194_v3  ;;  %v24_v11 = vld [vmem:[%s337_s1 + $0x30] sm:$0xff]  ;;  %v26_v14 = vld [vmem:[%s337_s1 + $0x40] sm:$0xff]  ;;  %v27_v15 = vld [vmem:[%s337_s1 + $0x48] sm:$0xff] }
   0x5   :  { %197 = vmatpush3.bf16.msra.mxu0 %v194_v3  ;;  %234 = vmatpush3.bf16.msra.mxu1 %v194_v3  ;;  %v206_v13 = vpack.c.bf16 %v25_v12, %v24_v11  ;;  %v210_v16 = vpack.c.bf16 %v27_v15, %v26_v14  ;;  %v28_v17 = vld [vmem:[%s337_s1 + $0x50] sm:$0xff]  ;;  %v29_v18 = vld [vmem:[%s337_s1 + $0x58] sm:$0xff]  ;;  %v30_v20 = vld [vmem:[%s337_s1 + $0x60] sm:$0xff] }
   0x6   :  { %199 = vmatprep.subr.bf16.mxu0 %v198_v5  ;;  %227 = vmatprep.subr.bf16.mxu1 %v198_v5  ;;  %v214_v19 = vpack.c.bf16 %v29_v18, %v28_v17  ;;  %v31_v21 = vld [vmem:[%s337_s1 + $0x68] sm:$0xff]  ;;  %v32_v23 = vld [vmem:[%s337_s1 + $0x70] sm:$0xff]  ;;  %v33_v24 = vld [vmem:[%s337_s1 + $0x78] sm:$0xff] }
   0x7   :  { %188 = vmatprep.mubr.f32.mxu0 %v14_v9  ;;  %191 = vmatprep.mubr.f32.mxu1 %v16_v10  ;;  %v218_v22 = vpack.c.bf16 %v31_v21, %v30_v20  ;;  %v222_v25 = vpack.c.bf16 %v33_v24, %v32_v23  ;;  %v15_v26 = vld [vmem:[%s338_s0 + $0x8] sm:$0xff]  ;;  %v17_v27 = vld [vmem:[%s338_s0 + $0x18] sm:$0xff]  ;;  %v135_v28 = vld [vmem:[%s339_s2] ss:$0 sm:$0xff] }
   0x9   :  { %201 = vmatpush3.bf16.msra.mxu0 %v198_v5  ;;  %235 = vmatpush3.bf16.msra.mxu1 %v198_v5 }
   0xa   :  { %203 = vmatprep.subr.bf16.mxu0 %v202_v8  ;;  %228 = vmatprep.subr.bf16.mxu1 %v202_v8 }
   0xd   :  { %205 = vmatpush3.bf16.msra.mxu0 %v202_v8  ;;  %236 = vmatpush3.bf16.msra.mxu1 %v202_v8 }
   0xe   :  { %207 = vmatprep.subr.bf16.mxu0 %v206_v13  ;;  %229 = vmatprep.subr.bf16.mxu1 %v206_v13 }
  0x11   :  { %209 = vmatpush3.bf16.msra.mxu0 %v206_v13  ;;  %237 = vmatpush3.bf16.msra.mxu1 %v206_v13 }
  0x12   :  { %211 = vmatprep.subr.bf16.mxu0 %v210_v16  ;;  %230 = vmatprep.subr.bf16.mxu1 %v210_v16 }
  0x15   :  { %213 = vmatpush3.bf16.msra.mxu0 %v210_v16  ;;  %238 = vmatpush3.bf16.msra.mxu1 %v210_v16 }
  0x16   :  { %215 = vmatprep.subr.bf16.mxu0 %v214_v19  ;;  %231 = vmatprep.subr.bf16.mxu1 %v214_v19 }
  0x19   :  { %217 = vmatpush3.bf16.msra.mxu0 %v214_v19  ;;  %239 = vmatpush3.bf16.msra.mxu1 %v214_v19 }
  0x1a   :  { %219 = vmatprep.subr.bf16.mxu0 %v218_v22  ;;  %232 = vmatprep.subr.bf16.mxu1 %v218_v22 }
  0x1d   :  { %221 = vmatpush3.bf16.msra.mxu0 %v218_v22  ;;  %240 = vmatpush3.bf16.msra.mxu1 %v218_v22 }
  0x1e   :  { %223 = vmatprep.subr.bf16.mxu0 %v222_v25  ;;  %233 = vmatprep.subr.bf16.mxu1 %v222_v25 }
  0x21   :  { %225 = vmatpush3.bf16.msra.mxu0 %v222_v25  ;;  %241 = vmatpush3.bf16.msra.mxu1 %v222_v25 }
  0x24   :  { %189 = vmatmul.mubr.f32.vlgmr.msra.gmra.mrb[0].mxu0 %v15_v26  ;;  %192 = vmatmul.mubr.f32.vlgmr.msra.gmra.mrb[0].mxu1 %v17_v27 }
  0xf7   :  { %v190_v29 = vpop.f32.mrb[0].mxu0  ;;  %v193_v30 = vpop.f32.mrb[0].mxu1 }
  0xf8   :  { %v113_v31 = vadd.f32 %v190_v29, %v135_v28  ;;  %v123_v32 = vadd.f32 %v193_v30, %v135_v28  ;;  %v107_v33 = vpop.f32.mrb[1].mxu0  ;;  %v117_v34 = vpop.f32.mrb[1].mxu1 }
  0xf9   :  { %v108_v35 = vadd.f32 %v135_v28, %v107_v33  ;;  %v118_v36 = vadd.f32 %v135_v28, %v117_v34 }
  0xfa   :  { %128 = vst.msk [vmem:[%s340_s3 + $0x8] sm:$0xff] %vm126_vm0, %v113_v31  ;;  %130 = vst.msk [vmem:[%s340_s3 + $0x18] sm:$0xff] %vm126_vm0, %v123_v32 }
  0xfb   :  { %127 = vst.msk [vmem:[%s340_s3] sm:$0xff] %vm126_vm0, %v108_v35  ;;  %129 = vst.msk [vmem:[%s340_s3 + $0x10] sm:$0xff] %vm126_vm0, %v118_v36 }

// kernel: nystromformer_forward.10
= control target key start
LH: loop header
LB: loop body
LE: loop exit
PB: predicated region body
PF: predicated region fallthrough
CT: control target
= control target key end

     0   :  { %10 = vsyncpa [#allocation3], 0  ;;  %s430_s18 = smov [#allocation2]   ;;  %s569_s0 = inlined_call_operand.vmem [shape: f32[32,32], index: 0, kind: input, shape index: {}]   ;;  %s570_s1 = inlined_call_operand.vmem [shape: f32[1,32], index: 1, kind: input, shape index: {}]   ;;  %s571_s2 = inlined_call_operand.vmem [shape: f32[1,32], index: 2, kind: input, shape index: {}]   ;;  %s572_s3 = inlined_call_operand.hbm [shape: f32[32,384], index: 3, kind: input, shape index: {}]   ;;  %s573_s4 = inlined_call_operand.vmem [shape: f32[1,384], index: 4, kind: input, shape index: {}]   ;;  %s574_s5 = inlined_call_operand.vmem [shape: f32[32,384], index: 5, kind: output, shape index: {}]  }
   0x1   :  { %s22_s19 = sshll.u32 %s430_s18, 4  ;;  %s406_s22 = scalar_lea.hbm %s572_s3, 1536  ;;  %s23_s19 = int_to_ptr.vmem [resolvable:$true] %s22_s19 }
   0x2   :  { %p407_p0 = scmp.ne.s32.totalorder %s572_s3, %s406_s22  ;;  %p410_p1 = scmp.lt.u32.totalorder %s406_s22, %s572_s3 }
   0x4   :  { %p412_p2 = pnand %p410_p1, %p407_p0 }
   0x6   :  { %415 = shalt.err (!%p412_p2)
}
   0x7   :  { %s416_s27 = scalar_lea.vmem %s23_s19, 1536  ;;  %p421_p4 = scmp.lt.s32.totalorder %s23_s19, %s23_s19 }
   0x8   :  { %p417_p3 = scmp.ne.s32.totalorder %s23_s19, %s416_s27  ;;  %p422_p5 = scmp.lt.s32.totalorder %s416_s27, %s416_s27 }
   0xa   :  { %p423_p6 = por %p422_p5, %p421_p4 }
   0xc   :  { %p424_p7 = pnand %p423_p6, %p417_p3 }
   0xe   :  { %427 = shalt.err (!%p424_p7)
}
   0xf   :  { %s431_s28 = smov 384   ;;  %s432_s29 = smov 24  }
  0x10   :  { %28 = dma.hbm_to_vmem [thread:$0]  %s572_s3, 1536, %s23_s19, [#allocation3], %s431_s28, %s431_s28, %s432_s29  }
  0x11   :  { %428 = dma.done.wait [#allocation3], 1536  }
  0x12   :  { %429 = vsyncadd [#allocation3], 4294965760  ;;  %vm38_vm0 = vcmask 261120   ;;  %v34_v0 = vld [vmem:[%s569_s0] sm:$0xff]  ;;  %v36_v1 = vld [vmem:[%s569_s0 + $0x10] sm:$0xff]  ;;  %v433_v38 = vmov 0.0  }
  0x13   :  { %v35_v2 = vld [vmem:[%s569_s0 + $0x8] sm:$0xff]  ;;  %v39_v3 = vsel %vm38_vm0, %v34_v0, 0.0  ;;  %v45_v4 = vsel %vm38_vm0, %v36_v1, 0.0  ;;  %v37_v5 = vld [vmem:[%s569_s0 + $0x18] sm:$0xff]  ;;  %v118_v29 = vld [vmem:[#allocation2 + $0x20] sm:$0xff]  ;;  %219 = vmatprep.mubr.f32.mxu0 %v433_v38 }
  0x14   :  { %40 = vadd.xlane.f32.xlu0 %v39_v3  ;;  %46 = vadd.xlane.f32.xlu1 %v45_v4  ;;  %v42_v6 = vsel %vm38_vm0, %v35_v2, 0.0  ;;  %v48_v7 = vsel %vm38_vm0, %v37_v5, 0.0  ;;  %v115_v28 = vld [vmem:[#allocation2 + $0x8] sm:$0xff]  ;;  %v114_v31 = vld [vmem:[#allocation2] sm:$0xff]  ;;  %v117_v32 = vld [vmem:[#allocation2 + $0x18] sm:$0xff] }
  0x15   :  { %v378_v30 = vpack.c.bf16 %v118_v29, %v115_v28  ;;  %v121_v33 = vld [vmem:[#allocation2 + $0x38] sm:$0xff]  ;;  %v380_v34 = vpack.c.bf16 %v117_v32, %v114_v31  ;;  %v124_v35 = vld [vmem:[#allocation2 + $0x50] sm:$0xff]  ;;  %v119_v37 = vld [vmem:[#allocation2 + $0x28] sm:$0xff] }
  0x16   :  { %v116_v36 = vld [vmem:[#allocation2 + $0x10] sm:$0xff]  ;;  %v382_v39 = vpack.c.bf16 %v124_v35, %v121_v33  ;;  %v123_v42 = vld [vmem:[#allocation2 + $0x48] sm:$0xff]  ;;  %v122_v44 = vld [vmem:[#allocation2 + $0x40] sm:$0xff] }
  0x17   :  { %379 = vmatprep.subr.bf16.mxu0 %v378_v30  ;;  %v386_v40 = vpack.c.bf16 %v119_v37, %v116_v36  ;;  %v120_v41 = vld [vmem:[#allocation2 + $0x30] sm:$0xff]  ;;  %v125_v45 = vld [vmem:[#allocation2 + $0x58] sm:$0xff]  ;;  %v346_v60 = vld [vmem:[%s570_s1] ss:$0 sm:$0xff] }
  0x18   :  { %43 = vadd.xlane.f32.xlu0 %v42_v6  ;;  %49 = vadd.xlane.f32.xlu1 %v48_v7  ;;  %v384_v43 = vpack.c.bf16 %v123_v42, %v120_v41  ;;  %v390_v46 = vpack.c.bf16 %v125_v45, %v122_v44  ;;  %v347_v62 = vld [vmem:[%s571_s2] ss:$0 sm:$0xff] }
  0x19   :  { %381 = vmatpush1.bf16.msra.mxu0 %v380_v34  ;;  %387 = vmatprep.subr.bf16.mxu1 %v386_v40 }
  0x1a   :  { %383 = vmatprep.subr.bf16.mxu0 %v382_v39  ;;  %389 = vmatpush3.bf16.msra.mxu1 %v386_v40 }
  0x1b   :  { %391 = vmatprep.subr.bf16.mxu1 %v390_v46 }
  0x1d   :  { %385 = vmatpush1.bf16.msra.mxu0 %v384_v43 }
  0x1e   :  { %393 = vmatpush3.bf16.msra.mxu1 %v390_v46 }
  0xa1   :  { %v41_v8 = vpop.xlane.xlu0 %40  ;;  %v47_v9 = vpop.xlane.xlu1 %46 }
  0xa2   :  { %v52_v10 = vmul.f32 0.03125, %v41_v8  ;;  %v54_v11 = vmul.f32 0.03125, %v47_v9 }
  0xa4   :  { %v492_v12 = vsub.f32 %v34_v0, %v52_v10  ;;  %v494_v13 = vsub.f32 %v36_v1, %v54_v11 }
  0xa5   :  { %v44_v14 = vpop.xlane.xlu0 %43  ;;  %v50_v15 = vpop.xlane.xlu1 %49 }
  0xa6   :  { %v53_v16 = vmul.f32 0.03125, %v44_v14  ;;  %v55_v17 = vmul.f32 0.03125, %v50_v15  ;;  %v60_v18 = vmul.f32 %v492_v12, %v492_v12  ;;  %v62_v19 = vmul.f32 %v494_v13, %v494_v13 }
  0xa8   :  { %v500_v20 = vsub.f32 %v35_v2, %v53_v16  ;;  %v502_v21 = vsub.f32 %v37_v5, %v55_v17  ;;  %v64_v22 = vsel %vm38_vm0, %v60_v18, 0.0  ;;  %v70_v23 = vsel %vm38_vm0, %v62_v19, 0.0  ;;  %v126_v16 = vld [vmem:[%s573_s4] sm:$0x7] }
  0xa9   :  { %65 = vadd.xlane.f32.xlu0 %v64_v22 }
  0xaa   :  { %v61_v24 = vmul.f32 %v500_v20, %v500_v20  ;;  %v63_v25 = vmul.f32 %v502_v21, %v502_v21 }
  0xac   :  { %v67_v26 = vsel %vm38_vm0, %v61_v24, 0.0  ;;  %v73_v27 = vsel %vm38_vm0, %v63_v25, 0.0 }
  0xad   :  { %71 = vadd.xlane.f32.xlu0 %v70_v23  ;;  %68 = vadd.xlane.f32.xlu1 %v67_v26 }
  0xb1   :  { %74 = vadd.xlane.f32.xlu1 %v73_v27 }
 0x136   :  { %v66_v47 = vpop.xlane.xlu0 %65 }
 0x137   :  { %v76_v48 = vmul.f32 0.03125, %v66_v47 }
 0x139   :  { %v80_v49 = vadd.f32 1e-05, %v76_v48 }
 0x13a   :  { %v69_v50 = vpop.xlane.xlu1 %68  ;;  %v72_v51 = vpop.xlane.xlu0 %71 }
 0x13b   :  { %398 = vrsqrt.f32 %v80_v49  ;;  %v77_v52 = vmul.f32 0.03125, %v69_v50  ;;  %v78_v53 = vmul.f32 0.03125, %v72_v51 }
 0x13d   :  { %v81_v54 = vadd.f32 1e-05, %v77_v52  ;;  %v82_v55 = vadd.f32 1e-05, %v78_v53 }
 0x13e   :  { %v75_v56 = vpop.xlane.xlu1 %74 }
 0x13f   :  { %400 = vrsqrt.f32 %v81_v54  ;;  %v79_v57 = vmul.f32 0.03125, %v75_v56 }
 0x140   :  { %402 = vrsqrt.f32 %v82_v55 }
 0x141   :  { %v83_v58 = vadd.f32 1e-05, %v79_v57 }
 0x143   :  { %404 = vrsqrt.f32 %v83_v58 }
 0x145   :  { %v399_v59 = vpop.eup %398 }
 0x146   :  { %v88_v61 = vmul.f32 %v399_v59, %v492_v12 }
 0x148   :  { %v99_v63 = vmul.f32 %v346_v60, %v88_v61 }
 0x149   :  { %v401_v0 = vpop.eup %400 }
 0x14a   :  { %v403_v1 = vpop.eup %402  ;;  %v110_v2 = vadd.f32 %v347_v62, %v99_v63  ;;  %v89_v3 = vmul.f32 %v401_v0, %v500_v20 }
 0x14b   :  { %v90_v4 = vmul.f32 %v403_v1, %v494_v13  ;;  %v128_v13 = vlaneseq }
 0x14c   :  { %348 = vmatmul.mubr.msk.f32.vlgmr.msra.gmra.mrb[0].mxu0 %vm38_vm0, %v110_v2  ;;  %372 = vmatprep.mubr.msk.f32.mxu1 %vm38_vm0, %v110_v2  ;;  %v100_v5 = vmul.f32 %v346_v60, %v89_v3 }
 0x14d   :  { %v405_v6 = vpop.eup %404  ;;  %225 = vmatprep.mubr.f32.mxu0 %v433_v38  ;;  %v101_v7 = vmul.f32 %v346_v60, %v90_v4  ;;  %v129_v14 = vshrl.u32 %v128_v13, 7 }
 0x14e   :  { %v111_v8 = vadd.f32 %v347_v62, %v100_v5  ;;  %v91_v9 = vmul.f32 %v405_v6, %v502_v21 }
 0x14f   :  { %v112_v10 = vadd.f32 %v347_v62, %v101_v7  ;;  %v130_v15 = vsub.s32 0, %v129_v14  ;;  %v134_v17 = vsub.s32 1, %v129_v14  ;;  %v138_v19 = vsub.s32 2, %v129_v14 }
 0x150   :  { %349 = vmatmul.mubr.msk.f32.gmra.mrb[2].mxu0 %vm38_vm0, %v111_v8  ;;  %373 = vmatmul.mubr.msk.f32.vlgmr.msra.gmra.mrb[0].mxu1 %vm38_vm0, %v111_v8  ;;  %v102_v11 = vmul.f32 %v346_v60, %v91_v9 }
 0x151   :  { %375 = vmatprep.mubr.msk.f32.mxu1 %vm38_vm0, %v112_v10  ;;  %231 = vmatprep.mubr.f32.mxu0 %v433_v38  ;;  %v131_v18 = vrot.slane %v126_v16, %v130_v15  ;;  %v135_v20 = vrot.slane %v126_v16, %v134_v17  ;;  %v139_v24 = vrot.slane %v126_v16, %v138_v19 }
 0x152   :  { %v113_v12 = vadd.f32 %v347_v62, %v102_v11 }
 0x154   :  { %350 = vmatmul.mubr.msk.f32.gmra.mrb[4].mxu0 %vm38_vm0, %v112_v10  ;;  %376 = vmatmul.mubr.msk.f32.gmra.mrb[2].mxu1 %vm38_vm0, %v113_v12 }
 0x155   :  { %237 = vmatprep.mubr.f32.mxu0 %v433_v38 }
 0x158   :  { %351 = vmatmul.mubr.msk.f32.gmra.mrb[6].mxu0 %vm38_vm0, %v113_v12 }
 0x21f   :  { %v221_v21 = vpop.f32.mrb[0].mxu0 }
 0x220   :  { %v222_v22 = vadd.f32 %v221_v21, %v131_v18  ;;  %v223_v23 = vpop.f32.mrb[1].mxu0 }
 0x221   :  { %v224_v25 = vadd.f32 %v223_v23, %v135_v20 }
 0x222   :  { %329 = vst [vmem:[%s574_s5] sm:$0xff] %v222_v22 }
 0x223   :  { %330 = vst [vmem:[%s574_s5 + $0x8] sm:$0xff] %v224_v25  ;;  %v227_v26 = vpop.f32.mrb[2].mxu0  ;;  %v374_v27 = vpop.f32.mrb[0].mxu1 }
 0x224   :  { %v228_v28 = vadd.f32 %v227_v26, %v131_v18  ;;  %v316_v29 = vadd.f32 %v374_v27, %v139_v24  ;;  %v229_v30 = vpop.f32.mrb[3].mxu0  ;;  %v310_v31 = vpop.f32.mrb[1].mxu1 }
 0x225   :  { %v230_v32 = vadd.f32 %v229_v30, %v135_v20  ;;  %v311_v33 = vadd.f32 %v310_v31, %v139_v24 }
 0x226   :  { %332 = vst [vmem:[%s574_s5 + $0x18] sm:$0xff] %v228_v28  ;;  %334 = vst [vmem:[%s574_s5 + $0x28] sm:$0xff] %v316_v29 }
 0x227   :  { %333 = vst [vmem:[%s574_s5 + $0x20] sm:$0xff] %v230_v32  ;;  %331 = vst [vmem:[%s574_s5 + $0x10] sm:$0xff] %v311_v33  ;;  %v233_v34 = vpop.f32.mrb[4].mxu0  ;;  %v377_v35 = vpop.f32.mrb[2].mxu1 }
 0x228   :  { %v234_v36 = vadd.f32 %v233_v34, %v131_v18  ;;  %v326_v37 = vadd.f32 %v377_v35, %v139_v24  ;;  %v235_v38 = vpop.f32.mrb[5].mxu0  ;;  %v320_v39 = vpop.f32.mrb[3].mxu1 }
 0x229   :  { %v236_v40 = vadd.f32 %v235_v38, %v135_v20  ;;  %v321_v41 = vadd.f32 %v320_v39, %v139_v24 }
 0x22a   :  { %335 = vst [vmem:[%s574_s5 + $0x30] sm:$0xff] %v234_v36  ;;  %340 = vst [vmem:[%s574_s5 + $0x58] sm:$0xff] %v326_v37 }
 0x22b   :  { %336 = vst [vmem:[%s574_s5 + $0x38] sm:$0xff] %v236_v40  ;;  %337 = vst [vmem:[%s574_s5 + $0x40] sm:$0xff] %v321_v41  ;;  %v239_v42 = vpop.f32.mrb[6].mxu0 }
 0x22c   :  { %v240_v43 = vadd.f32 %v239_v42, %v131_v18  ;;  %v241_v44 = vpop.f32.mrb[7].mxu0 }
 0x22d   :  { %v242_v45 = vadd.f32 %v241_v44, %v135_v20 }
 0x22e   :  { %338 = vst [vmem:[%s574_s5 + $0x48] sm:$0xff] %v240_v43 }
 0x22f   :  { %339 = vst [vmem:[%s574_s5 + $0x50] sm:$0xff] %v242_v45 }
 0x230   :  { %345 = vsyncpa [#allocation3], 1 }

// kernel: nystromformer_forward.15
= control target key start
LH: loop header
LB: loop body
LE: loop exit
PB: predicated region body
PF: predicated region fallthrough
CT: control target
= control target key end

     0   :  { %vm24_vm0 = vcmask 261120   ;;  %v388_v38 = vmov 0.0   ;;  %s552_s0 = inlined_call_operand.vmem [shape: f32[32,32], index: 0, kind: input, shape index: {}]   ;;  %s553_s3 = inlined_call_operand.vmem [shape: f32[32,384], index: 3, kind: input, shape index: {}]   ;;  %s554_s1 = inlined_call_operand.vmem [shape: f32[1,32], index: 1, kind: input, shape index: {}]   ;;  %s555_s2 = inlined_call_operand.vmem [shape: f32[1,32], index: 2, kind: input, shape index: {}]   ;;  %s556_s4 = inlined_call_operand.vmem [shape: f32[1,384], index: 4, kind: input, shape index: {}]   ;;  %s557_s5 = inlined_call_operand.vmem [shape: f32[32,384], index: 5, kind: output, shape index: {}]  }
   0x1   :  { %v20_v0 = vld [vmem:[%s552_s0] sm:$0xff]  ;;  %v22_v1 = vld [vmem:[%s552_s0 + $0x10] sm:$0xff]  ;;  %v21_v2 = vld [vmem:[%s552_s0 + $0x8] sm:$0xff]  ;;  %205 = vmatprep.mubr.f32.mxu0 %v388_v38 }
   0x2   :  { %v25_v3 = vsel %vm24_vm0, %v20_v0, 0.0  ;;  %v31_v4 = vsel %vm24_vm0, %v22_v1, 0.0  ;;  %v23_v5 = vld [vmem:[%s552_s0 + $0x18] sm:$0xff]  ;;  %v28_v6 = vsel %vm24_vm0, %v21_v2, 0.0  ;;  %v101_v28 = vld [vmem:[%s553_s3 + $0x8] sm:$0xff]  ;;  %v104_v29 = vld [vmem:[%s553_s3 + $0x20] sm:$0xff] }
   0x3   :  { %26 = vadd.xlane.f32.xlu0 %v25_v3  ;;  %32 = vadd.xlane.f32.xlu1 %v31_v4  ;;  %v34_v7 = vsel %vm24_vm0, %v23_v5, 0.0  ;;  %v363_v30 = vpack.c.bf16 %v104_v29, %v101_v28  ;;  %v100_v31 = vld [vmem:[%s553_s3] sm:$0xff]  ;;  %v103_v32 = vld [vmem:[%s553_s3 + $0x18] sm:$0xff]  ;;  %v110_v35 = vld [vmem:[%s553_s3 + $0x50] sm:$0xff] }
   0x4   :  { %v107_v33 = vld [vmem:[%s553_s3 + $0x38] sm:$0xff]  ;;  %v365_v34 = vpack.c.bf16 %v103_v32, %v100_v31  ;;  %v102_v36 = vld [vmem:[%s553_s3 + $0x10] sm:$0xff]  ;;  %v105_v37 = vld [vmem:[%s553_s3 + $0x28] sm:$0xff] }
   0x5   :  { %364 = vmatprep.subr.bf16.mxu0 %v363_v30  ;;  %v367_v39 = vpack.c.bf16 %v110_v35, %v107_v33  ;;  %v371_v40 = vpack.c.bf16 %v105_v37, %v102_v36  ;;  %v106_v41 = vld [vmem:[%s553_s3 + $0x30] sm:$0xff]  ;;  %v109_v42 = vld [vmem:[%s553_s3 + $0x48] sm:$0xff]  ;;  %v108_v44 = vld [vmem:[%s553_s3 + $0x40] sm:$0xff] }
   0x6   :  { %366 = vmatpush1.bf16.msra.mxu0 %v365_v34  ;;  %v369_v43 = vpack.c.bf16 %v109_v42, %v106_v41  ;;  %v111_v45 = vld [vmem:[%s553_s3 + $0x58] sm:$0xff]  ;;  %v331_v60 = vld [vmem:[%s554_s1] ss:$0 sm:$0xff] }
   0x7   :  { %29 = vadd.xlane.f32.xlu0 %v28_v6  ;;  %35 = vadd.xlane.f32.xlu1 %v34_v7  ;;  %v375_v46 = vpack.c.bf16 %v111_v45, %v108_v44  ;;  %v332_v62 = vld [vmem:[%s555_s2] ss:$0 sm:$0xff] }
   0x8   :  { %368 = vmatprep.subr.bf16.mxu0 %v367_v39  ;;  %372 = vmatprep.subr.bf16.mxu1 %v371_v40 }
   0x9   :  { %374 = vmatpush3.bf16.msra.mxu1 %v371_v40 }
   0xa   :  { %370 = vmatpush1.bf16.msra.mxu0 %v369_v43  ;;  %376 = vmatprep.subr.bf16.mxu1 %v375_v46 }
   0xd   :  { %378 = vmatpush3.bf16.msra.mxu1 %v375_v46 }
  0x90   :  { %v27_v8 = vpop.xlane.xlu0 %26  ;;  %v33_v9 = vpop.xlane.xlu1 %32 }
  0x91   :  { %v38_v10 = vmul.f32 0.03125, %v27_v8  ;;  %v40_v11 = vmul.f32 0.03125, %v33_v9 }
  0x93   :  { %v435_v12 = vsub.f32 %v20_v0, %v38_v10  ;;  %v437_v13 = vsub.f32 %v22_v1, %v40_v11 }
  0x94   :  { %v30_v14 = vpop.xlane.xlu0 %29  ;;  %v36_v15 = vpop.xlane.xlu1 %35 }
  0x95   :  { %v39_v16 = vmul.f32 0.03125, %v30_v14  ;;  %v41_v17 = vmul.f32 0.03125, %v36_v15  ;;  %v46_v18 = vmul.f32 %v435_v12, %v435_v12  ;;  %v48_v19 = vmul.f32 %v437_v13, %v437_v13 }
  0x97   :  { %v443_v20 = vsub.f32 %v21_v2, %v39_v16  ;;  %v445_v21 = vsub.f32 %v23_v5, %v41_v17  ;;  %v50_v22 = vsel %vm24_vm0, %v46_v18, 0.0  ;;  %v56_v23 = vsel %vm24_vm0, %v48_v19, 0.0  ;;  %v112_v16 = vld [vmem:[%s556_s4] sm:$0x7] }
  0x98   :  { %51 = vadd.xlane.f32.xlu0 %v50_v22 }
  0x99   :  { %v47_v24 = vmul.f32 %v443_v20, %v443_v20  ;;  %v49_v25 = vmul.f32 %v445_v21, %v445_v21 }
  0x9b   :  { %v53_v26 = vsel %vm24_vm0, %v47_v24, 0.0  ;;  %v59_v27 = vsel %vm24_vm0, %v49_v25, 0.0 }
  0x9c   :  { %57 = vadd.xlane.f32.xlu0 %v56_v23  ;;  %54 = vadd.xlane.f32.xlu1 %v53_v26 }
  0xa0   :  { %60 = vadd.xlane.f32.xlu1 %v59_v27 }
 0x125   :  { %v52_v47 = vpop.xlane.xlu0 %51 }
 0x126   :  { %v62_v48 = vmul.f32 0.03125, %v52_v47 }
 0x128   :  { %v66_v49 = vadd.f32 1e-05, %v62_v48 }
 0x129   :  { %v55_v50 = vpop.xlane.xlu1 %54  ;;  %v58_v51 = vpop.xlane.xlu0 %57 }
 0x12a   :  { %380 = vrsqrt.f32 %v66_v49  ;;  %v63_v52 = vmul.f32 0.03125, %v55_v50  ;;  %v64_v53 = vmul.f32 0.03125, %v58_v51 }
 0x12c   :  { %v67_v54 = vadd.f32 1e-05, %v63_v52  ;;  %v68_v55 = vadd.f32 1e-05, %v64_v53 }
 0x12d   :  { %v61_v56 = vpop.xlane.xlu1 %60 }
 0x12e   :  { %382 = vrsqrt.f32 %v67_v54  ;;  %v65_v57 = vmul.f32 0.03125, %v61_v56 }
 0x12f   :  { %384 = vrsqrt.f32 %v68_v55 }
 0x130   :  { %v69_v58 = vadd.f32 1e-05, %v65_v57 }
 0x132   :  { %386 = vrsqrt.f32 %v69_v58 }
 0x134   :  { %v381_v59 = vpop.eup %380 }
 0x135   :  { %v74_v61 = vmul.f32 %v381_v59, %v435_v12 }
 0x137   :  { %v85_v63 = vmul.f32 %v331_v60, %v74_v61 }
 0x138   :  { %v383_v0 = vpop.eup %382 }
 0x139   :  { %v385_v1 = vpop.eup %384  ;;  %v96_v2 = vadd.f32 %v332_v62, %v85_v63  ;;  %v75_v3 = vmul.f32 %v383_v0, %v443_v20 }
 0x13a   :  { %v76_v4 = vmul.f32 %v385_v1, %v437_v13  ;;  %v114_v13 = vlaneseq }
 0x13b   :  { %333 = vmatmul.mubr.msk.f32.vlgmr.msra.gmra.mrb[0].mxu0 %vm24_vm0, %v96_v2  ;;  %357 = vmatprep.mubr.msk.f32.mxu1 %vm24_vm0, %v96_v2  ;;  %v86_v5 = vmul.f32 %v331_v60, %v75_v3 }
 0x13c   :  { %v387_v6 = vpop.eup %386  ;;  %211 = vmatprep.mubr.f32.mxu0 %v388_v38  ;;  %v87_v7 = vmul.f32 %v331_v60, %v76_v4  ;;  %v115_v14 = vshrl.u32 %v114_v13, 7 }
 0x13d   :  { %v97_v8 = vadd.f32 %v332_v62, %v86_v5  ;;  %v77_v9 = vmul.f32 %v387_v6, %v445_v21 }
 0x13e   :  { %v98_v10 = vadd.f32 %v332_v62, %v87_v7  ;;  %v116_v15 = vsub.s32 0, %v115_v14  ;;  %v120_v17 = vsub.s32 1, %v115_v14  ;;  %v124_v19 = vsub.s32 2, %v115_v14 }
 0x13f   :  { %334 = vmatmul.mubr.msk.f32.gmra.mrb[2].mxu0 %vm24_vm0, %v97_v8  ;;  %358 = vmatmul.mubr.msk.f32.vlgmr.msra.gmra.mrb[0].mxu1 %vm24_vm0, %v97_v8  ;;  %v88_v11 = vmul.f32 %v331_v60, %v77_v9 }
 0x140   :  { %360 = vmatprep.mubr.msk.f32.mxu1 %vm24_vm0, %v98_v10  ;;  %217 = vmatprep.mubr.f32.mxu0 %v388_v38  ;;  %v117_v18 = vrot.slane %v112_v16, %v116_v15  ;;  %v121_v20 = vrot.slane %v112_v16, %v120_v17  ;;  %v125_v24 = vrot.slane %v112_v16, %v124_v19 }
 0x141   :  { %v99_v12 = vadd.f32 %v332_v62, %v88_v11 }
 0x143   :  { %335 = vmatmul.mubr.msk.f32.gmra.mrb[4].mxu0 %vm24_vm0, %v98_v10  ;;  %361 = vmatmul.mubr.msk.f32.gmra.mrb[2].mxu1 %vm24_vm0, %v99_v12 }
 0x144   :  { %223 = vmatprep.mubr.f32.mxu0 %v388_v38 }
 0x147   :  { %336 = vmatmul.mubr.msk.f32.gmra.mrb[6].mxu0 %vm24_vm0, %v99_v12 }
 0x20e   :  { %v207_v21 = vpop.f32.mrb[0].mxu0 }
 0x20f   :  { %v208_v22 = vadd.f32 %v207_v21, %v117_v18  ;;  %v209_v23 = vpop.f32.mrb[1].mxu0 }
 0x210   :  { %v210_v25 = vadd.f32 %v209_v23, %v121_v20 }
 0x211   :  { %315 = vst [vmem:[%s557_s5] sm:$0xff] %v208_v22 }
 0x212   :  { %316 = vst [vmem:[%s557_s5 + $0x8] sm:$0xff] %v210_v25  ;;  %v213_v26 = vpop.f32.mrb[2].mxu0  ;;  %v359_v27 = vpop.f32.mrb[0].mxu1 }
 0x213   :  { %v214_v28 = vadd.f32 %v213_v26, %v117_v18  ;;  %v302_v29 = vadd.f32 %v359_v27, %v125_v24  ;;  %v215_v30 = vpop.f32.mrb[3].mxu0  ;;  %v296_v31 = vpop.f32.mrb[1].mxu1 }
 0x214   :  { %v216_v32 = vadd.f32 %v215_v30, %v121_v20  ;;  %v297_v33 = vadd.f32 %v296_v31, %v125_v24 }
 0x215   :  { %318 = vst [vmem:[%s557_s5 + $0x18] sm:$0xff] %v214_v28  ;;  %320 = vst [vmem:[%s557_s5 + $0x28] sm:$0xff] %v302_v29 }
 0x216   :  { %319 = vst [vmem:[%s557_s5 + $0x20] sm:$0xff] %v216_v32  ;;  %317 = vst [vmem:[%s557_s5 + $0x10] sm:$0xff] %v297_v33  ;;  %v219_v34 = vpop.f32.mrb[4].mxu0  ;;  %v362_v35 = vpop.f32.mrb[2].mxu1 }
 0x217   :  { %v220_v36 = vadd.f32 %v219_v34, %v117_v18  ;;  %v312_v37 = vadd.f32 %v362_v35, %v125_v24  ;;  %v221_v38 = vpop.f32.mrb[5].mxu0  ;;  %v306_v39 = vpop.f32.mrb[3].mxu1 }
 0x218   :  { %v222_v40 = vadd.f32 %v221_v38, %v121_v20  ;;  %v307_v41 = vadd.f32 %v306_v39, %v125_v24 }
 0x219   :  { %321 = vst [vmem:[%s557_s5 + $0x30] sm:$0xff] %v220_v36  ;;  %326 = vst [vmem:[%s557_s5 + $0x58] sm:$0xff] %v312_v37 }
 0x21a   :  { %322 = vst [vmem:[%s557_s5 + $0x38] sm:$0xff] %v222_v40  ;;  %323 = vst [vmem:[%s557_s5 + $0x40] sm:$0xff] %v307_v41  ;;  %v225_v42 = vpop.f32.mrb[6].mxu0 }
 0x21b   :  { %v226_v43 = vadd.f32 %v225_v42, %v117_v18  ;;  %v227_v44 = vpop.f32.mrb[7].mxu0 }
 0x21c   :  { %v228_v45 = vadd.f32 %v227_v44, %v121_v20 }
 0x21d   :  { %324 = vst [vmem:[%s557_s5 + $0x48] sm:$0xff] %v226_v43 }
 0x21e   :  { %325 = vst [vmem:[%s557_s5 + $0x50] sm:$0xff] %v228_v45 }

// kernel: nystromformer_forward.11
= control target key start
LH: loop header
LB: loop body
LE: loop exit
PB: predicated region body
PF: predicated region fallthrough
CT: control target
= control target key end

     0   :  { %s6460_s21 = smov 0   ;;  %s6462_s22 = smov 0   ;;  %s7075_s0 = inlined_call_operand.vmem [shape: f32[8,16], index: 0, kind: input, shape index: {}]   ;;  %s7076_s1 = inlined_call_operand.vmem [shape: f32[8,8], index: 1, kind: input, shape index: {}]   ;;  %s7077_s2 = inlined_call_operand.vmem [shape: f32[2,16,384], index: 2, kind: input, shape index: {}, may-alias: {2,3,4}]   ;;  %s7078_s3 = inlined_call_operand.vmem [shape: f32[2,16,384], index: 3, kind: input, shape index: {}, may-alias: {2,3,4}]   ;;  %s7079_s4 = inlined_call_operand.vmem [shape: f32[2,16,384], index: 4, kind: input, shape index: {}, may-alias: {2,3,4}]   ;;  %s7080_s5 = inlined_call_operand.vmem [shape: f32[33,128], index: 5, kind: input, shape index: {}]   ;;  %s7081_s6 = inlined_call_operand.vmem [shape: f32[2,16,128], index: 6, kind: output, shape index: {}]  }
   0x1   :  { %s6464_s23 = smov 0   ;;  %s6466_s24 = smov 0  }
   0x2   :  { %s6468_s25 = smov 0  }
   0x3 LB: > { %s28_s26 = sadd.s32 1, %s6415_s24  ;;  %p86_p1 = scmp.ne.s32.totalorder %s6407_s22, %s6403_s21  ;;  %s6419_s25 = sphi %s6468_s25, %s16_s25   ;;  %s6415_s24 = sphi %s6466_s24, %s7088_s24   ;;  %s6411_s23 = sphi %s6464_s23, %s7087_s23   ;;  %s6407_s22 = sphi %s6462_s22, %s7086_s22   ;;  %s6403_s21 = sphi %s6460_s21, %s7085_s21  }
   0x4   : > { %p30_p0 = scmp.ge.s32.totalorder %s28_s26, 2  ;;  %p87_p2 = scmp.eq.s32.totalorder %s6419_s25, 0 }
   0x5   : > { %s79_s29 = sadd.s32 1, %s6407_s22  ;;  %p5718_p5 = scmp.ge.s32.totalorder %s6419_s25, 2 }
   0x6   : > { %s7090_s26 = smov (%p30_p0, %s28_s26), 0  ;;  %p6491_p3 = por %p87_p2, %p86_p1 }
   0x7   : > { %s74_s28 = ssub.s32 %s6415_s24, %s7090_s26  ;;  %239 = sbr.rel (%p5718_p5) target bundleno = 35 (0x23), region = 28 }
   0x8   : > { %p77_p4 = scmp.eq.s32.totalorder %s74_s28, 0 }
   0xa   : > { %s6499_s30 = scalar_select %p77_p4, %s6407_s22, %s79_s29  }
   0xe   : > { %242 = sbr.rel (!%p6491_p3) target bundleno = 21 (0x15), region = 32  ;;  %s244_s7 = sand.u32 (%p6491_p3), 1, %s6407_s22  }
   0xf   : > { %s6289_s8 = smul.u32 (%p6491_p3), 48, %s6415_s24  ;;  %s5719_s9 = sshll.u32 (%p6491_p3), %s244_s7, 4 }
  0x10   : > { %s246_s13 = scalar_lea.vmem (%p6491_p3), [#allocation3], %s5719_s9 }
  0x11   : > { %s250_s12 = scalar_lea.vmem (%p6491_p3), %s7077_s2, %s6289_s8 }
  0x12   : > { %v280_v0 = vld [vmem:[%s250_s12] sm:$0xff] (%p6491_p3)  ;;  %v282_v1 = vld [vmem:[%s250_s12 + $0x18] sm:$0xff] (%p6491_p3) }
  0x13   : > { %281 = vst [vmem:[%s246_s13] sm:$0xff] (%p6491_p3), %v280_v0  ;;  %283 = vst [vmem:[%s246_s13 + $0x8] sm:$0xff] (%p6491_p3), %v282_v1 }
  0x15 PF: > { %289 = sbr.rel (!%p6491_p3) target bundleno = 28 (0x1c), region = 70  ;;  %s291_s14 = sand.u32 (%p6491_p3), 1, %s6407_s22  }
  0x16   : > { %s5722_s15 = smul.u32 (%p6491_p3), 48, %s6415_s24  ;;  %s5721_s16 = sshll.u32 (%p6491_p3), %s291_s14, 4 }
  0x17   : > { %s293_s20 = scalar_lea.vmem (%p6491_p3), [#allocation4], %s5721_s16 }
  0x18   : > { %s5611_s19 = scalar_lea.vmem (%p6491_p3), %s7078_s3, %s5722_s15 }
  0x19   : > { %v5723_v2 = vld [vmem:[%s5611_s19 + $0x8] sm:$0xff] (%p6491_p3)  ;;  %v5724_v3 = vld [vmem:[%s5611_s19 + $0x20] sm:$0xff] (%p6491_p3) }
  0x1a   : > { %329 = vst [vmem:[%s293_s20] sm:$0xff] (%p6491_p3), %v5723_v2  ;;  %331 = vst [vmem:[%s293_s20 + $0x8] sm:$0xff] (%p6491_p3), %v5724_v3 }
  0x1c PF: > { %337 = sbr.rel (!%p6491_p3) target bundleno = 35 (0x23), region = 108  ;;  %s339_s28 = sand.u32 (%p6491_p3), 1, %s6407_s22  }
  0x1d   : > { %s5726_s29 = smul.u32 (%p6491_p3), 48, %s6415_s24  ;;  %s5725_s7 = sshll.u32 (%p6491_p3), %s339_s28, 4 }
  0x1e   : > { %s341_s11 = scalar_lea.vmem (%p6491_p3), [#allocation5], %s5725_s7 }
  0x1f   : > { %s5618_s10 = scalar_lea.vmem (%p6491_p3), %s7079_s4, %s5726_s29 }
  0x20   : > { %v5727_v4 = vld [vmem:[%s5618_s10 + $0x10] sm:$0xff] (%p6491_p3)  ;;  %v5728_v5 = vld [vmem:[%s5618_s10 + $0x28] sm:$0xff] (%p6491_p3) }
  0x21   : > { %377 = vst [vmem:[%s341_s11] sm:$0xff] (%p6491_p3), %v5727_v4  ;;  %379 = vst [vmem:[%s341_s11 + $0x8] sm:$0xff] (%p6491_p3), %v5728_v5 }
  0x23 PF: > { %p5729_p6 = scmp.ge.s32.totalorder %s6419_s25, 1  ;;  %p384_p7 = scmp.lt.s32.totalorder %s6419_s25, 3 }
  0x25   : > { %p385_p8 = pnand %p5729_p6, %p384_p7 }
  0x26   : > { %s391_s27 = sand.u32 (!%p385_p8), 1, %s6403_s21   ;;  %v6421_v6 = vmov (!%p385_p8), 0.0|0.0   ;;  %v6422_v7 = vmov (!%p385_p8), 0.0   ;;  %vm6423_vm0 = vmmov (!%p385_p8), 0   ;;  %v471_v18 = vld [vmem:[%s7075_s0] sm:$0xff] (!%p385_p8)  ;;  %vm473_vm1 = vcmask (!%p385_p8), 130048  }
  0x27   : > { %388 = sbr.rel (%p385_p8) target bundleno = 12775 (0x31e7), region = 146  ;;  %6272 = vmatprep.subr.bf16.mxu1 (!%p385_p8), %v6421_v6  ;;  %s5730_s12 = sshll.u32 (!%p385_p8), %s391_s27, 4  ;;  %5248 = vst [vmem:[#allocation2] sm:$0xff] (!%p385_p8), %v6422_v7  ;;  %5249 = vst [vmem:[#allocation2 + $0x8] sm:$0xff] (!%p385_p8), %v6422_v7  ;;  %6269 = vmatprep.subr.bf16.mxu0 (!%p385_p8), %v6421_v6  ;;  %vm617_vm2 = vcmask (!%p385_p8), 523264   ;;  %vm851_vm4 = vcmask (!%p385_p8), 64512  }
  0x28   : > { %5252 = vst [vmem:[#allocation2 + $0x20] sm:$0xff] (!%p385_p8), %v6422_v7  ;;  %5253 = vst [vmem:[#allocation2 + $0x28] sm:$0xff] (!%p385_p8), %v6422_v7  ;;  %5958 = vmatprep.mubr.msk.f32.mxu1 (!%p385_p8), %vm6423_vm0, %v6422_v7  ;;  %5951 = vmatprep.mubr.msk.f32.mxu0 (!%p385_p8), %vm6423_vm0, %v6422_v7  ;;  %s400_s21 = scalar_lea.vmem (!%p385_p8), [#allocation4], %s5730_s12  ;;  %s407_s13 = scalar_lea.vmem (!%p385_p8), [#allocation5], %s5730_s12 }
  0x29   : > { %v6536_v8 = vld [vmem:[%s400_s21] sm:$0xff] (!%p385_p8)  ;;  %v6538_v9 = vld [vmem:[%s400_s21 + $0x8] sm:$0xff] (!%p385_p8)  ;;  %s393_s14 = scalar_lea.vmem (!%p385_p8), [#allocation3], %s5730_s12  ;;  %vm6580_vm3 = vmpackc.low (!%p385_p8), %vm617_vm2, %vm617_vm2  ;;  %s6424_s17 = smov (!%p385_p8), 64  }
  0x2a   : > { %v6540_v10 = vld [vmem:[%s407_s13] sm:$0xff] (!%p385_p8)  ;;  %v6542_v11 = vld [vmem:[%s407_s13 + $0x8] sm:$0xff] (!%p385_p8)  ;;  %v6334_v12 = vpack.i.bf16 (!%p385_p8), %v6538_v9, %v6536_v8  ;;  %v6273_v13 = vpack.c.bf16 (!%p385_p8), %v6538_v9, %v6536_v8  ;;  %p455_p9 = scmp.lt.s32.totalorder (!%p385_p8), %s6411_s23, 1 }
  0x2b   : > { %5254 = vst [vmem:[#allocation2 + $0x10] sm:$0xff] (!%p385_p8), %v6540_v10  ;;  %v463_v14 = vld [vmem:[%s393_s14] sm:$0xff] (!%p385_p8)  ;;  %v464_v15 = vld [vmem:[%s393_s14 + $0x8] sm:$0xff] (!%p385_p8)  ;;  %5255 = vst [vmem:[#allocation2 + $0x18] sm:$0xff] (!%p385_p8), %v6542_v11 }
  0x2c   : > { %v6550_v16 = vmul.f32 (!%p385_p8), 0.125, %v463_v14  ;;  %v6552_v17 = vmul.f32 (!%p385_p8), 0.125, %v464_v15  ;;  %6274 = vmatpush3.bf16.msra.mxu1 (!%p385_p8), %v6273_v13 }
  0x2d   : > { %5966 = vmatprep.subr.mxu1 (!%p385_p8), %v6422_v7 }
  0x2e   : > { %v6270_v19 = vpack.c.bf16 %v6552_v17, %v6550_v16  ;;  %s7092_s23 = smov (!%p455_p9, %s6411_s23), 1 }
  0x2f   : > { %5959 = vmatmul.mubr.msk.f32.vlgmr.msra.gmra.mrb[0].mxu1 %vm473_vm1, %v471_v18  ;;  %s5812_s21 = sshll.u32 %s7092_s23, 4 }
  0x30   : > { %6271 = vmatpush3.bf16.msra.mxu0 %v6270_v19  ;;  %5968 = vmatprep.mubr.msk.f32.mxu1 %vm6423_vm0, %v6422_v7  ;;  %s462_s15 = scalar_lea.vmem %s7081_s6, %s5812_s21 }
  0x33   : > { %5952 = vmatmul.mubr.msk.f32.vlgmr.msra.gmra.mrb[0].mxu0 %vm473_vm1, %v471_v18 }
  0x34   : > { %5963 = vmatprep.mubr.msk.f32.mxu0 %vm617_vm2, %v6550_v16 }
 0x102   : > { %v6566_v20 = vpop.f32.mrb[0].mxu1 }
 0x103   : > { %v5960_v21 = vpop.f32.mrb[1].mxu1  ;;  %5961 = vmatprep.subr.msk.mxu0 %vm617_vm2, %v6566_v20  ;;  %5967 = vmatpush3.xpose.msk.msra.mxu1 %vm617_vm2, %v6566_v20 }
 0x104   : > { %5962 = vmatpush3.xpose.msk.msra.mxu0 %vm617_vm2, %v6566_v20  ;;  %5978 = vmatprep.subr.mxu1 %v6422_v7 }
 0x105   : > { %6275 = vmatprep.subr.bf16.mxu0 %v6421_v6 }
 0x106   : > { %v6575_v22 = vpop.f32.mrb[0].mxu0 }
 0x107   : > { %v5953_v24 = vpop.f32.mrb[1].mxu0  ;;  %5969 = vmatmul.mubr.msk.f32.vlgmr.msra.gmra.mrb[2].mxu1 %vm617_vm2, %v6575_v22  ;;  %5964 = vmatmul.mubr.msk.f32.vlgmr.msra.gmra.mrb[2].mxu0 %vm617_vm2, %v6552_v17 }
 0x108   : > { %5980 = vmatprep.mubr.msk.f32.mxu1 %vm6423_vm0, %v6422_v7  ;;  %6278 = vmatpush3.bf16.xpose.msk.msra.mxu0 %vm6580_vm3, %v6273_v13 }
 0x109   : > { %5975 = vmatprep.mubr.msk.f32.mxu0 %vm6423_vm0, %v6422_v7  ;;  %5988 = vmatprep.subr.mxu0 %v6422_v7 }
 0x10f   : > { %5976 = vmatmul.mubr.msk.f32.vlgmr.msra.gmra.mrb[4].mxu0 %vm617_vm2, %v6575_v22 }
 0x110   : > { %5990 = vmatprep.mubr.msk.f32.mxu0 %vm6423_vm0, %v6422_v7 }
 0x1da   : > { %v771_v25 = vpop.f32.mrb[2].mxu1  ;;  %v6600_v28 = vpop.f32.mrb[2].mxu0 }
 0x1db   : > { %v5970_v26 = vpop.f32.mrb[3].mxu1  ;;  %v874_v27 = vsel %vm851_vm4, %v771_v25, -inf  ;;  %v693_v29 = vpop.f32.mrb[3].mxu0  ;;  %v855_v4 = vsel %vm851_vm4, %v6600_v28, -inf }
 0x1dc   : > { %875 = vmax.xlane.f32.xlu0 %v874_v27  ;;  %v852_v3 = vsel %vm851_vm4, %v693_v29, -inf }
 0x1e2   : > { %v847_v30 = vpop.f32.mrb[4].mxu0 }
 0x1e3   : > { %v5977_v31 = vpop.f32.mrb[5].mxu0  ;;  %v885_v49 = vsel %vm473_vm1, %v847_v30, -inf }
 0x269   : > { %v876_v32 = vpop.xlane.xlu0 %875 }
 0x26a   : > { %v877_v33 = vsub.f32 %v771_v25, %v876_v32 }
 0x26c   : > { %v878_v34 = vmul.f32 1.442695, %v877_v33 }
 0x26e   : > { %6344 = vpow2.f32 %v878_v34 }
 0x278   : > { %v6345_v35 = vpop.eup %6344 }
 0x279   : > { %v880_v36 = vsel %vm851_vm4, %v6345_v35, 0.0 }
 0x27a   : > { %881 = vadd.xlane.f32.xlu0 %v880_v36 }
 0x307   : > { %v882_v37 = vpop.xlane.xlu0 %881 }
 0x308   : > { %6346 = vrcp.f32 %v882_v37 }
 0x312   : > { %v6347_v38 = vpop.eup %6346 }
 0x313   : > { %v6603_v39 = vmul.f32 %v6347_v38, %v6345_v35 }
 0x315   : > { %915 = vxpose.xlu0.b32.start.end [1/1] (short) (narrow) %v6603_v39, 8  ;;  %v896_v40 = vand.u32 2147483647, %v6603_v39 }
 0x317   : > { %v897_v41 = vsel %vm851_vm4, %v896_v40, 0.0 }
 0x318   : > { %898 = vadd.xlane.f32.xlu1 %v897_v41  ;;  %v906_v42 = vrot.slane %v897_v41, 4 }
 0x31a   : > { %v907_v43 = vadd.f32 %v906_v42, %v897_v41 }
 0x31c   : > { %v908_v44 = vrot.slane %v907_v43, 2 }
 0x31e   : > { %v909_v45 = vadd.f32 %v908_v44, %v907_v43 }
 0x320   : > { %v910_v46 = vrot.slane %v909_v45, 1 }
 0x322   : > { %v911_v47 = vadd.f32 %v910_v46, %v909_v45 }
 0x324   : > { %v912_v48 = vsel %vm851_vm4, %v911_v47, -inf }
 0x325   : > { %913 = vmax.xlane.f32.xlu1 %v912_v48 }
 0x329   : > { %886 = vmax.xlane.f32.xlu1 %v885_v49 }
 0x395   : > { %v931_v62 = vpop.trf.xlu0 }
 0x3a5   : > { %v899_v50 = vpop.xlane.xlu1 %898 }
 0x3a6   : > { %v900_v51 = vrot.slane %v899_v50, 4 }
 0x3a8   : > { %v901_v52 = vmax.f32 %v899_v50, %v900_v51 }
 0x3aa   : > { %v902_v53 = vrot.slane %v901_v52, 2 }
 0x3ac   : > { %v903_v54 = vmax.f32 %v901_v52, %v902_v53 }
 0x3ae   : > { %v904_v55 = vrot.slane %v903_v54, 1 }
 0x3b0   : > { %v905_v56 = vmax.f32 %v903_v54, %v904_v55 }
 0x3b2   : > { %v914_v57 = vpop.xlane.xlu1 %913 }
 0x3b3   : > { %v947_v58 = vmul.f32 %v914_v57, %v905_v56 }
 0x3b5   : > { %6348 = vrcp.f32 %v947_v58 }
 0x3b6   : > { %v887_v59 = vpop.xlane.xlu1 %886 }
 0x3b7   : > { %v888_v60 = vsub.f32 %v847_v30, %v887_v59 }
 0x3b9   : > { %v889_v61 = vmul.f32 1.442695, %v888_v60 }
 0x3bb   : > { %6350 = vpow2.f32 %v889_v61 }
 0x3bf   : > { %v6349_v63 = vpop.eup %6348 }
 0x3c0   : > { %v949_v0 = vmul.f32 %v6349_v63, %v931_v62 }
 0x3c2   : > { %5979 = vmatpush3.msra.mxu1 %v949_v0 }
 0x3c3   : > { %5981 = vmatmul.mubr.msk.f32.vlgmr.msra.gmra.mrb[4].mxu1 %vm851_vm4, %v6603_v39  ;;  %5983 = vmatprep.subr.mxu1 %v6422_v7 }
 0x3c4   : > { %5985 = vmatprep.mubr.msk.f32.mxu1 %vm6423_vm0, %v6422_v7 }
 0x3c5   : > { %v6615_v1 = vpop.eup %6350 }
 0x3c6   : > { %v891_v2 = vsel %vm473_vm1, %v6615_v1, 0.0 }
 0x3c7   : > { %892 = vadd.xlane.f32.xlu1 %v891_v2 }
 0x3cb   : > { %853 = vmax.xlane.f32.xlu1 %v852_v3 }
 0x3cf   : > { %856 = vmax.xlane.f32.xlu1 %v855_v4 }
 0x454   : > { %v6622_v5 = vpop.xlane.xlu1 %892 }
 0x458   : > { %v854_v13 = vpop.xlane.xlu1 %853 }
 0x459   : > { %v858_v14 = vsub.f32 %v693_v29, %v854_v13 }
 0x45b   : > { %v860_v15 = vmul.f32 1.442695, %v858_v14 }
 0x45c   : > { %v857_v18 = vpop.xlane.xlu1 %856 }
 0x45d   : > { %6352 = vpow2.f32 %v860_v15  ;;  %v859_v19 = vsub.f32 %v6600_v28, %v857_v18  ;;  %v472_v28 = vld [vmem:[%s7076_s1] sm:$0xff] }
 0x45e   : > { %v6640_v29 = vmul.f32 7.0, %v472_v28  ;;  %v6654_v35 = vmul.f32 13.0, %v472_v28 }
 0x45f   : > { %v862_v21 = vmul.f32 1.442695, %v859_v19 }
 0x461   : > { %6354 = vpow2.f32 %v862_v21 }
 0x462   : > { %6356 = vrcp.f32 %v6622_v5 }
 0x467   : > { %v6625_v24 = vpop.eup %6352 }
 0x468   : > { %v864_v25 = vsel %vm851_vm4, %v6625_v24, 0.0 }
 0x469   : > { %865 = vadd.xlane.f32.xlu1 %v864_v25 }
 0x46b   : > { %v6629_v26 = vpop.eup %6354 }
 0x46c   : > { %v867_v27 = vsel %vm851_vm4, %v6629_v26, 0.0 }
 0x46d   : > { %868 = vadd.xlane.f32.xlu1 %v867_v27 }
 0x47e   : > { %2927 = vrot.lane.b32.xlu1 %v6566_v20, %s6424_s17  ;;  %v6647_v20 = vmul.f32 15.0, %v472_v28 }
 0x482   : > { %3010 = vrot.lane.b32.xlu1 %v6575_v22, %s6424_s17 }
 0x496   : > { %v1019_v30 = vpop.f32.mrb[4].mxu1 }
 0x497   : > { %v1024_v31 = vsub.f32 %v6640_v29, %v1019_v30  ;;  %v5982_v32 = vpop.f32.mrb[5].mxu1 }
 0x499   : > { %5984 = vmatpush3.msra.mxu1 %v1024_v31 }
 0x49a   : > { %5986 = vmatmul.mubr.msk.f32.vlgmr.msra.gmra.mrb[6].mxu1 %vm851_vm4, %v1019_v30  ;;  %5993 = vmatprep.subr.mxu1 %v6422_v7 }
 0x49b   : > { %5995 = vmatprep.mubr.msk.f32.mxu1 %vm6423_vm0, %v6422_v7 }
 0x56d   : > { %v1095_v22 = vpop.f32.mrb[6].mxu1 }
 0x56e   : > { %v1099_v33 = vsub.f32 %v6647_v20, %v1095_v22  ;;  %v5987_v34 = vpop.f32.mrb[7].mxu1 }
 0x570   : > { %5989 = vmatpush3.msra.mxu0 %v1099_v33 }
 0x571   : > { %5991 = vmatmul.mubr.msk.f32.vlgmr.msra.gmra.mrb[6].mxu0 %vm851_vm4, %v1019_v30  ;;  %5998 = vmatprep.subr.mxu0 %v6422_v7 }
 0x572   : > { %6000 = vmatprep.mubr.msk.f32.mxu0 %vm6423_vm0, %v6422_v7 }
 0x644   : > { %v1167_v36 = vpop.f32.mrb[6].mxu0 }
 0x645   : > { %v1171_v37 = vsub.f32 %v6654_v35, %v1167_v36  ;;  %v5992_v38 = vpop.f32.mrb[7].mxu0 }
 0x647   : > { %5994 = vmatpush3.msra.mxu1 %v1171_v37 }
 0x648   : > { %5996 = vmatmul.mubr.msk.f32.vlgmr.msra.gmra.mrb[8].mxu1 %vm851_vm4, %v949_v0  ;;  %6003 = vmatprep.subr.mxu1 %v6422_v7 }
 0x649   : > { %6005 = vmatprep.mubr.msk.f32.mxu1 %vm6423_vm0, %v6422_v7 }
 0x71b   : > { %v1241_v40 = vpop.f32.mrb[8].mxu1 }
 0x71c   : > { %v1245_v41 = vmul.f32 0.25, %v1241_v40  ;;  %v5997_v42 = vpop.f32.mrb[9].mxu1 }
 0x71e   : > { %5999 = vmatpush3.msra.mxu0 %v1245_v41 }
 0x71f   : > { %6001 = vmatmul.mubr.msk.f32.vlgmr.msra.gmra.mrb[8].mxu0 %vm851_vm4, %v6603_v39  ;;  %6008 = vmatprep.subr.mxu0 %v6422_v7 }
 0x720   : > { %6010 = vmatprep.mubr.msk.f32.mxu0 %vm6423_vm0, %v6422_v7 }
 0x7f2   : > { %v1312_v43 = vpop.f32.mrb[8].mxu0 }
 0x7f3   : > { %v1316_v44 = vsub.f32 %v6640_v29, %v1312_v43  ;;  %v6002_v45 = vpop.f32.mrb[9].mxu0 }
 0x7f5   : > { %6004 = vmatpush3.msra.mxu1 %v1316_v44 }
 0x7f6   : > { %6006 = vmatmul.mubr.msk.f32.vlgmr.msra.gmra.mrb[10].mxu1 %vm851_vm4, %v1312_v43  ;;  %6013 = vmatprep.subr.mxu1 %v6422_v7 }
 0x7f7   : > { %6015 = vmatprep.mubr.msk.f32.mxu1 %vm6423_vm0, %v6422_v7 }
 0x8c9   : > { %v1386_v46 = vpop.f32.mrb[10].mxu1 }
 0x8ca   : > { %v1390_v47 = vsub.f32 %v6647_v20, %v1386_v46  ;;  %v6007_v48 = vpop.f32.mrb[11].mxu1 }
 0x8cc   : > { %6009 = vmatpush3.msra.mxu0 %v1390_v47 }
 0x8cd   : > { %6011 = vmatmul.mubr.msk.f32.vlgmr.msra.gmra.mrb[10].mxu0 %vm851_vm4, %v1312_v43  ;;  %6018 = vmatprep.subr.mxu0 %v6422_v7 }
 0x8ce   : > { %6020 = vmatprep.mubr.msk.f32.mxu0 %vm6423_vm0, %v6422_v7 }
 0x9a0   : > { %v1457_v49 = vpop.f32.mrb[10].mxu0 }
 0x9a1   : > { %v1461_v50 = vsub.f32 %v6654_v35, %v1457_v49  ;;  %v6012_v51 = vpop.f32.mrb[11].mxu0 }
 0x9a2   : > { %v6280_v51 = vpack.c.bf16 %v6542_v11, %v6540_v10 }
 0x9a3   : > { %6014 = vmatpush3.msra.mxu1 %v1461_v50 }
 0x9a4   : > { %6016 = vmatmul.mubr.msk.f32.vlgmr.msra.gmra.mrb[12].mxu1 %vm851_vm4, %v1245_v41  ;;  %6023 = vmatprep.subr.mxu1 %v6422_v7 }
 0x9a5   : > { %6025 = vmatprep.mubr.msk.f32.mxu1 %vm6423_vm0, %v6422_v7 }
 0xa77   : > { %v1531_v52 = vpop.f32.mrb[12].mxu1 }
 0xa78   : > { %v1535_v53 = vmul.f32 0.25, %v1531_v52  ;;  %v6017_v54 = vpop.f32.mrb[13].mxu1  ;;  %v6357_v52 = vpop.eup %6356 }
 0xa79   : > { %v895_v5 = vmul.f32 %v6357_v52, %v6615_v1 }
 0xa7a   : > { %6019 = vmatpush3.msra.mxu0 %v1535_v53 }
 0xa7b   : > { %6021 = vmatmul.mubr.msk.f32.vlgmr.msra.gmra.mrb[12].mxu0 %vm851_vm4, %v6603_v39  ;;  %6028 = vmatprep.subr.mxu0 %v6422_v7 }
 0xa7c   : > { %6030 = vmatprep.mubr.msk.f32.mxu0 %vm6423_vm0, %v6422_v7 }
 0xb4e   : > { %v1602_v55 = vpop.f32.mrb[12].mxu0 }
 0xb4f   : > { %v1606_v56 = vsub.f32 %v6640_v29, %v1602_v55  ;;  %v6022_v57 = vpop.f32.mrb[13].mxu0 }
 0xb51   : > { %6024 = vmatpush3.msra.mxu1 %v1606_v56 }
 0xb52   : > { %6026 = vmatmul.mubr.msk.f32.vlgmr.msra.gmra.mrb[14].mxu1 %vm851_vm4, %v1602_v55  ;;  %6033 = vmatprep.subr.mxu1 %v6422_v7 }
 0xb53   : > { %6035 = vmatprep.mubr.msk.f32.mxu1 %vm6423_vm0, %v6422_v7 }
 0xc25   : > { %v1676_v58 = vpop.f32.mrb[14].mxu1 }
 0xc26   : > { %v1680_v59 = vsub.f32 %v6647_v20, %v1676_v58  ;;  %v6027_v60 = vpop.f32.mrb[15].mxu1 }
 0xc28   : > { %6029 = vmatpush3.msra.mxu0 %v1680_v59 }
 0xc29   : > { %6031 = vmatmul.mubr.msk.f32.vlgmr.msra.gmra.mrb[14].mxu0 %vm851_vm4, %v1602_v55  ;;  %6038 = vmatprep.subr.mxu0 %v6422_v7 }
 0xc2a   : > { %6040 = vmatprep.mubr.msk.f32.mxu0 %vm6423_vm0, %v6422_v7 }
 0xcfc   : > { %v1747_v61 = vpop.f32.mrb[14].mxu0 }
 0xcfd   : > { %v1751_v62 = vsub.f32 %v6654_v35, %v1747_v61  ;;  %v6032_v63 = vpop.f32.mrb[15].mxu0 }
 0xcff   : > { %6034 = vmatpush3.msra.mxu1 %v1751_v62 }
 0xd00   : > { %6036 = vmatmul.mubr.msk.f32.vlgmr.msra.gmra.mrb[16].mxu1 %vm851_vm4, %v1535_v53  ;;  %6043 = vmatprep.subr.mxu1 %v6422_v7 }
 0xd01   : > { %6045 = vmatprep.mubr.msk.f32.mxu1 %vm6423_vm0, %v6422_v7 }
 0xdd3   : > { %v1821_v0 = vpop.f32.mrb[16].mxu1 }
 0xdd4   : > { %v1825_v2 = vmul.f32 0.25, %v1821_v0  ;;  %v6037_v3 = vpop.f32.mrb[17].mxu1 }
 0xdd6   : > { %6039 = vmatpush3.msra.mxu0 %v1825_v2 }
 0xdd7   : > { %6041 = vmatmul.mubr.msk.f32.vlgmr.msra.gmra.mrb[16].mxu0 %vm851_vm4, %v6603_v39  ;;  %6048 = vmatprep.subr.mxu0 %v6422_v7 }
 0xdd8   : > { %6050 = vmatprep.mubr.msk.f32.mxu0 %vm6423_vm0, %v6422_v7 }
 0xeaa   : > { %v1892_v4 = vpop.f32.mrb[16].mxu0 }
 0xeab   : > { %v1896_v13 = vsub.f32 %v6640_v29, %v1892_v4  ;;  %v6042_v14 = vpop.f32.mrb[17].mxu0 }
 0xead   : > { %6044 = vmatpush3.msra.mxu1 %v1896_v13 }
 0xeae   : > { %6046 = vmatmul.mubr.msk.f32.vlgmr.msra.gmra.mrb[18].mxu1 %vm851_vm4, %v1892_v4  ;;  %6053 = vmatprep.subr.mxu1 %v6422_v7 }
 0xeaf   : > { %6055 = vmatprep.mubr.msk.f32.mxu1 %vm6423_vm0, %v6422_v7 }
 0xf81   : > { %v1966_v15 = vpop.f32.mrb[18].mxu1 }
 0xf82   : > { %v1970_v18 = vsub.f32 %v6647_v20, %v1966_v15  ;;  %v6047_v19 = vpop.f32.mrb[19].mxu1 }
 0xf84   : > { %6049 = vmatpush3.msra.mxu0 %v1970_v18 }
 0xf85   : > { %6051 = vmatmul.mubr.msk.f32.vlgmr.msra.gmra.mrb[18].mxu0 %vm851_vm4, %v1892_v4  ;;  %6058 = vmatprep.subr.mxu0 %v6422_v7 }
 0xf86   : > { %6060 = vmatprep.mubr.msk.f32.mxu0 %vm6423_vm0, %v6422_v7 }
0x1058   : > { %v2037_v21 = vpop.f32.mrb[18].mxu0 }
0x1059   : > { %v2041_v25 = vsub.f32 %v6654_v35, %v2037_v21  ;;  %v6052_v27 = vpop.f32.mrb[19].mxu0 }
0x105b   : > { %6054 = vmatpush3.msra.mxu1 %v2041_v25 }
0x105c   : > { %6056 = vmatmul.mubr.msk.f32.vlgmr.msra.gmra.mrb[20].mxu1 %vm851_vm4, %v1825_v2  ;;  %6063 = vmatprep.subr.mxu1 %v6422_v7 }
0x105d   : > { %6065 = vmatprep.mubr.msk.f32.mxu1 %vm6423_vm0, %v6422_v7 }
0x112f   : > { %v2111_v28 = vpop.f32.mrb[20].mxu1 }
0x1130   : > { %v2115_v30 = vmul.f32 0.25, %v2111_v28  ;;  %v6057_v31 = vpop.f32.mrb[21].mxu1 }
0x1132   : > { %6059 = vmatpush3.msra.mxu0 %v2115_v30 }
0x1133   : > { %6061 = vmatmul.mubr.msk.f32.vlgmr.msra.gmra.mrb[20].mxu0 %vm851_vm4, %v6603_v39  ;;  %6068 = vmatprep.subr.mxu0 %v6422_v7 }
0x1134   : > { %6070 = vmatprep.mubr.msk.f32.mxu0 %vm6423_vm0, %v6422_v7 }
0x1206   : > { %v2182_v32 = vpop.f32.mrb[20].mxu0 }
0x1207   : > { %v2186_v22 = vsub.f32 %v6640_v29, %v2182_v32  ;;  %v6062_v33 = vpop.f32.mrb[21].mxu0 }
0x1209   : > { %6064 = vmatpush3.msra.mxu1 %v2186_v22 }
0x120a   : > { %6066 = vmatmul.mubr.msk.f32.vlgmr.msra.gmra.mrb[22].mxu1 %vm851_vm4, %v2182_v32  ;;  %6073 = vmatprep.subr.mxu1 %v6422_v7 }
0x120b   : > { %6075 = vmatprep.mubr.msk.f32.mxu1 %vm6423_vm0, %v6422_v7 }
0x12dd   : > { %v2256_v34 = vpop.f32.mrb[22].mxu1 }
0x12de   : > { %v2260_v36 = vsub.f32 %v6647_v20, %v2256_v34  ;;  %v6067_v37 = vpop.f32.mrb[23].mxu1 }
0x12e0   : > { %6069 = vmatpush3.msra.mxu0 %v2260_v36 }
0x12e1   : > { %6071 = vmatmul.mubr.msk.f32.vlgmr.msra.gmra.mrb[22].mxu0 %vm851_vm4, %v2182_v32  ;;  %6078 = vmatprep.subr.mxu0 %v6422_v7 }
0x12e2   : > { %6080 = vmatprep.mubr.msk.f32.mxu0 %vm6423_vm0, %v6422_v7 }
0x13b4   : > { %v2327_v38 = vpop.f32.mrb[22].mxu0 }
0x13b5   : > { %v2331_v40 = vsub.f32 %v6654_v35, %v2327_v38  ;;  %v6072_v41 = vpop.f32.mrb[23].mxu0 }
0x13b7   : > { %6074 = vmatpush3.msra.mxu1 %v2331_v40 }
0x13b8   : > { %6076 = vmatmul.mubr.msk.f32.vlgmr.msra.gmra.mrb[24].mxu1 %vm851_vm4, %v2115_v30  ;;  %6083 = vmatprep.subr.mxu1 %v6422_v7 }
0x13b9   : > { %6085 = vmatprep.mubr.msk.f32.mxu1 %vm6423_vm0, %v6422_v7 }
0x148b   : > { %v2401_v42 = vpop.f32.mrb[24].mxu1 }
0x148c   : > { %v2405_v43 = vmul.f32 0.25, %v2401_v42  ;;  %v6077_v44 = vpop.f32.mrb[25].mxu1 }
0x148e   : > { %6079 = vmatpush3.msra.mxu0 %v2405_v43 }
0x148f   : > { %6081 = vmatmul.mubr.msk.f32.vlgmr.msra.gmra.mrb[24].mxu0 %vm851_vm4, %v6603_v39  ;;  %6088 = vmatprep.subr.mxu0 %v6422_v7  ;;  %v866_v39 = vpop.xlane.xlu1 %865 }
0x1490   : > { %6090 = vmatprep.mubr.msk.f32.mxu0 %vm6423_vm0, %v6422_v7  ;;  %6358 = vrcp.f32 %v866_v39 }
0x1493   : > { %v869_v55 = vpop.xlane.xlu1 %868 }
0x1494   : > { %6360 = vrcp.f32 %v869_v55 }
0x1497   : > { %v2928_v60 = vpop.permute.xlu1 %2927 }
0x149a   : > { %v6359_v53 = vpop.eup %6358 }
0x149b   : > { %v872_v54 = vmul.f32 %v6359_v53, %v6625_v24  ;;  %v3011_v4 = vpop.permute.xlu1 %3010 }
0x149e   : > { %v6361_v63 = vpop.eup %6360 }
0x149f   : > { %v873_v2 = vmul.f32 %v6361_v63, %v6629_v26 }
0x1562   : > { %v2472_v45 = vpop.f32.mrb[24].mxu0 }
0x1563   : > { %v2476_v46 = vsub.f32 %v6640_v29, %v2472_v45  ;;  %v6082_v47 = vpop.f32.mrb[25].mxu0 }
0x1565   : > { %6084 = vmatpush3.msra.mxu1 %v2476_v46 }
0x1566   : > { %6086 = vmatmul.mubr.msk.f32.vlgmr.msra.gmra.mrb[26].mxu1 %vm851_vm4, %v2472_v45  ;;  %6093 = vmatprep.subr.mxu1 %v6422_v7 }
0x1567   : > { %6095 = vmatprep.mubr.msk.f32.mxu1 %vm6423_vm0, %v6422_v7 }
0x1639   : > { %v2546_v48 = vpop.f32.mrb[26].mxu1 }
0x163a   : > { %v2550_v49 = vsub.f32 %v6647_v20, %v2546_v48  ;;  %v6087_v50 = vpop.f32.mrb[27].mxu1 }
0x163c   : > { %6089 = vmatpush3.msra.mxu0 %v2550_v49 }
0x163d   : > { %6091 = vmatmul.mubr.msk.f32.vlgmr.msra.gmra.mrb[26].mxu0 %vm851_vm4, %v2472_v45  ;;  %6279 = vmatprep.subr.bf16.mxu0 %v6421_v6 }
0x163e   : > { %6281 = vmatpush3.bf16.msra.mxu0 %v6280_v51  ;;  %6102 = vmatprep.mubr.msk.f32.mxu0 %vm6423_vm0, %v6422_v7 }
0x1641   : > { %6103 = vmatmul.mubr.msk.f32.vlgmr.msra.gmra.mrb[28].mxu0 %vm473_vm1, %v895_v5 }
0x1642   : > { %6112 = vmatprep.mubr.msk.f32.mxu0 %vm851_vm4, %v872_v54 }
0x1710   : > { %v2617_v56 = vpop.f32.mrb[26].mxu0 }
0x1711   : > { %v2621_v57 = vsub.f32 %v6654_v35, %v2617_v56  ;;  %v6092_v58 = vpop.f32.mrb[27].mxu0 }
0x1713   : > { %6094 = vmatpush3.msra.mxu1 %v2621_v57 }
0x1714   : > { %6096 = vmatmul.mubr.msk.f32.vlgmr.msra.gmra.mrb[28].mxu1 %vm851_vm4, %v2405_v43  ;;  %v2765_v59 = vpop.f32.mrb[28].mxu0  ;;  %6105 = vmatprep.subr.mxu1 %v6422_v7 }
0x1715   : > { %v6104_v61 = vpop.f32.mrb[29].mxu0  ;;  %6106 = vmatpush3.msra.mxu1 %v2765_v59  ;;  %6107 = vmatprep.mubr.msk.f32.mxu1 %vm6423_vm0, %v6422_v7 }
0x1716   : > { %6115 = vmatprep.subr.msk.mxu1 %vm617_vm2, %v2928_v60 }
0x17e7   : > { %v2691_v1 = vpop.f32.mrb[28].mxu1 }
0x17e8   : > { %v2695_v24 = vmul.f32 0.25, %v2691_v1  ;;  %v6097_v62 = vpop.f32.mrb[29].mxu1 }
0x17ea   : > { %6108 = vmatmul.mubr.msk.f32.vlgmr.msra.gmra.mrb[30].mxu1 %vm851_vm4, %v2695_v24  ;;  %v6339_v24 = vpack.i.bf16 %v6542_v11, %v6540_v10 }
0x17eb   : > { %6116 = vmatpush3.xpose.msk.msra.mxu1 %vm617_vm2, %v2928_v60 }
0x17ec   : > { %6282 = vmatprep.subr.bf16.mxu1 %v6421_v6 }
0x18bd   : > { %v2838_v0 = vpop.f32.mrb[30].mxu1 }
0x18be   : > { %v6109_v3 = vpop.f32.mrb[31].mxu1  ;;  %6110 = vmatprep.subr.mxu0 %v2838_v0 }
0x18bf   : > { %6111 = vmatpush3.msra.mxu0 %v2838_v0 }
0x18c0   : > { %6113 = vmatmul.mubr.msk.f32.vlgmr.msra.gmra.mrb[30].mxu0 %vm851_vm4, %v873_v2  ;;  %6120 = vmatprep.subr.mxu0 %v6422_v7 }
0x18c1   : > { %6122 = vmatprep.mubr.msk.f32.mxu0 %vm6423_vm0, %v6422_v7 }
0x18c6   : > { %6121 = vmatpush3.xpose.msk.msra.mxu0 %vm617_vm2, %v2928_v60 }
0x18c7   : > { %6132 = vmatprep.subr.mxu0 %v6422_v7 }
0x18c9   : > { %6123 = vmatmul.mubr.msk.f32.vlgmr.msra.gmra.mrb[32].mxu0 %vm617_vm2, %v3011_v4 }
0x18ca   : > { %6134 = vmatprep.mubr.msk.f32.mxu0 %vm6423_vm0, %v6422_v7 }
0x1993   : > { %v6782_v26 = vpop.f32.mrb[30].mxu0 }
0x1994   : > { %v6784_v13 = vpop.f32.mrb[31].mxu0 }
0x199c   : > { %v3080_v14 = vpop.f32.mrb[32].mxu0 }
0x199d   : > { %v6124_v15 = vpop.f32.mrb[33].mxu0  ;;  %v3184_v18 = vsel %vm851_vm4, %v3080_v14, -inf }
0x199e   : > { %3185 = vmax.xlane.f32.xlu0 %v3184_v18 }
0x19b4   : > { %6335 = vrot.lane.b32.xlu0 %v6334_v12, %s6424_s17 }
0x19b8   : > { %2923 = vrot.lane.b32.xlu0 %v6550_v16, %s6424_s17 }
0x19bc   : > { %2925 = vrot.lane.b32.xlu0 %v6552_v17, %s6424_s17 }
0x1a2b   : > { %v3186_v19 = vpop.xlane.xlu0 %3185 }
0x1a2c   : > { %v3187_v21 = vsub.f32 %v3080_v14, %v3186_v19 }
0x1a2e   : > { %v3188_v25 = vmul.f32 1.442695, %v3187_v21 }
0x1a2f   : > { %v6336_v27 = vpop.permute.xlu0 %6335 }
0x1a30   : > { %6362 = vpow2.f32 %v3188_v25  ;;  %v6338_v28 = vunpack.i.h.bf16 %v6336_v27  ;;  %v6337_v30 = vunpack.i.l.bf16 %v6336_v27 }
0x1a32   : > { %v6283_v32 = vpack.c.bf16 %v6338_v28, %v6337_v30 }
0x1a33   : > { %v2924_v31 = vpop.permute.xlu0 %2923 }
0x1a34   : > { %6117 = vmatprep.mubr.msk.f32.mxu1 %vm617_vm2, %v2924_v31 }
0x1a37   : > { %v2926_v22 = vpop.permute.xlu0 %2925 }
0x1a38   : > { %6118 = vmatmul.mubr.msk.f32.vlgmr.msra.gmra.mrb[32].mxu1 %vm617_vm2, %v2926_v22 }
0x1a39   : > { %6285 = vmatpush3.bf16.xpose.msk.msra.mxu1 %vm6580_vm3, %v6283_v32  ;;  %6129 = vmatprep.mubr.msk.f32.mxu1 %vm6423_vm0, %v6422_v7 }
0x1a3a   : > { %v6363_v8 = vpop.eup %6362  ;;  %6142 = vmatprep.subr.mxu1 %v6422_v7 }
0x1a3b   : > { %v3190_v9 = vsel %vm851_vm4, %v6363_v8, 0.0 }
0x1a3c   : > { %3191 = vadd.xlane.f32.xlu1 %v3190_v9 }
0x1a40   : > { %6130 = vmatmul.mubr.msk.f32.vlgmr.msra.gmra.mrb[34].mxu1 %vm617_vm2, %v3011_v4 }
0x1a41   : > { %6144 = vmatprep.mubr.msk.f32.mxu1 %vm6423_vm0, %v6422_v7 }
0x1ac9   : > { %v3192_v12 = vpop.xlane.xlu1 %3191 }
0x1aca   : > { %6364 = vrcp.f32 %v3192_v12 }
0x1ad4   : > { %v6365_v16 = vpop.eup %6364 }
0x1ad5   : > { %v6806_v17 = vmul.f32 %v6365_v16, %v6363_v8 }
0x1ad7   : > { %v3206_v23 = vand.u32 2147483647, %v6806_v17 }
0x1ad9   : > { %v3207_v33 = vsel %vm851_vm4, %v3206_v23, 0.0 }
0x1ada   : > { %3208 = vadd.xlane.f32.xlu1 %v3207_v33  ;;  %v3216_v34 = vrot.slane %v3207_v33, 4 }
0x1adc   : > { %v3217_v36 = vadd.f32 %v3216_v34, %v3207_v33 }
0x1ade   : > { %v3218_v37 = vrot.slane %v3217_v36, 2 }
0x1ae0   : > { %v3219_v38 = vadd.f32 %v3218_v37, %v3217_v36 }
0x1ae2   : > { %v3220_v40 = vrot.slane %v3219_v38, 1 }
0x1ae4   : > { %v3221_v41 = vadd.f32 %v3220_v40, %v3219_v38 }
0x1ae6   : > { %v3222_v42 = vsel %vm851_vm4, %v3221_v41, -inf }
0x1ae7   : > { %3223 = vmax.xlane.f32.xlu1 %v3222_v42 }
0x1b0b   : > { %v6119_v43 = vpop.f32.mrb[32].mxu1 }
0x1b0c   : > { %v3001_v44 = vpop.f32.mrb[33].mxu1  ;;  %v3165_v62 = vsel %vm851_vm4, %v6119_v43, -inf }
0x1b0d   : > { %v3162_v63 = vsel %vm851_vm4, %v3001_v44, -inf }
0x1b13   : > { %v3158_v45 = vpop.f32.mrb[34].mxu1 }
0x1b14   : > { %v6131_v46 = vpop.f32.mrb[35].mxu1  ;;  %v3195_v47 = vsel %vm473_vm1, %v3158_v45, -inf }
0x1b15   : > { %3196 = vmax.xlane.f32.xlu0 %v3195_v47 }
0x1b1a   : > { %3225 = vxpose.xlu1.b32.start.end [1/1] (short) (narrow) %v6806_v17, 8 }
0x1b2b   : > { %6340 = vrot.lane.b32.xlu0 %v6339_v24, %s6424_s17 }
0x1b4a   : > { %3163 = vmax.xlane.f32.xlu0 %v3162_v63 }
0x1b67   : > { %v3209_v39 = vpop.xlane.xlu1 %3208 }
0x1b68   : > { %v3210_v48 = vrot.slane %v3209_v39, 4 }
0x1b6a   : > { %v3211_v49 = vmax.f32 %v3209_v39, %v3210_v48 }
0x1b6c   : > { %v3212_v50 = vrot.slane %v3211_v49, 2 }
0x1b6e   : > { %v3213_v51 = vmax.f32 %v3211_v49, %v3212_v50 }
0x1b70   : > { %v3214_v52 = vrot.slane %v3213_v51, 1 }
0x1b72   : > { %v3215_v53 = vmax.f32 %v3213_v51, %v3214_v52 }
0x1b74   : > { %v3224_v5 = vpop.xlane.xlu1 %3223 }
0x1b75   : > { %v3257_v54 = vmul.f32 %v3224_v5, %v3215_v53 }
0x1b77   : > { %6366 = vrcp.f32 %v3257_v54 }
0x1b81   : > { %v6367_v55 = vpop.eup %6366 }
0x1b9a   : > { %v3241_v56 = vpop.trf.xlu1 }
0x1b9b   : > { %v3259_v57 = vmul.f32 %v6367_v55, %v3241_v56 }
0x1b9d   : > { %6133 = vmatpush3.msra.mxu0 %v3259_v57 }
0x1b9e   : > { %6135 = vmatmul.mubr.msk.f32.vlgmr.msra.gmra.mrb[34].mxu0 %vm851_vm4, %v6806_v17  ;;  %6137 = vmatprep.subr.mxu0 %v6422_v7 }
0x1b9f   : > { %6139 = vmatprep.mubr.msk.f32.mxu0 %vm6423_vm0, %v6422_v7 }
0x1ba2   : > { %v3197_v58 = vpop.xlane.xlu0 %3196 }
0x1ba3   : > { %v3198_v59 = vsub.f32 %v3158_v45, %v3197_v58  ;;  %v6896_v58 = vld [vmem:[#allocation2] sm:$0xff] }
0x1ba5   : > { %v3199_v60 = vmul.f32 1.442695, %v3198_v59 }
0x1ba6   : > { %v6834_v11 = vpop.permute.xlu0 %6340 }
0x1ba7   : > { %6368 = vpow2.f32 %v3199_v60 }
0x1bb1   : > { %v6818_v61 = vpop.eup %6368 }
0x1bb2   : > { %v3201_v1 = vsel %vm473_vm1, %v6818_v61, 0.0 }
0x1bb3   : > { %3202 = vadd.xlane.f32.xlu1 %v3201_v1 }
0x1bb7   : > { %3166 = vmax.xlane.f32.xlu1 %v3165_v62 }
0x1bd7   : > { %v3164_v15 = vpop.xlane.xlu0 %3163 }
0x1bd8   : > { %v3168_v19 = vsub.f32 %v3001_v44, %v3164_v15 }
0x1bda   : > { %v3170_v21 = vmul.f32 1.442695, %v3168_v19 }
0x1c40   : > { %v6832_v10 = vpop.xlane.xlu1 %3202 }
0x1c44   : > { %v3167_v4 = vpop.xlane.xlu1 %3166 }
0x1c45   : > { %v3169_v14 = vsub.f32 %v6119_v43, %v3167_v4 }
0x1c47   : > { %v3172_v18 = vmul.f32 1.442695, %v3169_v14 }
0x1c49   : > { %6370 = vpow2.f32 %v3172_v18 }
0x1c4a   : > { %6372 = vpow2.f32 %v3170_v21 }
0x1c4b   : > { %6374 = vrcp.f32 %v6832_v10 }
0x1c53   : > { %v6836_v25 = vpop.eup %6370 }
0x1c54   : > { %v6838_v27 = vpop.eup %6372  ;;  %v3177_v30 = vsel %vm851_vm4, %v6836_v25, 0.0 }
0x1c55   : > { %v3174_v28 = vsel %vm851_vm4, %v6838_v27, 0.0 }
0x1c56   : > { %3175 = vadd.xlane.f32.xlu1 %v3174_v28 }
0x1c5a   : > { %3178 = vadd.xlane.f32.xlu1 %v3177_v30 }
0x1c71   : > { %v3329_v0 = vpop.f32.mrb[34].mxu0 }
0x1c72   : > { %v3333_v2 = vsub.f32 %v6640_v29, %v3329_v0  ;;  %v6136_v3 = vpop.f32.mrb[35].mxu0 }
0x1c74   : > { %6138 = vmatpush3.msra.mxu0 %v3333_v2 }
0x1c75   : > { %6140 = vmatmul.mubr.msk.f32.vlgmr.msra.gmra.mrb[36].mxu0 %vm851_vm4, %v3329_v0  ;;  %6147 = vmatprep.subr.mxu0 %v6422_v7 }
0x1c76   : > { %6149 = vmatprep.mubr.msk.f32.mxu0 %vm6423_vm0, %v6422_v7 }
0x1d48   : > { %v3403_v31 = vpop.f32.mrb[36].mxu0 }
0x1d49   : > { %v3407_v32 = vsub.f32 %v6647_v20, %v3403_v31  ;;  %v6141_v22 = vpop.f32.mrb[37].mxu0 }
0x1d4b   : > { %6143 = vmatpush3.msra.mxu1 %v3407_v32 }
0x1d4c   : > { %6145 = vmatmul.mubr.msk.f32.vlgmr.msra.gmra.mrb[36].mxu1 %vm851_vm4, %v3329_v0  ;;  %6152 = vmatprep.subr.mxu1 %v6422_v7 }
0x1d4d   : > { %6154 = vmatprep.mubr.msk.f32.mxu1 %vm6423_vm0, %v6422_v7 }
0x1e1f   : > { %v3474_v8 = vpop.f32.mrb[36].mxu1 }
0x1e20   : > { %v3478_v9 = vsub.f32 %v6654_v35, %v3474_v8  ;;  %v6146_v12 = vpop.f32.mrb[37].mxu1 }
0x1e22   : > { %6148 = vmatpush3.msra.mxu0 %v3478_v9 }
0x1e23   : > { %6150 = vmatmul.mubr.msk.f32.vlgmr.msra.gmra.mrb[38].mxu0 %vm851_vm4, %v3259_v57  ;;  %6157 = vmatprep.subr.mxu0 %v6422_v7 }
0x1e24   : > { %6159 = vmatprep.mubr.msk.f32.mxu0 %vm6423_vm0, %v6422_v7 }
0x1ef6   : > { %v3548_v16 = vpop.f32.mrb[38].mxu0 }
0x1ef7   : > { %v3552_v23 = vmul.f32 0.25, %v3548_v16  ;;  %v6151_v33 = vpop.f32.mrb[39].mxu0 }
0x1ef9   : > { %6153 = vmatpush3.msra.mxu1 %v3552_v23 }
0x1efa   : > { %6155 = vmatmul.mubr.msk.f32.vlgmr.msra.gmra.mrb[38].mxu1 %vm851_vm4, %v6806_v17  ;;  %6162 = vmatprep.subr.mxu1 %v6422_v7 }
0x1efb   : > { %6164 = vmatprep.mubr.msk.f32.mxu1 %vm6423_vm0, %v6422_v7 }
0x1fcd   : > { %v3619_v34 = vpop.f32.mrb[38].mxu1 }
0x1fce   : > { %v3623_v36 = vsub.f32 %v6640_v29, %v3619_v34  ;;  %v6156_v37 = vpop.f32.mrb[39].mxu1 }
0x1fd0   : > { %6158 = vmatpush3.msra.mxu0 %v3623_v36  ;;  %v6342_v36 = vunpack.i.l.bf16 %v6834_v11 }
0x1fd1   : > { %6160 = vmatmul.mubr.msk.f32.vlgmr.msra.gmra.mrb[40].mxu0 %vm851_vm4, %v3619_v34  ;;  %6167 = vmatprep.subr.mxu0 %v6422_v7 }
0x1fd2   : > { %6169 = vmatprep.mubr.msk.f32.mxu0 %vm6423_vm0, %v6422_v7 }
0x20a4   : > { %v3693_v38 = vpop.f32.mrb[40].mxu0 }
0x20a5   : > { %v3697_v40 = vsub.f32 %v6647_v20, %v3693_v38  ;;  %v6161_v41 = vpop.f32.mrb[41].mxu0 }
0x20a6   : > { %v6375_v41 = vpop.eup %6374 }
0x20a7   : > { %6163 = vmatpush3.msra.mxu1 %v3697_v40  ;;  %v3205_v10 = vmul.f32 %v6375_v41, %v6818_v61 }
0x20a8   : > { %6165 = vmatmul.mubr.msk.f32.vlgmr.msra.gmra.mrb[40].mxu1 %vm851_vm4, %v3619_v34  ;;  %6172 = vmatprep.subr.mxu1 %v6422_v7  ;;  %v6343_v34 = vunpack.i.h.bf16 %v6834_v11 }
0x20a9   : > { %6174 = vmatprep.mubr.msk.f32.mxu1 %vm6423_vm0, %v6422_v7 }
0x20aa   : > { %v6287_v38 = vpack.c.bf16 %v6343_v34, %v6342_v36  ;;  %v5312_v36 = vld [vmem:[#allocation2 + $0xd] sm:$0xff] }
0x217b   : > { %v3764_v42 = vpop.f32.mrb[40].mxu1 }
0x217c   : > { %v3768_v43 = vsub.f32 %v6654_v35, %v3764_v42  ;;  %v6166_v44 = vpop.f32.mrb[41].mxu1 }
0x217e   : > { %6168 = vmatpush3.msra.mxu0 %v3768_v43 }
0x217f   : > { %6170 = vmatmul.mubr.msk.f32.vlgmr.msra.gmra.mrb[42].mxu0 %vm851_vm4, %v3552_v23  ;;  %6177 = vmatprep.subr.mxu0 %v6422_v7 }
0x2180   : > { %6179 = vmatprep.mubr.msk.f32.mxu0 %vm6423_vm0, %v6422_v7 }
0x2252   : > { %v3838_v45 = vpop.f32.mrb[42].mxu0 }
0x2253   : > { %v3842_v46 = vmul.f32 0.25, %v3838_v45  ;;  %v6171_v47 = vpop.f32.mrb[43].mxu0 }
0x2255   : > { %6173 = vmatpush3.msra.mxu1 %v3842_v46 }
0x2256   : > { %6175 = vmatmul.mubr.msk.f32.vlgmr.msra.gmra.mrb[42].mxu1 %vm851_vm4, %v6806_v17  ;;  %6182 = vmatprep.subr.mxu1 %v6422_v7 }
0x2257   : > { %6184 = vmatprep.mubr.msk.f32.mxu1 %vm6423_vm0, %v6422_v7 }
0x2329   : > { %v3909_v39 = vpop.f32.mrb[42].mxu1 }
0x232a   : > { %v3913_v48 = vsub.f32 %v6640_v29, %v3909_v39  ;;  %v6176_v49 = vpop.f32.mrb[43].mxu1 }
0x232c   : > { %6178 = vmatpush3.msra.mxu0 %v3913_v48 }
0x232d   : > { %6180 = vmatmul.mubr.msk.f32.vlgmr.msra.gmra.mrb[44].mxu0 %vm851_vm4, %v3909_v39  ;;  %6187 = vmatprep.subr.mxu0 %v6422_v7 }
0x232e   : > { %6189 = vmatprep.mubr.msk.f32.mxu0 %vm6423_vm0, %v6422_v7 }
0x2400   : > { %v3983_v50 = vpop.f32.mrb[44].mxu0 }
0x2401   : > { %v3987_v51 = vsub.f32 %v6647_v20, %v3983_v50  ;;  %v6181_v52 = vpop.f32.mrb[45].mxu0  ;;  %v5263_v50 = vlaneseq }
0x2403   : > { %6183 = vmatpush3.msra.mxu1 %v3987_v51  ;;  %v5264_v51 = vshrl.u32 %v5263_v50, 7 }
0x2404   : > { %6185 = vmatmul.mubr.msk.f32.vlgmr.msra.gmra.mrb[44].mxu1 %vm851_vm4, %v3909_v39  ;;  %6192 = vmatprep.subr.mxu1 %v6422_v7 }
0x2405   : > { %6194 = vmatprep.mubr.msk.f32.mxu1 %vm6423_vm0, %v6422_v7  ;;  %v6966_v52 = vsub.s32 0, %v5264_v51 }
0x24d7   : > { %v4054_v53 = vpop.f32.mrb[44].mxu1 }
0x24d8   : > { %v4058_v5 = vsub.f32 %v6654_v35, %v4054_v53  ;;  %v6186_v54 = vpop.f32.mrb[45].mxu1  ;;  %v6968_v53 = vsub.s32 1, %v5264_v51 }
0x24da   : > { %6188 = vmatpush3.msra.mxu0 %v4058_v5  ;;  %v5256_v5 = vld [vmem:[%s7080_s5] sm:$0xff] }
0x24db   : > { %6190 = vmatmul.mubr.msk.f32.vlgmr.msra.gmra.mrb[46].mxu0 %vm851_vm4, %v3842_v46  ;;  %6197 = vmatprep.subr.mxu0 %v6422_v7  ;;  %v5266_v54 = vrot.slane %v5256_v5, %v6966_v52 }
0x24dc   : > { %6199 = vmatprep.mubr.msk.f32.mxu0 %vm6423_vm0, %v6422_v7 }
0x25ae   : > { %v4128_v55 = vpop.f32.mrb[46].mxu0 }
0x25af   : > { %v4132_v56 = vmul.f32 0.25, %v4128_v55  ;;  %v6191_v57 = vpop.f32.mrb[47].mxu0  ;;  %v5276_v55 = vrot.slane %v5256_v5, %v6968_v53 }
0x25b0   : > { %v5271_v57 = vld [vmem:[#allocation2 + $0x1] sm:$0xff] }
0x25b1   : > { %6193 = vmatpush3.msra.mxu1 %v4132_v56 }
0x25b2   : > { %6195 = vmatmul.mubr.msk.f32.vlgmr.msra.gmra.mrb[46].mxu1 %vm851_vm4, %v6806_v17  ;;  %6202 = vmatprep.subr.mxu1 %v6896_v58 }
0x25b3   : > { %6204 = vmatprep.mubr.msk.f32.mxu1 %vm6423_vm0, %v6896_v58 }
0x2685   : > { %v4199_v59 = vpop.f32.mrb[46].mxu1 }
0x2686   : > { %v4203_v60 = vsub.f32 %v6640_v29, %v4199_v59  ;;  %v6196_v1 = vpop.f32.mrb[47].mxu1 }
0x2688   : > { %6198 = vmatpush3.msra.mxu0 %v4203_v60 }
0x2689   : > { %6200 = vmatmul.mubr.msk.f32.vlgmr.msra.gmra.mrb[48].mxu0 %vm851_vm4, %v4199_v59  ;;  %6207 = vmatprep.subr.mxu0 %v6896_v58 }
0x268a   : > { %6209 = vmatprep.mubr.msk.f32.mxu0 %vm6423_vm0, %v6896_v58 }
0x275c   : > { %v4273_v7 = vpop.f32.mrb[48].mxu0 }
0x275d   : > { %v4277_v24 = vsub.f32 %v6647_v20, %v4273_v7  ;;  %v6201_v62 = vpop.f32.mrb[49].mxu0  ;;  %v6982_v7 = vsub.s32 3, %v5264_v51 }
0x275e   : > { %v6984_v62 = vld [vmem:[#allocation2 + $0xa] sm:$0xff] }
0x275f   : > { %6203 = vmatpush3.msra.mxu1 %v4277_v24  ;;  %v5277_v24 = vmul.f32 %v5276_v55, %v5271_v57 }
0x2760   : > { %6205 = vmatmul.mubr.msk.f32.vlgmr.msra.gmra.mrb[48].mxu1 %vm851_vm4, %v4199_v59  ;;  %6212 = vmatprep.subr.mxu1 %v6896_v58  ;;  %v5267_v59 = vmul.f32 %v6896_v58, %v5266_v54 }
0x2761   : > { %6214 = vmatprep.mubr.msk.f32.mxu1 %vm6423_vm0, %v6896_v58 }
0x2833   : > { %v4344_v63 = vpop.f32.mrb[48].mxu1 }
0x2834   : > { %v4348_v0 = vsub.f32 %v6654_v35, %v4344_v63  ;;  %v6206_v2 = vpop.f32.mrb[49].mxu1  ;;  %v5281_v63 = vld [vmem:[#allocation2 + $0x2] sm:$0xff] }
0x2836   : > { %6208 = vmatpush3.msra.mxu0 %v4348_v0 }
0x2837   : > { %6210 = vmatmul.mubr.msk.f32.vlgmr.msra.gmra.mrb[50].mxu0 %vm851_vm4, %v4132_v56  ;;  %6217 = vmatprep.subr.mxu0 %v6896_v58  ;;  %v6977_v56 = vld [vmem:[#allocation2 + $0x9] sm:$0xff] }
0x2838   : > { %6219 = vmatprep.mubr.msk.f32.mxu0 %vm6423_vm0, %v6896_v58  ;;  %v5278_v60 = vmul.f32 %v5276_v55, %v6977_v56  ;;  %v5341_v55 = vld [vmem:[#allocation2 + $0x10] sm:$0xff] }
0x283a   : > { %v5280_v0 = vadd.f32 %v5278_v60, %v5267_v59 }
0x290a   : > { %v4418_v3 = vpop.f32.mrb[50].mxu0 }
0x290b   : > { %v4422_v4 = vmul.f32 0.25, %v4418_v3  ;;  %v6211_v14 = vpop.f32.mrb[51].mxu0  ;;  %v5296_v3 = vrot.slane %v5256_v5, %v6982_v7 }
0x290c   : > { %v5279_v14 = vadd.f32 %v5277_v24, %v5267_v59  ;;  %v5350_v24 = vld [vmem:[#allocation2 + $0x11] sm:$0xff] }
0x290d   : > { %6213 = vmatpush3.msra.mxu1 %v4422_v4 }
0x290e   : > { %6215 = vmatmul.mubr.msk.f32.vlgmr.msra.gmra.mrb[50].mxu1 %vm851_vm4, %v6806_v17  ;;  %6222 = vmatprep.subr.mxu1 %v6896_v58 }
0x290f   : > { %6224 = vmatprep.mubr.msk.f32.mxu1 %vm6423_vm0, %v6896_v58 }
0x29e1   : > { %v4489_v15 = vpop.f32.mrb[50].mxu1 }
0x29e2   : > { %v4493_v18 = vsub.f32 %v6640_v29, %v4489_v15  ;;  %v6216_v19 = vpop.f32.mrb[51].mxu1 }
0x29e3   : > { %v5291_v19 = vld [vmem:[#allocation2 + $0x3] sm:$0xff] }
0x29e4   : > { %6218 = vmatpush3.msra.mxu0 %v4493_v18  ;;  %v6990_v18 = vld [vmem:[#allocation2 + $0xb] sm:$0xff] }
0x29e5   : > { %6220 = vmatmul.mubr.msk.f32.vlgmr.msra.gmra.mrb[52].mxu0 %vm851_vm4, %v4489_v15  ;;  %6227 = vmatprep.subr.mxu0 %v6896_v58 }
0x29e6   : > { %6229 = vmatprep.mubr.msk.f32.mxu0 %vm6423_vm0, %v6896_v58 }
0x2ab8   : > { %v4563_v21 = vpop.f32.mrb[52].mxu0 }
0x2ab9   : > { %v4567_v28 = vsub.f32 %v6647_v20, %v4563_v21  ;;  %v6221_v30 = vpop.f32.mrb[53].mxu0 }
0x2abb   : > { %6223 = vmatpush3.msra.mxu1 %v4567_v28  ;;  %v5298_v28 = vmul.f32 %v5296_v3, %v6990_v18 }
0x2abc   : > { %6225 = vmatmul.mubr.msk.f32.vlgmr.msra.gmra.mrb[52].mxu1 %vm851_vm4, %v4489_v15  ;;  %6232 = vmatprep.subr.mxu1 %v6896_v58 }
0x2abd   : > { %6234 = vmatprep.mubr.msk.f32.mxu1 %vm6423_vm0, %v6896_v58 }
0x2b8f   : > { %v4634_v31 = vpop.f32.mrb[52].mxu1 }
0x2b90   : > { %v4638_v32 = vsub.f32 %v6654_v35, %v4634_v31  ;;  %v6226_v22 = vpop.f32.mrb[53].mxu1  ;;  %v6994_v31 = vsub.s32 5, %v5264_v51 }
0x2b91   : > { %v5297_v22 = vmul.f32 %v5296_v3, %v5291_v19 }
0x2b92   : > { %6228 = vmatpush3.msra.mxu0 %v4638_v32 }
0x2b93   : > { %6230 = vmatmul.mubr.msk.f32.vlgmr.msra.gmra.mrb[54].mxu0 %vm851_vm4, %v4422_v4  ;;  %6237 = vmatprep.subr.mxu0 %v6896_v58  ;;  %v6988_v4 = vsub.s32 4, %v5264_v51 }
0x2b94   : > { %6239 = vmatprep.mubr.msk.f32.mxu0 %vm6423_vm0, %v6896_v58 }
0x2b95   : > { %v5306_v30 = vrot.slane %v5256_v5, %v6988_v4 }
0x2c66   : > { %v4708_v8 = vpop.f32.mrb[54].mxu0 }
0x2c67   : > { %v4712_v9 = vmul.f32 0.25, %v4708_v8  ;;  %v6231_v12 = vpop.f32.mrb[55].mxu0  ;;  %v6996_v8 = vld [vmem:[#allocation2 + $0xc] sm:$0xff] }
0x2c69   : > { %6233 = vmatpush3.msra.mxu1 %v4712_v9 }
0x2c6a   : > { %6235 = vmatmul.mubr.msk.f32.vlgmr.msra.gmra.mrb[54].mxu1 %vm851_vm4, %v6806_v17  ;;  %6242 = vmatprep.subr.mxu1 %v6896_v58  ;;  %v3176_v17 = vpop.xlane.xlu1 %3175 }
0x2c6b   : > { %6244 = vmatprep.mubr.msk.f32.mxu1 %vm6423_vm0, %v6896_v58  ;;  %6376 = vrcp.f32 %v3176_v17 }
0x2c6e   : > { %v3179_v47 = vpop.xlane.xlu1 %3178 }
0x2c6f   : > { %6378 = vrcp.f32 %v3179_v47 }
0x2c75   : > { %v6377_v42 = vpop.eup %6376 }
0x2c76   : > { %v3182_v11 = vmul.f32 %v6377_v42, %v6838_v27 }
0x2d3d   : > { %v4779_v16 = vpop.f32.mrb[54].mxu1 }
0x2d3e   : > { %v4783_v23 = vsub.f32 %v6640_v29, %v4779_v16  ;;  %v6236_v33 = vpop.f32.mrb[55].mxu1 }
0x2d3f   : > { %v7000_v33 = vsub.s32 6, %v5264_v51 }
0x2d40   : > { %6238 = vmatpush3.msra.mxu0 %v4783_v23  ;;  %v5316_v23 = vrot.slane %v5256_v5, %v6994_v31 }
0x2d41   : > { %6240 = vmatmul.mubr.msk.f32.vlgmr.msra.gmra.mrb[56].mxu0 %vm851_vm4, %v4779_v16  ;;  %6247 = vmatprep.subr.mxu0 %v6896_v58  ;;  %v5326_v42 = vrot.slane %v5256_v5, %v7000_v33 }
0x2d42   : > { %6249 = vmatprep.mubr.msk.f32.mxu0 %vm6423_vm0, %v6896_v58  ;;  %v5318_v41 = vmul.f32 %v5316_v23, %v5312_v36 }
0x2e14   : > { %v4853_v37 = vpop.f32.mrb[56].mxu0 }
0x2e15   : > { %v4857_v29 = vsub.f32 %v6647_v20, %v4853_v37  ;;  %v6241_v40 = vpop.f32.mrb[57].mxu0  ;;  %v5311_v37 = vld [vmem:[#allocation2 + $0x5] sm:$0xff] }
0x2e17   : > { %6243 = vmatpush3.msra.mxu1 %v4857_v29 }
0x2e18   : > { %6245 = vmatmul.mubr.msk.f32.vlgmr.msra.gmra.mrb[56].mxu1 %vm851_vm4, %v4779_v16  ;;  %6286 = vmatprep.subr.bf16.mxu1 %v6421_v6  ;;  %v5308_v16 = vmul.f32 %v5306_v30, %v6996_v8 }
0x2e19   : > { %6288 = vmatpush3.bf16.msra.mxu1 %v6287_v38  ;;  %6256 = vmatprep.mubr.msk.f32.mxu1 %vm6423_vm0, %v6896_v58 }
0x2e1c   : > { %6257 = vmatmul.mubr.msk.f32.vlgmr.msra.gmra.mrb[58].mxu1 %vm473_vm1, %v3205_v10  ;;  %v7004_v10 = vsub.s32 7, %v5264_v51 }
0x2e1d   : > { %6266 = vmatprep.mubr.msk.f32.mxu1 %vm851_vm4, %v3182_v11 }
0x2eeb   : > { %v4924_v20 = vpop.f32.mrb[56].mxu1 }
0x2eec   : > { %v4928_v43 = vsub.f32 %v6654_v35, %v4924_v20  ;;  %v6246_v44 = vpop.f32.mrb[57].mxu1  ;;  %v6379_v35 = vpop.eup %6378  ;;  %v5317_v20 = vmul.f32 %v5316_v23, %v5311_v37 }
0x2eed   : > { %v3183_v48 = vmul.f32 %v6379_v35, %v6836_v25  ;;  %v6975_v25 = vsub.s32 2, %v5264_v51  ;;  %v5321_v44 = vld [vmem:[#allocation2 + $0x6] sm:$0xff]  ;;  %v5332_v35 = vld [vmem:[#allocation2 + $0xf] sm:$0xff] }
0x2eee   : > { %6248 = vmatpush3.msra.mxu0 %v4928_v43  ;;  %v5322_v43 = vld [vmem:[#allocation2 + $0xe] sm:$0xff]  ;;  %v5327_v47 = vmul.f32 %v5326_v42, %v5321_v44 }
0x2eef   : > { %6250 = vmatmul.mubr.msk.f32.vlgmr.msra.gmra.mrb[58].mxu0 %vm851_vm4, %v4712_v9  ;;  %v5080_v6 = vpop.f32.mrb[58].mxu1  ;;  %6259 = vmatprep.subr.mxu0 %v6896_v58  ;;  %v5286_v1 = vrot.slane %v5256_v5, %v6975_v25  ;;  %v5301_v9 = vld [vmem:[#allocation2 + $0x4] sm:$0xff] }
0x2ef0   : > { %v6258_v45 = vpop.f32.mrb[59].mxu1  ;;  %6260 = vmatpush3.msra.mxu0 %v5080_v6  ;;  %6261 = vmatprep.mubr.msk.f32.mxu0 %vm6423_vm0, %v6896_v58  ;;  %v5307_v34 = vmul.f32 %v5306_v30, %v5301_v9 }
0x2ef1   : > { %v5288_v2 = vmul.f32 %v5286_v1, %v6984_v62  ;;  %v5287_v15 = vmul.f32 %v5286_v1, %v5281_v63  ;;  %v5328_v45 = vmul.f32 %v5326_v42, %v5322_v43 }
0x2ef3   : > { %v5290_v21 = vadd.f32 %v5288_v2, %v5280_v0  ;;  %v5289_v32 = vadd.f32 %v5287_v15, %v5279_v14  ;;  %v5359_v15 = vld [vmem:[#allocation2 + $0x12] sm:$0xff] }
0x2ef5   : > { %v5300_v12 = vadd.f32 %v5298_v28, %v5290_v21  ;;  %v5299_v17 = vadd.f32 %v5297_v22, %v5289_v32  ;;  %v5368_v22 = vld [vmem:[#allocation2 + $0x13] sm:$0xff] }
0x2ef7   : > { %v5310_v40 = vadd.f32 %v5308_v16, %v5300_v12  ;;  %v5309_v11 = vadd.f32 %v5307_v34, %v5299_v17  ;;  %v5377_v34 = vld [vmem:[#allocation2 + $0x14] sm:$0xff] }
0x2ef9   : > { %v5320_v6 = vadd.f32 %v5318_v41, %v5310_v40  ;;  %v5386_v41 = vld [vmem:[#allocation2 + $0x15] sm:$0xff] }
0x2fc2   : > { %v4998_v61 = vpop.f32.mrb[58].mxu0 }
0x2fc3   : > { %v5002_v27 = vmul.f32 0.25, %v4998_v61  ;;  %v6251_v46 = vpop.f32.mrb[59].mxu0  ;;  %v5336_v61 = vrot.slane %v5256_v5, %v7004_v10 }
0x2fc4   : > { %v5319_v46 = vadd.f32 %v5317_v20, %v5309_v11 }
0x2fc5   : > { %6262 = vmatmul.mubr.msk.f32.vlgmr.msra.gmra.mrb[60].mxu0 %vm851_vm4, %v5002_v27  ;;  %v5257_v27 = vld [vmem:[%s7080_s5 + $0x8] sm:$0xff] }
0x2fc6   : > { %v5345_v50 = vrot.slane %v5257_v27, %v6966_v52  ;;  %v5329_v51 = vadd.f32 %v5327_v47, %v5319_v46  ;;  %v5354_v60 = vrot.slane %v5257_v27, %v6968_v53  ;;  %v5363_v2 = vrot.slane %v5257_v27, %v6975_v25  ;;  %v5258_v46 = vld [vmem:[%s7080_s5 + $0x10] sm:$0xff] }
0x2fc7   : > { %v5372_v28 = vrot.slane %v5257_v27, %v6982_v7  ;;  %v5381_v16 = vrot.slane %v5257_v27, %v6988_v4 }
0x2fc8   : > { %v5347_v59 = vmul.f32 %v5345_v50, %v5341_v55  ;;  %v5346_v1 = vmul.f32 %v6896_v58, %v5345_v50  ;;  %v5356_v0 = vmul.f32 %v5354_v60, %v5350_v24  ;;  %v5355_v14 = vmul.f32 %v5354_v60, %v6977_v56 }
0x2fc9   : > { %v5365_v21 = vmul.f32 %v5363_v2, %v5359_v15  ;;  %v5364_v32 = vmul.f32 %v5363_v2, %v6984_v62  ;;  %v5374_v12 = vmul.f32 %v5372_v28, %v5368_v22  ;;  %v5373_v17 = vmul.f32 %v5372_v28, %v6990_v18 }
0x2fca   : > { %v5390_v56 = vrot.slane %v5257_v27, %v6994_v31  ;;  %v5382_v40 = vmul.f32 %v5381_v16, %v6996_v8  ;;  %v5399_v62 = vrot.slane %v5257_v27, %v7000_v33  ;;  %v5408_v18 = vrot.slane %v5257_v27, %v7004_v10 }
0x2fcb   : > { %v5417_v50 = vrot.slane %v5258_v46, %v6966_v52  ;;  %v5426_v60 = vrot.slane %v5258_v46, %v6968_v53  ;;  %v5435_v2 = vrot.slane %v5258_v46, %v6975_v25  ;;  %v5444_v28 = vrot.slane %v5258_v46, %v6982_v7 }
0x2fcc   : > { %v5392_v11 = vmul.f32 %v5390_v56, %v5386_v41  ;;  %v5391_v44 = vmul.f32 %v5390_v56, %v5312_v36  ;;  %v5462_v56 = vrot.slane %v5258_v46, %v6994_v31 }
0x2fcd   : > { %v5418_v27 = vmul.f32 %v5417_v50, %v5341_v55  ;;  %v5449_v55 = vld [vmem:[#allocation2 + $0x1c] sm:$0xff] }
0x3098   : > { %v5153_v39 = vpop.f32.mrb[60].mxu0 }
0x3099   : > { %v6263_v49 = vpop.f32.mrb[61].mxu0  ;;  %6264 = vmatprep.subr.mxu1 %v5153_v39 }
0x309a   : > { %6265 = vmatpush3.msra.mxu1 %v5153_v39  ;;  %v5331_v39 = vld [vmem:[#allocation2 + $0x7] sm:$0xff]  ;;  %v5338_v49 = vmul.f32 %v5336_v61, %v5332_v35 }
0x309b   : > { %6267 = vmatmul.mubr.msk.f32.vlgmr.msra.gmra.mrb[60].mxu1 %vm851_vm4, %v3183_v48  ;;  %v5330_v48 = vadd.f32 %v5328_v45, %v5320_v6  ;;  %v5337_v54 = vmul.f32 %v5336_v61, %v5331_v39  ;;  %v5395_v6 = vld [vmem:[#allocation2 + $0x16] sm:$0xff]  ;;  %v5400_v39 = vmul.f32 %v5399_v62, %v5322_v43 }
0x309c   : > { %v5401_v61 = vmul.f32 %v5399_v62, %v5395_v6  ;;  %v5471_v62 = vrot.slane %v5258_v46, %v7000_v33 }
0x309d   : > { %v5340_v57 = vadd.f32 %v5338_v49, %v5330_v48  ;;  %v5339_v5 = vadd.f32 %v5337_v54, %v5329_v51  ;;  %v5404_v48 = vld [vmem:[#allocation2 + $0x17] sm:$0xff]  ;;  %v5409_v54 = vmul.f32 %v5408_v18, %v5332_v35 }
0x309e   : > { %v5410_v49 = vmul.f32 %v5408_v18, %v5404_v48  ;;  %v5440_v35 = vld [vmem:[#allocation2 + $0x1b] sm:$0xff]  ;;  %v5480_v18 = vrot.slane %v5258_v46, %v7004_v10 }
0x309f   : > { %v5349_v63 = vadd.f32 %v5347_v59, %v5340_v57  ;;  %v5348_v3 = vadd.f32 %v5346_v1, %v5339_v5  ;;  %v5413_v57 = vld [vmem:[#allocation2 + $0x18] sm:$0xff] }
0x30a0   : > { %v5419_v59 = vmul.f32 %v5417_v50, %v5413_v57  ;;  %v5422_v1 = vld [vmem:[#allocation2 + $0x19] sm:$0xff] }
0x30a1   : > { %v5358_v19 = vadd.f32 %v5356_v0, %v5349_v63  ;;  %v5357_v30 = vadd.f32 %v5355_v14, %v5348_v3  ;;  %v5428_v0 = vmul.f32 %v5426_v60, %v5422_v1  ;;  %v5431_v3 = vld [vmem:[#allocation2 + $0x1a] sm:$0xff]  ;;  %v5427_v14 = vmul.f32 %v5426_v60, %v5350_v24 }
0x30a2   : > { %v5494_v60 = vld [vmem:[#allocation2 + $0x21] sm:$0xff] }
0x30a3   : > { %v5367_v9 = vadd.f32 %v5365_v21, %v5358_v19  ;;  %v5366_v23 = vadd.f32 %v5364_v32, %v5357_v30  ;;  %v5437_v21 = vmul.f32 %v5435_v2, %v5431_v3  ;;  %v5436_v32 = vmul.f32 %v5435_v2, %v5359_v15  ;;  %v5503_v2 = vld [vmem:[#allocation2 + $0x22] sm:$0xff] }
0x30a5   : > { %v5376_v37 = vadd.f32 %v5374_v12, %v5367_v9  ;;  %v5446_v12 = vmul.f32 %v5444_v28, %v5440_v35 }
0x316e   : > { %v6268_v38 = vpop.f32.mrb[60].mxu1 }
0x316f   : > { %5242 = vrot.lane.b32.xlu0 %v6268_v38, %s6424_s17  ;;  %v5229_v29 = vpop.f32.mrb[61].mxu1  ;;  %v5383_v38 = vmul.f32 %v5381_v16, %v5377_v34  ;;  %v5453_v16 = vrot.slane %v5258_v46, %v6988_v4 }
0x3170   : > { %5240 = vrot.lane.b32.xlu1 %v5229_v29, %s6424_s17  ;;  %v5375_v29 = vadd.f32 %v5373_v17, %v5366_v23  ;;  %v5445_v17 = vmul.f32 %v5444_v28, %v5368_v22  ;;  %v5259_v22 = vld [vmem:[%s7080_s5 + $0x18] sm:$0xff] }
0x3171   : > { %v5385_v42 = vadd.f32 %v5383_v38, %v5376_v37  ;;  %v5455_v38 = vmul.f32 %v5453_v16, %v5449_v55  ;;  %v5489_v50 = vrot.slane %v5259_v22, %v6966_v52  ;;  %v5516_v52 = vrot.slane %v5259_v22, %v6982_v7 }
0x3172   : > { %v5384_v20 = vadd.f32 %v5382_v40, %v5375_v29  ;;  %v5458_v29 = vld [vmem:[#allocation2 + $0x1d] sm:$0xff]  ;;  %v5454_v40 = vmul.f32 %v5453_v16, %v5377_v34 }
0x3173   : > { %v5394_v45 = vadd.f32 %v5392_v11, %v5385_v42  ;;  %v5464_v11 = vmul.f32 %v5462_v56, %v5458_v29 }
0x3174   : > { %v5393_v47 = vadd.f32 %v5391_v44, %v5384_v20  ;;  %v5467_v20 = vld [vmem:[#allocation2 + $0x1e] sm:$0xff]  ;;  %v5463_v44 = vmul.f32 %v5462_v56, %v5386_v41  ;;  %v5491_v41 = vmul.f32 %v6896_v58, %v5489_v50  ;;  %v5543_v56 = vrot.slane %v5259_v22, %v7000_v33 }
0x3175   : > { %v5403_v8 = vadd.f32 %v5401_v61, %v5394_v45  ;;  %v5473_v61 = vmul.f32 %v5471_v62, %v5467_v20 }
0x3176   : > { %v5402_v51 = vadd.f32 %v5400_v39, %v5393_v47  ;;  %v5476_v47 = vld [vmem:[#allocation2 + $0x1f] sm:$0xff] }
0x3177   : > { %v5412_v36 = vadd.f32 %v5410_v49, %v5403_v8  ;;  %v5472_v8 = vmul.f32 %v5471_v62, %v5395_v6  ;;  %v5482_v34 = vmul.f32 %v5480_v18, %v5476_v47 }
0x3178   : > { %v5411_v5 = vadd.f32 %v5409_v54, %v5402_v51  ;;  %v5481_v54 = vmul.f32 %v5480_v18, %v5404_v48  ;;  %v5512_v48 = vld [vmem:[#allocation2 + $0x23] sm:$0xff] }
0x3179   : > { %v5421_v63 = vadd.f32 %v5419_v59, %v5412_v36  ;;  %v5498_v59 = vrot.slane %v5259_v22, %v6968_v53  ;;  %v5525_v53 = vrot.slane %v5259_v22, %v6988_v4 }
0x317a   : > { %v5420_v43 = vadd.f32 %v5418_v27, %v5411_v5  ;;  %v5490_v5 = vmul.f32 %v5489_v50, %v5413_v57 }
0x317b   : > { %v5430_v19 = vadd.f32 %v5428_v0, %v5421_v63  ;;  %v5500_v63 = vmul.f32 %v5498_v59, %v5494_v60  ;;  %v5507_v0 = vrot.slane %v5259_v22, %v6975_v25  ;;  %v5534_v25 = vrot.slane %v5259_v22, %v6994_v31 }
0x317c   : > { %v5429_v30 = vadd.f32 %v5427_v14, %v5420_v43  ;;  %v5499_v43 = vmul.f32 %v5498_v59, %v5422_v1  ;;  %v5530_v1 = vld [vmem:[#allocation2 + $0x25] sm:$0xff] }
0x317d   : > { %v5439_v9 = vadd.f32 %v5437_v21, %v5430_v19  ;;  %v5509_v19 = vmul.f32 %v5507_v0, %v5503_v2  ;;  %v5508_v28 = vmul.f32 %v5507_v0, %v5431_v3  ;;  %v5536_v7 = vmul.f32 %v5534_v25, %v5530_v1  ;;  %v5539_v3 = vld [vmem:[#allocation2 + $0x26] sm:$0xff] }
0x317e   : > { %v5438_v23 = vadd.f32 %v5436_v32, %v5429_v30  ;;  %v5518_v32 = vmul.f32 %v5516_v52, %v5512_v48 }
0x317f   : > { %v5448_v37 = vadd.f32 %v5446_v12, %v5439_v9  ;;  %v5521_v9 = vld [vmem:[#allocation2 + $0x24] sm:$0xff]  ;;  %v5517_v12 = vmul.f32 %v5516_v52, %v5440_v35  ;;  %v5552_v35 = vrot.slane %v5259_v22, %v7004_v10 }
0x3180   : > { %v5447_v24 = vadd.f32 %v5445_v17, %v5438_v23  ;;  %v5527_v23 = vmul.f32 %v5525_v53, %v5521_v9 }
0x3181   : > { %v5457_v42 = vadd.f32 %v5455_v38, %v5448_v37  ;;  %v5526_v37 = vmul.f32 %v5525_v53, %v5449_v55  ;;  %v5809_v55 = vld [vmem:[%s7080_s5 + $0x20] ss:$0 sm:$0xff]  ;;  %v5553_v33 = vmul.f32 %v5552_v35, %v5476_v47 }
0x3182   : > { %v5456_v15 = vadd.f32 %v5454_v40, %v5447_v24  ;;  %v5535_v40 = vmul.f32 %v5534_v25, %v5458_v29  ;;  %v5564_v29 = vmul.f32 %v6896_v58, %v5809_v55 }
0x3183   : > { %v5466_v45 = vadd.f32 %v5464_v11, %v5457_v42  ;;  %v5545_v42 = vmul.f32 %v5543_v56, %v5539_v3  ;;  %v5548_v11 = vld [vmem:[#allocation2 + $0x27] sm:$0xff] }
0x3184   : > { %v5465_v39 = vadd.f32 %v5463_v44, %v5456_v15  ;;  %v5544_v15 = vmul.f32 %v5543_v56, %v5467_v20  ;;  %v5554_v44 = vmul.f32 %v5552_v35, %v5548_v11 }
0x3185   : > { %v5475_v49 = vadd.f32 %v5473_v61, %v5466_v45 }
0x3186   : > { %v5474_v51 = vadd.f32 %v5472_v8, %v5465_v39 }
0x3187   : > { %v5484_v36 = vadd.f32 %v5482_v34, %v5475_v49 }
0x3188   : > { %v5483_v46 = vadd.f32 %v5481_v54, %v5474_v51 }
0x3189   : > { %v5493_v27 = vadd.f32 %v5491_v41, %v5484_v36 }
0x318a   : > { %v5492_v6 = vadd.f32 %v5490_v5, %v5483_v46 }
0x318b   : > { %v5502_v14 = vadd.f32 %v5500_v63, %v5493_v27 }
0x318c   : > { %v5501_v21 = vadd.f32 %v5499_v43, %v5492_v6 }
0x318d   : > { %v5511_v30 = vadd.f32 %v5509_v19, %v5502_v14 }
0x318e   : > { %v5510_v57 = vadd.f32 %v5508_v28, %v5501_v21 }
0x318f   : > { %v5520_v16 = vadd.f32 %v5518_v32, %v5511_v30 }
0x3190   : > { %v5519_v17 = vadd.f32 %v5517_v12, %v5510_v57 }
0x3191   : > { %v5529_v38 = vadd.f32 %v5527_v23, %v5520_v16 }
0x3192   : > { %v5528_v24 = vadd.f32 %v5526_v37, %v5519_v17 }
0x3193   : > { %v5538_v4 = vadd.f32 %v5536_v7, %v5529_v38 }
0x3194   : > { %v5537_v62 = vadd.f32 %v5535_v40, %v5528_v24 }
0x3195   : > { %v5547_v31 = vadd.f32 %v5545_v42, %v5538_v4 }
0x3196   : > { %v5546_v45 = vadd.f32 %v5544_v15, %v5537_v62 }
0x3197   : > { %v5556_v61 = vadd.f32 %v5554_v44, %v5547_v31 }
0x3198   : > { %v5555_v18 = vadd.f32 %v5553_v33, %v5546_v45 }
0x3199   : > { %v5566_v39 = vadd.f32 %v5564_v29, %v5556_v61 }
0x319a   : > { %v5565_v10 = vadd.f32 %v5564_v29, %v5555_v18 }
0x31e1   : > { %v5243_v22 = vpop.permute.xlu0 %5242 }
0x31e2   : > { %v5247_v20 = vsel %vm617_vm2, %v6782_v26, %v5243_v22  ;;  %v5241_v8 = vpop.permute.xlu1 %5240 }
0x31e3   : > { %v5568_v49 = vadd.f32 %v5566_v39, %v5247_v20  ;;  %v5246_v47 = vsel %vm617_vm2, %v6784_v13, %v5241_v8 }
0x31e4   : > { %v5567_v34 = vadd.f32 %v5565_v10, %v5246_v47 }
0x31e5   : > { %5570 = vst [vmem:[%s462_s15 + $0x8] sm:$0xff] %v5568_v49 }
0x31e6   : > { %5569 = vst [vmem:[%s462_s15] sm:$0xff] %v5567_v34 }
0x31e7 PF: > { %s16_s25 = sadd.s32 1, %s6419_s25   ;;  %s7085_s21 = smov %s6407_s22 }
0x31e8   : > { %p13_p10 = scmp.ge.s32.totalorder %s16_s25, 4   ;;  %s7086_s22 = smov %s6499_s30 }
0x31e9   : > { %s7087_s23 = smov %s6415_s24  ;;  %s7088_s24 = smov %s7090_s26 }
0x31ea   :  { %15 = sbr.rel (!%p13_p10) target bundleno = 3 (0x3), region = 212 }

</bundles_post_ra>
